<compile_context>
chip_gen: v5e
topology: v5e:2x2
jax: 0.10.0
libtpu: 0.0.40
codegen_flags: <defaults>
</compile_context>

<pallas_src>
import functools

import jax
import jax.numpy as jnp
from jax import lax
from jax.experimental import pallas as pl
from jax.experimental.pallas import tpu as pltpu

N_EMBD = 64      # embedding size (C)
NUM_HEADS = 8
HEAD_SIZE = 8    # num_heads * head_size == n_embd
BLOCK_SIZE = 64  # max sequence length (causal mask size)


def _mha_kernel(x_ref, wqkv_ref, wo_ref, bo_ref, o_ref, *, num_heads, head_size):
    # x_ref: (Bb, T, C) VMEM block covering Bb batch rows.
    Bb, T, C = x_ref.shape
    H, hs = num_heads, head_size
    scale = C ** (-0.5)                      # torch spec scales by n_embd**-0.5
    neg_big = jnp.finfo(jnp.float32).min     # finite mask value (no inf-inf NaN risk)

    # ---- fused QKV projection: one lane-dense (Bb*T, C) x (C, 3C) MXU matmul [R3] ----
    x2 = x_ref[...].reshape(Bb * T, C).astype(jnp.bfloat16)
    qkv = jnp.dot(x2, wqkv_ref[...], preferred_element_type=jnp.float32)   # (Bb*T, 3C) f32

    q = qkv[:, 0 * C:1 * C].reshape(Bb, T, C)
    k = qkv[:, 1 * C:2 * C].reshape(Bb, T, C)
    v = qkv[:, 2 * C:3 * C].reshape(Bb, T, C)

    # ---- gather heads into the single leading batch dim: (Bb,T,C) -> (H*Bb,T,hs) [R4] ----
    def to_heads(t):
        return jnp.concatenate(
            [t[:, :, h * hs:(h + 1) * hs] for h in range(H)], axis=0
        ).astype(jnp.bfloat16)

    qh, kh, vh = to_heads(q), to_heads(k), to_heads(v)

    # Causal mask (T, T); broadcasts over the merged head*batch dim.
    row = lax.broadcasted_iota(jnp.int32, (T, T), 0)
    col = lax.broadcasted_iota(jnp.int32, (T, T), 1)
    causal = col <= row

    # ---- one batched QK^T over all heads & batch rows: (H*Bb, T, T) [R3, R4] ----
    s = lax.dot_general(qh, kh, (((2,), (2,)), ((0,), (0,))),
                        preferred_element_type=jnp.float32) * scale
    s = jnp.where(causal, s, neg_big)        # finite masking [R10]

    # numerically-stable softmax; reciprocal goes to the (otherwise idle) EUP slot
    s = s - jnp.max(s, axis=-1, keepdims=True)
    e = jnp.exp(s)
    p = e * pl.reciprocal(jnp.sum(e, axis=-1, keepdims=True), approx=True)

    # ---- one batched P @ V: (H*Bb, T, hs) [R3, R4] ----
    oh = lax.dot_general(p.astype(jnp.bfloat16), vh, (((2,), (1,)), ((0,), (0,))),
                         preferred_element_type=jnp.float32)

    # ---- heads back onto the lane axis, single K=C Wo epilogue matmul [R5] ----
    att = jnp.concatenate([oh[h * Bb:(h + 1) * Bb] for h in range(H)], axis=-1)  # (Bb,T,C)
    att2 = att.reshape(Bb * T, C).astype(jnp.bfloat16)
    out = jnp.dot(att2, wo_ref[...], preferred_element_type=jnp.float32) + bo_ref[...]

    o_ref[...] = out.reshape(Bb, T, C).astype(o_ref.dtype)


def _num_tensorcores():
    """2 TensorCores per chip on v7x, 1 on v5e/v6e (generation-aware grid split) [R2]."""
    try:
        kind = jax.devices()[0].device_kind.lower()
        if "v7" in kind or "tpu7" in kind:
            return 2
    except Exception:
        pass
    return 1


def _pick_batch_block(B, T, *, target_rows=256, max_rows=512, num_cores=1):
    """Largest divisor of B whose row count (batch_block*T) fits the row/VMEM cap.

    Only split the grid across steps when the device has >1 TensorCore AND each step
    still has >= target_rows rows (otherwise splitting is pure per-step overhead on a
    serial grid) [R1, R2, R7].
    """
    divisors = [d for d in range(1, B + 1) if B % d == 0]
    feasible = [d for d in divisors if d * T <= max_rows] or [1]
    blk = max(feasible)
    if num_cores > 1:
        split = [d for d in feasible if B // d >= num_cores and d * T >= target_rows]
        if split:
            blk = max(split)
    return blk


def multi_head_attention(x, wq, wk, wv, wo, bo,
                         *, num_heads=NUM_HEADS, head_size=HEAD_SIZE,
                         batch_block=None):
    """x: (B, T, C) float32. wq/wk/wv/wo: (C, C) stored (in_features, out_features),
    so y = x @ W matches torch's x @ W_torch.T. bo: (C,). Returns (B, T, C)."""
    B, T, C = x.shape
    assert C == num_heads * head_size == N_EMBD and T <= BLOCK_SIZE

    # Fuse Q|K|V weights into one lane-dense (C, 3C) RHS, in bf16 (one-time, host-side) [R3].
    wqkv = jnp.concatenate([wq, wk, wv], axis=1).astype(jnp.bfloat16)   # (C, 3C)
    wo_bf = wo.astype(jnp.bfloat16)
    bo2 = bo.reshape(1, C)                                              # bias added in f32

    if batch_block is None:
        batch_block = _pick_batch_block(B, T, num_cores=_num_tensorcores())
    assert B % batch_block == 0
    grid = (B // batch_block,)

    kernel = functools.partial(_mha_kernel, num_heads=num_heads, head_size=head_size)
    return pl.pallas_call(
        kernel,
        out_shape=jax.ShapeDtypeStruct((B, T, C), x.dtype),
        grid_spec=pltpu.PrefetchScalarGridSpec(
            num_scalar_prefetch=0,
            grid=grid,
            in_specs=[
                pl.BlockSpec((batch_block, T, C), lambda b: (b, 0, 0)),  # x block
                pl.BlockSpec((C, 3 * C), lambda b: (0, 0)),              # fused Wqkv (bf16)
                pl.BlockSpec((C, C), lambda b: (0, 0)),                  # Wo (bf16)
                pl.BlockSpec((1, C), lambda b: (0, 0)),                  # bo (f32)
            ],
            out_specs=pl.BlockSpec((batch_block, T, C), lambda b: (b, 0, 0)),
        ),
        compiler_params=pltpu.CompilerParams(
            dimension_semantics=("parallel",),
            vmem_limit_bytes=32 * 1024 * 1024,   # safe on v5e/v6e (128 MiB) and v7x (64 MiB) [R8]
        ),
    )(x, wqkv, wo_bf, bo2)


def _reference(x, wq, wk, wv, wo, bo, *, num_heads=NUM_HEADS, head_size=HEAD_SIZE):
    """Pure-JAX/f32 reference mirroring the PyTorch forward exactly."""
    B, T, C = x.shape
    q = x @ wq
    k = x @ wk
    v = x @ wv
    mask = jnp.tril(jnp.ones((T, T), dtype=bool))
    outs = []
    for h in range(num_heads):
        sl = slice(h * head_size, (h + 1) * head_size)
        s = (q[..., sl] @ jnp.swapaxes(k[..., sl], -2, -1)) * C ** (-0.5)
        s = jnp.where(mask, s, -jnp.inf)
        p = jax.nn.softmax(s, axis=-1)
        outs.append(p @ v[..., sl])
    att = jnp.concatenate(outs, axis=-1)
    return att @ wo + bo


if __name__ == "__main__":
    key = jax.random.PRNGKey(0)
    kx, kq, kk, kv, ko, kb = jax.random.split(key, 6)

    B, T, C = 4, 16, N_EMBD
    x = jax.random.normal(kx, (B, T, C), dtype=jnp.float32)

    # deterministic parameter init (uniform, like torch Linear's default scale)
    bound = 1.0 / (C ** 0.5)
    wq = jax.random.uniform(kq, (C, C), jnp.float32, -bound, bound)
    wk = jax.random.uniform(kk, (C, C), jnp.float32, -bound, bound)
    wv = jax.random.uniform(kv, (C, C), jnp.float32, -bound, bound)
    wo = jax.random.uniform(ko, (C, C), jnp.float32, -bound, bound)
    bo = jax.random.uniform(kb, (C,), jnp.float32, -bound, bound)

    out = multi_head_attention(x, wq, wk, wv, wo, bo)
    out = jax.block_until_ready(out)

    ref = _reference(x, wq, wk, wv, wo, bo)
    assert out.shape == (B, T, C)
    # Tolerance accounts for bf16 MXU operands (f32 accumulation) and the EUP
    # approx-reciprocal in the softmax normalization (~1e-4 relative).
    assert jnp.allclose(out, ref, atol=2e-2, rtol=2e-2), "mismatch vs JAX reference"
    print("KERNEL_OK")
</pallas_src>

<mosaic_0001>
module attributes {stable_mosaic.version = 11 : i64} {
  func.func @_mha_kernel(%arg0: i32, %arg1: memref<4x16x64xf32, #tpu.memory_space<vmem>>, %arg2: memref<64x192xbf16, #tpu.memory_space<vmem>>, %arg3: memref<64x64xbf16, #tpu.memory_space<vmem>>, %arg4: memref<1x64xf32, #tpu.memory_space<vmem>>, %arg5: memref<4x16x64xf32, #tpu.memory_space<vmem>>) attributes {dimension_semantics = [#tpu.dimension_semantics<parallel>], iteration_bounds = array<i64: 1>, scalar_prefetch = 0 : i64, scratch_operands = 0 : i64, tpu.core_type = #tpu.core_type<tc>, window_params = [{transform_indices = @transform_0, window_bounds = array<i64: 4, 16, 64>}, {pipeline_mode = #tpu.pipeline_mode<synchronous>, transform_indices = @transform_1, window_bounds = array<i64: 64, 192>}, {pipeline_mode = #tpu.pipeline_mode<synchronous>, transform_indices = @transform_2, window_bounds = array<i64: 64, 64>}, {pipeline_mode = #tpu.pipeline_mode<synchronous>, transform_indices = @transform_3, window_bounds = array<i64: 1, 64>}, {transform_indices = @transform_4, window_bounds = array<i64: 4, 16, 64>}]} {
    %c0 = arith.constant 0 : index
    %c0_0 = arith.constant 0 : index
    %c0_1 = arith.constant 0 : index
    %0 = vector.load %arg1[%c0, %c0_0, %c0_1] : memref<4x16x64xf32, #tpu.memory_space<vmem>>, vector<4x16x64xf32>
    %1 = vector.shape_cast %0 : vector<4x16x64xf32> to vector<64x64xf32>
    %2 = arith.truncf %1 : vector<64x64xf32> to vector<64x64xbf16>
    %c0_2 = arith.constant 0 : index
    %c0_3 = arith.constant 0 : index
    %3 = vector.load %arg2[%c0_2, %c0_3] : memref<64x192xbf16, #tpu.memory_space<vmem>>, vector<64x192xbf16>
    %cst = arith.constant dense<0.000000e+00> : vector<64x192xf32>
    %4 = tpu.matmul %2, %3, %cst {dimension_numbers = #tpu.dot_dimension_numbers<[1], [0], [0], [1], [0, 0, 1, 1], [], []>} : vector<64x64xbf16>, vector<64x192xbf16>, vector<64x192xf32> -> vector<64x192xf32>
    %5 = vector.extract_strided_slice %4 {offsets = [0, 0], sizes = [64, 64], strides = [1, 1]} : vector<64x192xf32> to vector<64x64xf32>
    %6 = vector.shape_cast %5 : vector<64x64xf32> to vector<4x16x64xf32>
    %7 = vector.extract_strided_slice %4 {offsets = [0, 64], sizes = [64, 64], strides = [1, 1]} : vector<64x192xf32> to vector<64x64xf32>
    %8 = vector.shape_cast %7 : vector<64x64xf32> to vector<4x16x64xf32>
    %9 = vector.extract_strided_slice %4 {offsets = [0, 128], sizes = [64, 64], strides = [1, 1]} : vector<64x192xf32> to vector<64x64xf32>
    %10 = vector.shape_cast %9 : vector<64x64xf32> to vector<4x16x64xf32>
    %11 = vector.extract_strided_slice %6 {offsets = [0, 0, 0], sizes = [4, 16, 8], strides = [1, 1, 1]} : vector<4x16x64xf32> to vector<4x16x8xf32>
    %12 = vector.extract_strided_slice %6 {offsets = [0, 0, 8], sizes = [4, 16, 8], strides = [1, 1, 1]} : vector<4x16x64xf32> to vector<4x16x8xf32>
    %13 = vector.extract_strided_slice %6 {offsets = [0, 0, 16], sizes = [4, 16, 8], strides = [1, 1, 1]} : vector<4x16x64xf32> to vector<4x16x8xf32>
    %14 = vector.extract_strided_slice %6 {offsets = [0, 0, 24], sizes = [4, 16, 8], strides = [1, 1, 1]} : vector<4x16x64xf32> to vector<4x16x8xf32>
    %15 = vector.extract_strided_slice %6 {offsets = [0, 0, 32], sizes = [4, 16, 8], strides = [1, 1, 1]} : vector<4x16x64xf32> to vector<4x16x8xf32>
    %16 = vector.extract_strided_slice %6 {offsets = [0, 0, 40], sizes = [4, 16, 8], strides = [1, 1, 1]} : vector<4x16x64xf32> to vector<4x16x8xf32>
    %17 = vector.extract_strided_slice %6 {offsets = [0, 0, 48], sizes = [4, 16, 8], strides = [1, 1, 1]} : vector<4x16x64xf32> to vector<4x16x8xf32>
    %18 = vector.extract_strided_slice %6 {offsets = [0, 0, 56], sizes = [4, 16, 8], strides = [1, 1, 1]} : vector<4x16x64xf32> to vector<4x16x8xf32>
    %19 = tpu.concatenate %11, %12, %13, %14, %15, %16, %17, %18 in 0 : vector<4x16x8xf32>, vector<4x16x8xf32>, vector<4x16x8xf32>, vector<4x16x8xf32>, vector<4x16x8xf32>, vector<4x16x8xf32>, vector<4x16x8xf32>, vector<4x16x8xf32> -> vector<32x16x8xf32>
    %20 = arith.truncf %19 : vector<32x16x8xf32> to vector<32x16x8xbf16>
    %21 = vector.extract_strided_slice %8 {offsets = [0, 0, 0], sizes = [4, 16, 8], strides = [1, 1, 1]} : vector<4x16x64xf32> to vector<4x16x8xf32>
    %22 = vector.extract_strided_slice %8 {offsets = [0, 0, 8], sizes = [4, 16, 8], strides = [1, 1, 1]} : vector<4x16x64xf32> to vector<4x16x8xf32>
    %23 = vector.extract_strided_slice %8 {offsets = [0, 0, 16], sizes = [4, 16, 8], strides = [1, 1, 1]} : vector<4x16x64xf32> to vector<4x16x8xf32>
    %24 = vector.extract_strided_slice %8 {offsets = [0, 0, 24], sizes = [4, 16, 8], strides = [1, 1, 1]} : vector<4x16x64xf32> to vector<4x16x8xf32>
    %25 = vector.extract_strided_slice %8 {offsets = [0, 0, 32], sizes = [4, 16, 8], strides = [1, 1, 1]} : vector<4x16x64xf32> to vector<4x16x8xf32>
    %26 = vector.extract_strided_slice %8 {offsets = [0, 0, 40], sizes = [4, 16, 8], strides = [1, 1, 1]} : vector<4x16x64xf32> to vector<4x16x8xf32>
    %27 = vector.extract_strided_slice %8 {offsets = [0, 0, 48], sizes = [4, 16, 8], strides = [1, 1, 1]} : vector<4x16x64xf32> to vector<4x16x8xf32>
    %28 = vector.extract_strided_slice %8 {offsets = [0, 0, 56], sizes = [4, 16, 8], strides = [1, 1, 1]} : vector<4x16x64xf32> to vector<4x16x8xf32>
    %29 = tpu.concatenate %21, %22, %23, %24, %25, %26, %27, %28 in 0 : vector<4x16x8xf32>, vector<4x16x8xf32>, vector<4x16x8xf32>, vector<4x16x8xf32>, vector<4x16x8xf32>, vector<4x16x8xf32>, vector<4x16x8xf32>, vector<4x16x8xf32> -> vector<32x16x8xf32>
    %30 = arith.truncf %29 : vector<32x16x8xf32> to vector<32x16x8xbf16>
    %31 = vector.extract_strided_slice %10 {offsets = [0, 0, 0], sizes = [4, 16, 8], strides = [1, 1, 1]} : vector<4x16x64xf32> to vector<4x16x8xf32>
    %32 = vector.extract_strided_slice %10 {offsets = [0, 0, 8], sizes = [4, 16, 8], strides = [1, 1, 1]} : vector<4x16x64xf32> to vector<4x16x8xf32>
    %33 = vector.extract_strided_slice %10 {offsets = [0, 0, 16], sizes = [4, 16, 8], strides = [1, 1, 1]} : vector<4x16x64xf32> to vector<4x16x8xf32>
    %34 = vector.extract_strided_slice %10 {offsets = [0, 0, 24], sizes = [4, 16, 8], strides = [1, 1, 1]} : vector<4x16x64xf32> to vector<4x16x8xf32>
    %35 = vector.extract_strided_slice %10 {offsets = [0, 0, 32], sizes = [4, 16, 8], strides = [1, 1, 1]} : vector<4x16x64xf32> to vector<4x16x8xf32>
    %36 = vector.extract_strided_slice %10 {offsets = [0, 0, 40], sizes = [4, 16, 8], strides = [1, 1, 1]} : vector<4x16x64xf32> to vector<4x16x8xf32>
    %37 = vector.extract_strided_slice %10 {offsets = [0, 0, 48], sizes = [4, 16, 8], strides = [1, 1, 1]} : vector<4x16x64xf32> to vector<4x16x8xf32>
    %38 = vector.extract_strided_slice %10 {offsets = [0, 0, 56], sizes = [4, 16, 8], strides = [1, 1, 1]} : vector<4x16x64xf32> to vector<4x16x8xf32>
    %39 = tpu.concatenate %31, %32, %33, %34, %35, %36, %37, %38 in 0 : vector<4x16x8xf32>, vector<4x16x8xf32>, vector<4x16x8xf32>, vector<4x16x8xf32>, vector<4x16x8xf32>, vector<4x16x8xf32>, vector<4x16x8xf32>, vector<4x16x8xf32> -> vector<32x16x8xf32>
    %40 = arith.truncf %39 : vector<32x16x8xf32> to vector<32x16x8xbf16>
    %41 = tpu.iota {dimensions = array<i32: 0>} : vector<16x16xi32>
    %42 = tpu.iota {dimensions = array<i32: 1>} : vector<16x16xi32>
    %43 = arith.cmpi sle, %42, %41 : vector<16x16xi32>
    %cst_4 = arith.constant dense<0.000000e+00> : vector<32x16x16xf32>
    %44 = tpu.matmul %20, %30, %cst_4 {dimension_numbers = #tpu.dot_dimension_numbers<[2], [2], [1], [1], [0, 0, 0, 1, 1, 1], [0], [0]>} : vector<32x16x8xbf16>, vector<32x16x8xbf16>, vector<32x16x16xf32> -> vector<32x16x16xf32>
    %cst_5 = arith.constant 1.250000e-01 : f32
    %45 = vector.broadcast %cst_5 : f32 to vector<32x16x16xf32>
    %46 = arith.mulf %44, %45 : vector<32x16x16xf32>
    %cst_6 = arith.constant -3.40282347E+38 : f32
    %47 = vector.shape_cast %43 : vector<16x16xi1> to vector<1x16x16xi1>
    %48 = vector.broadcast %47 : vector<1x16x16xi1> to vector<32x16x16xi1>
    %49 = vector.broadcast %cst_6 : f32 to vector<32x16x16xf32>
    %50 = arith.select %48, %46, %49 : vector<32x16x16xi1>, vector<32x16x16xf32>
    %cst_7 = arith.constant dense<0xFF800000> : vector<32x16xf32>
    %51 = vector.multi_reduction <maximumf>, %50, %cst_7 [2] : vector<32x16x16xf32> to vector<32x16xf32>
    %52 = vector.shape_cast %51 : vector<32x16xf32> to vector<32x16x1xf32>
    %53 = vector.broadcast %52 : vector<32x16x1xf32> to vector<32x16x16xf32>
    %54 = arith.subf %50, %53 : vector<32x16x16xf32>
    %55 = math.exp %54 : vector<32x16x16xf32>
    %cst_8 = arith.constant dense<0.000000e+00> : vector<32x16xf32>
    %56 = vector.multi_reduction <add>, %55, %cst_8 [2] : vector<32x16x16xf32> to vector<32x16xf32>
    %57 = vector.shape_cast %56 : vector<32x16xf32> to vector<32x16x1xf32>
    %58 = tpu.reciprocal %57 {approx = true} : vector<32x16x1xf32> -> vector<32x16x1xf32>
    %59 = vector.broadcast %58 : vector<32x16x1xf32> to vector<32x16x16xf32>
    %60 = arith.mulf %55, %59 : vector<32x16x16xf32>
    %61 = arith.truncf %60 : vector<32x16x16xf32> to vector<32x16x16xbf16>
    %cst_9 = arith.constant dense<0.000000e+00> : vector<32x16x8xf32>
    %62 = tpu.matmul %61, %40, %cst_9 {dimension_numbers = #tpu.dot_dimension_numbers<[2], [1], [1], [2], [0, 0, 0, 1, 1, 2], [0], [0]>} : vector<32x16x16xbf16>, vector<32x16x8xbf16>, vector<32x16x8xf32> -> vector<32x16x8xf32>
    %63 = vector.extract_strided_slice %62 {offsets = [0, 0, 0], sizes = [4, 16, 8], strides = [1, 1, 1]} : vector<32x16x8xf32> to vector<4x16x8xf32>
    %64 = vector.extract_strided_slice %62 {offsets = [4, 0, 0], sizes = [4, 16, 8], strides = [1, 1, 1]} : vector<32x16x8xf32> to vector<4x16x8xf32>
    %65 = vector.extract_strided_slice %62 {offsets = [8, 0, 0], sizes = [4, 16, 8], strides = [1, 1, 1]} : vector<32x16x8xf32> to vector<4x16x8xf32>
    %66 = vector.extract_strided_slice %62 {offsets = [12, 0, 0], sizes = [4, 16, 8], strides = [1, 1, 1]} : vector<32x16x8xf32> to vector<4x16x8xf32>
    %67 = vector.extract_strided_slice %62 {offsets = [16, 0, 0], sizes = [4, 16, 8], strides = [1, 1, 1]} : vector<32x16x8xf32> to vector<4x16x8xf32>
    %68 = vector.extract_strided_slice %62 {offsets = [20, 0, 0], sizes = [4, 16, 8], strides = [1, 1, 1]} : vector<32x16x8xf32> to vector<4x16x8xf32>
    %69 = vector.extract_strided_slice %62 {offsets = [24, 0, 0], sizes = [4, 16, 8], strides = [1, 1, 1]} : vector<32x16x8xf32> to vector<4x16x8xf32>
    %70 = vector.extract_strided_slice %62 {offsets = [28, 0, 0], sizes = [4, 16, 8], strides = [1, 1, 1]} : vector<32x16x8xf32> to vector<4x16x8xf32>
    %71 = tpu.concatenate %63, %64, %65, %66, %67, %68, %69, %70 in 2 : vector<4x16x8xf32>, vector<4x16x8xf32>, vector<4x16x8xf32>, vector<4x16x8xf32>, vector<4x16x8xf32>, vector<4x16x8xf32>, vector<4x16x8xf32>, vector<4x16x8xf32> -> vector<4x16x64xf32>
    %72 = vector.shape_cast %71 : vector<4x16x64xf32> to vector<64x64xf32>
    %73 = arith.truncf %72 : vector<64x64xf32> to vector<64x64xbf16>
    %c0_10 = arith.constant 0 : index
    %c0_11 = arith.constant 0 : index
    %74 = vector.load %arg3[%c0_10, %c0_11] : memref<64x64xbf16, #tpu.memory_space<vmem>>, vector<64x64xbf16>
    %cst_12 = arith.constant dense<0.000000e+00> : vector<64x64xf32>
    %75 = tpu.matmul %73, %74, %cst_12 {dimension_numbers = #tpu.dot_dimension_numbers<[1], [0], [0], [1], [0, 0, 1, 1], [], []>} : vector<64x64xbf16>, vector<64x64xbf16>, vector<64x64xf32> -> vector<64x64xf32>
    %c0_13 = arith.constant 0 : index
    %c0_14 = arith.constant 0 : index
    %76 = vector.load %arg4[%c0_13, %c0_14] : memref<1x64xf32, #tpu.memory_space<vmem>>, vector<1x64xf32>
    %77 = vector.broadcast %76 : vector<1x64xf32> to vector<64x64xf32>
    %78 = arith.addf %75, %77 : vector<64x64xf32>
    %79 = vector.shape_cast %78 : vector<64x64xf32> to vector<4x16x64xf32>
    %c0_15 = arith.constant 0 : index
    %c0_16 = arith.constant 0 : index
    %c0_17 = arith.constant 0 : index
    %80 = vector.load %arg5[%c0_15, %c0_16, %c0_17] : memref<4x16x64xf32, #tpu.memory_space<vmem>>, vector<4x16x64xf32>
    tpu.vector_store %arg5[%c0_15, %c0_16, %c0_17], %79 {strides = array<i32>} : memref<4x16x64xf32, #tpu.memory_space<vmem>>, vector<4x16x64xf32>,
    return
  }
  func.func @transform_0(%arg0: i32) -> (i32, i32, i32) {
    %c0_i32 = arith.constant 0 : i32
    %c0_i32_0 = arith.constant 0 : i32
    %c0_i32_1 = arith.constant 0 : i32
    return %arg0, %c0_i32, %c0_i32_0 : i32, i32, i32
  }
  func.func @transform_1(%arg0: i32) -> (i32, i32) {
    %c0_i32 = arith.constant 0 : i32
    %c0_i32_0 = arith.constant 0 : i32
    %c0_i32_1 = arith.constant 0 : i32
    return %c0_i32, %c0_i32_0 : i32, i32
  }
  func.func @transform_2(%arg0: i32) -> (i32, i32) {
    %c0_i32 = arith.constant 0 : i32
    %c0_i32_0 = arith.constant 0 : i32
    %c0_i32_1 = arith.constant 0 : i32
    return %c0_i32, %c0_i32_0 : i32, i32
  }
  func.func @transform_3(%arg0: i32) -> (i32, i32) {
    %c0_i32 = arith.constant 0 : i32
    %c0_i32_0 = arith.constant 0 : i32
    %c0_i32_1 = arith.constant 0 : i32
    return %c0_i32, %c0_i32_0 : i32, i32
  }
  func.func @transform_4(%arg0: i32) -> (i32, i32, i32) {
    %c0_i32 = arith.constant 0 : i32
    %c0_i32_0 = arith.constant 0 : i32
    %c0_i32_1 = arith.constant 0 : i32
    return %arg0, %c0_i32, %c0_i32_0 : i32, i32, i32
  }
}

</mosaic_0001>

<bundles_post_ra>
// kernel: tpu_custom_call.1
= control target key start
LH: loop header
LB: loop body
LE: loop exit
PB: predicated region body
PF: predicated region fallthrough
CT: control target
= control target key end

     0   :  { %9 = vsyncpa [#allocation3], 0  ;;  %s6414_s0 = inlined_call_operand.hbm [shape: f32[4,16,64], index: 0, kind: input, shape index: {}]   ;;  %s6415_s1 = inlined_call_operand.hbm [shape: bf16[64,192], index: 1, kind: input, shape index: {}]   ;;  %s6416_s2 = inlined_call_operand.hbm [shape: bf16[64,64], index: 2, kind: input, shape index: {}]   ;;  %s6417_s3 = inlined_call_operand.vmem [shape: f32[1,64], index: 3, kind: input, shape index: {}]   ;;  %s6418_s4 = inlined_call_operand.hbm [shape: f32[4,16,64], index: 4, kind: output, shape index: {}]  }
   0x1   :  { %10 = vsyncpa [#allocation6], 0 }
   0x2   :  { %11 = vsyncpa [#allocation4], 0  ;;  %s29_s17 = sshll.u32 %s6415_s1, 4  ;;  %s4680_s18 = smov [#allocation5]   ;;  %s30_s17 = int_to_ptr.hbm [resolvable:$true] %s29_s17 }
   0x3   :  { %s31_s19 = sshll.u32 %s4680_s18, 4  ;;  %s16_s22 = sshll.u32 %s6414_s0, 4  ;;  %s32_s19 = int_to_ptr.vmem [resolvable:$true] %s31_s19  ;;  %s17_s22 = int_to_ptr.hbm [resolvable:$true] %s16_s22 }
   0x4   :  { %s4681_s23 = smov 128   ;;  %s4682_s24 = smov 8  }
   0x5   :  { %37 = dma.hbm_to_vmem [thread:$0]  %s30_s17, 1024, %s32_s19, [#allocation6], %s4681_s23, %s4681_s23, %s4682_s24  }
   0x6   :  { %s4683_s25 = smov [#allocation2]   ;;  %s42_s1 = sshll.u32 %s6416_s2, 4  ;;  %s43_s1 = int_to_ptr.hbm [resolvable:$true] %s42_s1 }
   0x7   :  { %s18_s26 = sshll.u32 %s4683_s25, 4  ;;  %s4684_s0 = smov [#allocation7]   ;;  %s19_s26 = int_to_ptr.vmem [resolvable:$true] %s18_s26 }
   0x8   :  { %24 = dma.hbm_to_vmem [thread:$0]  %s17_s22, 1024, %s19_s26, [#allocation3], %s4681_s23, %s4681_s23, %s4682_s24  }
   0x9   :  { %s44_s29 = sshll.u32 %s4684_s0, 4  ;;  %s4685_s30 = smov 64   ;;  %s45_s29 = int_to_ptr.vmem [resolvable:$true] %s44_s29 }
   0xa   :  { %s4686_s5 = smov 4  }
   0xb   :  { %50 = dma.hbm_to_vmem [thread:$0]  %s43_s1, 512, %s45_s29, [#allocation6], %s4685_s30, %s4685_s30, %s4686_s5  }
   0xc   :  { %4674 = dma.done.wait [#allocation3], 1024  }
   0xd   :  { %4675 = vsyncadd [#allocation3], 4294966272 }
   0xe   :  { %4676 = dma.done.wait [#allocation6], 1536  }
   0xf   :  { %4677 = vsyncadd [#allocation6], 4294965760  ;;  %v3766_v0 = vld [vmem:[#allocation5 + $0x30] sm:$0xf]  ;;  %v3871_v1 = vld [vmem:[#allocation5 + $0x34] sm:$0xf0] }
  0x10   :  { %v3758_v2 = vld [vmem:[#allocation5 + $0x20] sm:$0xf]  ;;  %v3767_v3 = vor.u32 %v3871_v1, %v3766_v0  ;;  %v3869_v4 = vld [vmem:[#allocation5 + $0x24] sm:$0xf0]  ;;  %v3870_v5 = vld [vmem:[#allocation5 + $0x34] sm:$0xf] }
  0x11   :  { %v3768_v6 = vld [vmem:[#allocation5 + $0x38] sm:$0xf0]  ;;  %v3759_v7 = vor.u32 %v3869_v4, %v3758_v2  ;;  %v3868_v9 = vld [vmem:[#allocation5 + $0x24] sm:$0xf]  ;;  %v3760_v10 = vld [vmem:[#allocation5 + $0x28] sm:$0xf0] }
  0x12   :  { %143 = vmatpush.bf16.msra.mxu0 %v3767_v3  ;;  %v3771_v8 = vor.u32 %v3870_v5, %v3768_v6  ;;  %v3750_v11 = vld [vmem:[#allocation5 + $0x10] sm:$0xf]  ;;  %v3867_v12 = vld [vmem:[#allocation5 + $0x14] sm:$0xf0]  ;;  %v3763_v13 = vor.u32 %v3868_v9, %v3760_v10  ;;  %v3866_v14 = vld [vmem:[#allocation5 + $0x14] sm:$0xf] }
  0x13   :  { %v3752_v15 = vld [vmem:[#allocation5 + $0x18] sm:$0xf0]  ;;  %v3751_v16 = vor.u32 %v3867_v12, %v3750_v11  ;;  %v3742_v17 = vld [vmem:[#allocation5] sm:$0xf]  ;;  %v3865_v18 = vld [vmem:[#allocation5 + $0x4] sm:$0xf0] }
  0x14   :  { %172 = vmatpush.bf16.msra.mxu1 %v3771_v8  ;;  %v3755_v19 = vor.u32 %v3866_v14, %v3752_v15  ;;  %v3864_v20 = vld [vmem:[#allocation5 + $0x4] sm:$0xf]  ;;  %v3744_v21 = vld [vmem:[#allocation5 + $0x8] sm:$0xf0]  ;;  %v3743_v22 = vor.u32 %v3865_v18, %v3742_v17  ;;  %vm126_vm0 = vcmask 523264   ;;  %v68_v27 = vld [vmem:[#allocation2 + $0x10] sm:$0xff] }
  0x15   :  { %v66_v23 = vld [vmem:[#allocation2] sm:$0xff]  ;;  %v67_v24 = vld [vmem:[#allocation2 + $0x8] sm:$0xff]  ;;  %v3747_v25 = vor.u32 %v3864_v20, %v3744_v21  ;;  %v69_v28 = vld [vmem:[#allocation2 + $0x18] sm:$0xff]  ;;  %s4687_s2 = smov 88   ;;  %s4688_s6 = smov 112   ;;  %vm691_vm1 = vcmask 64512  }
  0x16   :  { %144 = vmatpush.bf16.msra.mxu0 %v3759_v7  ;;  %v74_v26 = vpack.c.bf16 %v67_v24, %v66_v23  ;;  %v75_v29 = vpack.c.bf16 %v69_v28, %v68_v27  ;;  %v70_v30 = vld [vmem:[#allocation2 + $0x20] sm:$0xff]  ;;  %v71_v31 = vld [vmem:[#allocation2 + $0x28] sm:$0xff]  ;;  %v72_v33 = vld [vmem:[#allocation2 + $0x30] sm:$0xff]  ;;  %s4689_s7 = smov 120   ;;  %s4690_s8 = smov 104   ;;  %vm1681_vm3 = vcmask 130048  }
  0x17   :  { %v76_v32 = vpack.c.bf16 %v71_v31, %v70_v30  ;;  %v73_v34 = vld [vmem:[#allocation2 + $0x38] sm:$0xff]  ;;  %s4691_s9 = smov 96   ;;  %s4692_s10 = smov 80   ;;  %vm3586_vm5 = vcmask 195584   ;;  %vm3595_vm6 = vcmask 261120   ;;  %vm3604_vm7 = vcmask 326656  }
  0x18   :  { %173 = vmatpush.bf16.msra.mxu1 %v3763_v13  ;;  %v77_v35 = vpack.c.bf16 %v73_v34, %v72_v33  ;;  %s4693_s11 = smov 72   ;;  %s4694_s12 = smov 16   ;;  %vm3613_vm8 = vcmask 392192   ;;  %vm3622_vm9 = vcmask 457728  }
  0x19   :  { %s4695_s13 = smov 24   ;;  %s4696_s14 = smov 32  }
  0x1a   :  { %145 = vmatpush.bf16.msra.mxu0 %v3751_v16  ;;  %s4697_s15 = smov 40   ;;  %s4698_s16 = smov 48  }
  0x1b   :  { %s4699_s17 = smov 56   ;;  %s3726_s25 = sshll.u32 %s6418_s4, 4  ;;  %s3727_s25 = int_to_ptr.hbm [resolvable:$true] %s3726_s25 }
  0x1c   :  { %174 = vmatpush.bf16.msra.mxu1 %v3755_v19 }
  0x1e   :  { %146 = vmatpush.bf16.msra.mxu0 %v3743_v22 }
  0x20   :  { %175 = vmatpush.bf16.msra.mxu1 %v3747_v25 }
  0x21   :  { %3772 = vmatmul.msk.bf16.vlgmr.msra.gmra.mxu0 %vm126_vm0, %v74_v26 }
  0x23   :  { %3776 = vmatmul.msk.bf16.vlgmr.msra.gmra.mxu1 %vm126_vm0, %v74_v26 }
  0x31   :  { %3773 = vmatmul.msk.bf16.gmra.mxu0 %vm126_vm0, %v75_v29 }
  0x33   :  { %3777 = vmatmul.msk.bf16.gmra.mxu1 %vm126_vm0, %v75_v29 }
  0x41   :  { %3774 = vmatmul.msk.bf16.gmra.mxu0 %vm126_vm0, %v76_v32 }
  0x43   :  { %3778 = vmatmul.msk.bf16.gmra.mxu1 %vm126_vm0, %v76_v32 }
  0x51   :  { %3775 = vmatmul.msk.bf16.gmra.mxu0 %vm126_vm0, %v77_v35 }
  0x53   :  { %3779 = vmatmul.msk.bf16.gmra.mxu1 %vm126_vm0, %v77_v35 }
  0x9e   :  { %v148_v36 = vpop.f32.mrf.mxu0 }
  0x9f   :  { %v373_v50 = vpack.c.bf16 %v148_v36, %v148_v36 }
  0xa0   :  { %v4751_v37 = vpop.f32.mrf.mxu1 }
  0xa1   :  { %v686_v52 = vunpack.c.l.b16 %v373_v50 }
  0xa6   :  { %v150_v38 = vpop.f32.mrf.mxu0 }
  0xa7   :  { %v3921_v39 = vpack.i.bf16 %v150_v38, %v148_v36  ;;  %v374_v48 = vpack.c.bf16 %v150_v38, %v150_v38 }
  0xa8   :  { %v4756_v40 = vpop.f32.mrf.mxu1 }
  0xa9   :  { %3922 = vrot.lane.b32.xlu1 %v3921_v39, %s4687_s2  ;;  %3907 = vrot.lane.b32.xlu2 %v3921_v39, %s4688_s6  ;;  %v3936_v41 = vpack.i.bf16 %v4756_v40, %v4751_v37  ;;  %v687_v51 = vunpack.c.l.b16 %v374_v48 }
  0xaa   :  { %3902 = vrot.lane.b32.xlu0 %v3921_v39, %s4689_s7 }
  0xab   :  { %v4783_v53 = vpack.c.b16 %v687_v51, %v686_v52 }
  0xae   :  { %v153_v42 = vpop.f32.mrf.mxu0 }
  0xaf   :  { %v375_v59 = vpack.c.bf16 %v153_v42, %v153_v42 }
  0xb0   :  { %v4766_v45 = vpop.f32.mrf.mxu1 }
  0xb1   :  { %3937 = vrot.lane.b32.xlu1 %v3936_v41, %s4689_s7  ;;  %3912 = vrot.lane.b32.xlu2 %v3921_v39, %s4690_s8  ;;  %v714_v61 = vunpack.c.l.b16 %v375_v59 }
  0xb2   :  { %3917 = vrot.lane.b32.xlu0 %v3921_v39, %s4691_s9 }
  0xb6   :  { %v155_v43 = vpop.f32.mrf.mxu0 }
  0xb7   :  { %v3986_v44 = vpack.i.bf16 %v155_v43, %v153_v42  ;;  %v376_v60 = vpack.c.bf16 %v155_v43, %v155_v43 }
  0xb8   :  { %v4774_v46 = vpop.f32.mrf.mxu1 }
  0xb9   :  { %3962 = vrot.lane.b32.xlu1 %v3936_v41, %s4692_s10  ;;  %3927 = vrot.lane.b32.xlu2 %v3921_v39, %s4692_s10  ;;  %v4016_v47 = vpack.i.bf16 %v4774_v46, %v4766_v45  ;;  %v715_v62 = vunpack.c.l.b16 %v376_v60 }
  0xba   :  { %3932 = vrot.lane.b32.xlu0 %v3921_v39, %s4693_s11 }
  0xbb   :  { %v4808_v63 = vpack.c.b16 %v715_v62, %v714_v61 }
  0xbe   :  { %v4778_v49 = vpop.f32.mrf.mxu0 }
  0xbf   :  { %v377_v10 = vpack.c.bf16 %v4778_v49, %v4778_v49 }
  0xc0   :  { %v4793_v56 = vpop.f32.mrf.mxu1 }
  0xc1   :  { %3942 = vrot.lane.b32.xlu2 %v3936_v41, %s4688_s6  ;;  %3987 = vrot.lane.b32.xlu1 %v3986_v44, %s4691_s9  ;;  %v741_v16 = vunpack.c.l.b16 %v377_v10 }
  0xc2   :  { %3947 = vrot.lane.b32.xlu0 %v3936_v41, %s4690_s8 }
  0xc6   :  { %v160_v54 = vpop.f32.mrf.mxu0 }
  0xc7   :  { %v4041_v55 = vpack.i.bf16 %v160_v54, %v4778_v49  ;;  %v378_v11 = vpack.c.bf16 %v160_v54, %v160_v54 }
  0xc8   :  { %v4801_v57 = vpop.f32.mrf.mxu1 }
  0xc9   :  { %3952 = vrot.lane.b32.xlu2 %v3936_v41, %s4691_s9  ;;  %4002 = vrot.lane.b32.xlu1 %v3986_v44, %s4693_s11  ;;  %v4081_v58 = vpack.i.bf16 %v4801_v57, %v4793_v56  ;;  %v742_v17 = vunpack.c.l.b16 %v378_v11 }
  0xca   :  { %3967 = vrot.lane.b32.xlu0 %v3936_v41, %s4693_s11 }
  0xcb   :  { %v4854_v19 = vpack.c.b16 %v742_v17, %v741_v16 }
  0xce   :  { %v4810_v0 = vpop.f32.mrf.mxu0 }
  0xcf   :  { %v379_v52 = vpack.c.bf16 %v4810_v0, %v4810_v0 }
  0xd0   :  { %v4830_v6 = vpop.f32.mrf.mxu1 }
  0xd1   :  { %3957 = vrot.lane.b32.xlu2 %v3936_v41, %s4687_s2  ;;  %4017 = vrot.lane.b32.xlu1 %v4016_v47, %s4690_s8 }
  0xd2   :  { %3972 = vrot.lane.b32.xlu0 %v3986_v44, %s4689_s7 }
  0xd6   :  { %v4819_v2 = vpop.f32.mrf.mxu0 }
  0xd7   :  { %v4111_v4 = vpack.i.bf16 %v4819_v2, %v4810_v0  ;;  %v380_v54 = vpack.c.bf16 %v4819_v2, %v4819_v2 }
  0xd8   :  { %v4844_v12 = vpop.f32.mrf.mxu1 }
  0xd9   :  { %689 = vrot.lane.b32.xlu2 %v4783_v53, %s4685_s30  ;;  %4037 = vrot.lane.b32.xlu1 %v4016_v47, %s4693_s11  ;;  %v4852_v18 = vpack.i.bf16 %v4844_v12, %v4830_v6  ;;  %v769_v10 = vunpack.c.l.b16 %v380_v54 }
  0xda   :  { %3982 = vrot.lane.b32.xlu0 %v3986_v44, %s4690_s8 }
  0xe1   :  { %3977 = vrot.lane.b32.xlu2 %v3986_v44, %s4688_s6  ;;  %4042 = vrot.lane.b32.xlu1 %v4041_v55, %s4689_s7 }
  0xe2   :  { %3997 = vrot.lane.b32.xlu0 %v3986_v44, %s4692_s10 }
  0xe9   :  { %3992 = vrot.lane.b32.xlu2 %v3986_v44, %s4687_s2  ;;  %4052 = vrot.lane.b32.xlu1 %v4041_v55, %s4690_s8 }
  0xea   :  { %4012 = vrot.lane.b32.xlu0 %v4016_v47, %s4688_s6 }
  0xf1   :  { %4007 = vrot.lane.b32.xlu2 %v4016_v47, %s4689_s7  ;;  %4067 = vrot.lane.b32.xlu1 %v4041_v55, %s4692_s10 }
  0xf2   :  { %4022 = vrot.lane.b32.xlu0 %v4016_v47, %s4691_s9 }
  0xf9   :  { %4032 = vrot.lane.b32.xlu2 %v4016_v47, %s4692_s10  ;;  %4082 = vrot.lane.b32.xlu1 %v4081_v58, %s4688_s6 }
  0xfa   :  { %4027 = vrot.lane.b32.xlu0 %v4016_v47, %s4687_s2 }
 0x101   :  { %4057 = vrot.lane.b32.xlu2 %v4041_v55, %s4691_s9  ;;  %4092 = vrot.lane.b32.xlu1 %v4081_v58, %s4691_s9 }
 0x102   :  { %717 = vrot.lane.b32.xlu0 %v4808_v63, %s4685_s30 }
 0x103   :  { %v3908_v1 = vpop.permute.xlu2 %3907 }
 0x104   :  { %v3910_v27 = vunpack.i.h.bf16 %v3908_v1  ;;  %v3909_v28 = vunpack.i.l.bf16 %v3908_v1 }
 0x106   :  { %v389_v36 = vpack.c.bf16 %v3909_v28, %v3909_v28  ;;  %v390_v38 = vpack.c.bf16 %v3910_v27, %v3910_v27 }
 0x108   :  { %v903_v44 = vunpack.c.l.b16 %v389_v36  ;;  %v904_v47 = vunpack.c.l.b16 %v390_v38 }
 0x109   :  { %4072 = vrot.lane.b32.xlu2 %v4041_v55, %s4693_s11  ;;  %4102 = vrot.lane.b32.xlu1 %v4081_v58, %s4692_s10 }
 0x10a   :  { %4047 = vrot.lane.b32.xlu0 %v4041_v55, %s4688_s6  ;;  %v4890_v49 = vpack.c.b16 %v904_v47, %v903_v44 }
 0x10b   :  { %v4821_v3 = vpop.permute.xlu2 %3912 }
 0x111   :  { %4087 = vrot.lane.b32.xlu2 %v4081_v58, %s4690_s8  ;;  %4112 = vrot.lane.b32.xlu1 %v4111_v4, %s4689_s7 }
 0x112   :  { %4062 = vrot.lane.b32.xlu0 %v4041_v55, %s4687_s2  ;;  %v3915_v55 = vunpack.i.h.bf16 %v4821_v3 }
 0x113   :  { %v4828_v5 = vpop.permute.xlu2 %3927 }
 0x114   :  { %v3929_v59 = vunpack.i.l.bf16 %v4828_v5 }
 0x116   :  { %v421_v16 = vpack.c.bf16 %v3929_v59, %v3929_v59 }
 0x119   :  { %4107 = vrot.lane.b32.xlu2 %v4081_v58, %s4693_s11  ;;  %4117 = vrot.lane.b32.xlu1 %v4111_v4, %s4688_s6 }
 0x11a   :  { %4077 = vrot.lane.b32.xlu0 %v4081_v58, %s4689_s7 }
 0x11b   :  { %v4835_v7 = vpop.permute.xlu1 %3922  ;;  %v4837_v8 = vpop.permute.xlu2 %3942 }
 0x11c   :  { %v3903_v9 = vpop.permute.xlu0 %3902 }
 0x11d   :  { %v3905_v20 = vunpack.i.h.bf16 %v3903_v9  ;;  %v3904_v21 = vunpack.i.l.bf16 %v3903_v9  ;;  %v768_v9 = vunpack.c.l.b16 %v379_v52 }
 0x11f   :  { %v381_v25 = vpack.c.bf16 %v3904_v21, %v3904_v21  ;;  %v382_v26 = vpack.c.bf16 %v3905_v20, %v3905_v20  ;;  %v4912_v20 = vpack.c.b16 %v769_v10, %v768_v9 }
 0x121   :  { %4122 = vrot.lane.b32.xlu2 %v4111_v4, %s4690_s8  ;;  %4132 = vrot.lane.b32.xlu1 %v4111_v4, %s4687_s2  ;;  %v795_v31 = vunpack.c.l.b16 %v381_v25  ;;  %v796_v32 = vunpack.c.l.b16 %v382_v26  ;;  %v3924_v25 = vunpack.i.l.bf16 %v4835_v7 }
 0x122   :  { %4097 = vrot.lane.b32.xlu0 %v4081_v58, %s4687_s2  ;;  %v3930_v58 = vunpack.i.h.bf16 %v4828_v5 }
 0x123   :  { %v4846_v13 = vpop.permute.xlu1 %3937  ;;  %v4848_v14 = vpop.permute.xlu2 %3952  ;;  %v4875_v35 = vpack.c.b16 %v796_v32, %v795_v31  ;;  %v413_v47 = vpack.c.bf16 %v3924_v25, %v3924_v25 }
 0x124   :  { %6476 = vst [vmem:[#allocation12_spill] sm:$0xff] %v4848_v14  ;;  %v3918_v15 = vpop.permute.xlu0 %3917  ;;  %v422_v17 = vpack.c.bf16 %v3930_v58, %v3930_v58 }
 0x125   :  { %v3920_v39 = vunpack.i.h.bf16 %v3918_v15  ;;  %v3919_v41 = vunpack.i.l.bf16 %v3918_v15 }
 0x127   :  { %v405_v50 = vpack.c.bf16 %v3919_v41, %v3919_v41  ;;  %v406_v51 = vpack.c.bf16 %v3920_v39, %v3920_v39 }
 0x129   :  { %4137 = vrot.lane.b32.xlu2 %v4111_v4, %s4692_s10  ;;  %4147 = vrot.lane.b32.xlu1 %v4852_v18, %s4689_s7  ;;  %v1119_v62 = vunpack.c.l.b16 %v405_v50  ;;  %v1120_v0 = vunpack.c.l.b16 %v406_v51 }
 0x12a   :  { %744 = vrot.lane.b32.xlu0 %v4854_v19, %s4685_s30 }
 0x12b   :  { %v4861_v22 = vpop.permute.xlu1 %3962  ;;  %v4863_v23 = vpop.permute.xlu2 %3957  ;;  %v4910_v15 = vpack.c.b16 %v1120_v0, %v1119_v62  ;;  %v1227_v62 = vunpack.c.l.b16 %v413_v47 }
 0x12c   :  { %6477 = vst [vmem:[#allocation13_spill] sm:$0xff] %v4861_v22  ;;  %v3933_v24 = vpop.permute.xlu0 %3932 }
 0x12d   :  { %6478 = vst [vmem:[#allocation14_spill] sm:$0xff] %v4863_v23  ;;  %v3935_v1 = vunpack.i.h.bf16 %v3933_v24  ;;  %v3934_v2 = vunpack.i.l.bf16 %v3933_v24  ;;  %v3925_v24 = vunpack.i.h.bf16 %v4835_v7 }
 0x12f   :  { %v429_v5 = vpack.c.bf16 %v3934_v2, %v3934_v2  ;;  %v430_v21 = vpack.c.bf16 %v3935_v1, %v3935_v1  ;;  %v414_v7 = vpack.c.bf16 %v3925_v24, %v3925_v24 }
 0x131   :  { %4152 = vrot.lane.b32.xlu2 %v4852_v18, %s4688_s6  ;;  %4157 = vrot.lane.b32.xlu1 %v4852_v18, %s4690_s8  ;;  %v1443_v38 = vunpack.c.l.b16 %v429_v5  ;;  %v1444_v39 = vunpack.c.l.b16 %v430_v21  ;;  %v1228_v0 = vunpack.c.l.b16 %v414_v7 }
 0x132   :  { %4127 = vrot.lane.b32.xlu0 %v4111_v4, %s4691_s9 }
 0x133   :  { %v690_v29 = vpop.permute.xlu2 %689  ;;  %v4870_v30 = vpop.permute.xlu1 %3987  ;;  %v4944_v25 = vpack.c.b16 %v1228_v0, %v1227_v62 }
 0x134   :  { %v4872_v33 = vpop.permute.xlu0 %3947  ;;  %v696_v34 = vsel %vm691_vm1, %v690_v29, 0 }
 0x135   :  { %6479 = vst [vmem:[#allocation15_spill] sm:$0xff] %v4872_v33  ;;  %705 = vmatpush.bf16.xpose.msrb.mxu0 %v696_v34  ;;  %v1335_v34 = vunpack.c.l.b16 %v421_v16 }
 0x139   :  { %4162 = vrot.lane.b32.xlu2 %v4852_v18, %s4691_s9  ;;  %798 = vrot.lane.b32.xlu1 %v4875_v35, %s4685_s30 }
 0x13a   :  { %4142 = vrot.lane.b32.xlu0 %v4111_v4, %s4693_s11 }
 0x13b   :  { %v4882_v42 = vpop.permute.xlu1 %4002  ;;  %v4884_v43 = vpop.permute.xlu2 %3977 }
 0x13c   :  { %v4886_v48 = vpop.permute.xlu0 %3967  ;;  %3780 = vmatmul.msk.bf16.vlgmr.msrb.gmra.mxu0 %vm691_vm1, %v4783_v53  ;;  %v3914_v53 = vunpack.i.l.bf16 %v4821_v3  ;;  %v398_v3 = vpack.c.bf16 %v3915_v55, %v3915_v55  ;;  %v4930_v55 = vpack.c.b16 %v1444_v39, %v1443_v38  ;;  %v3979_v59 = vunpack.i.l.bf16 %v4884_v43 }
 0x13d   :  { %6480 = vst [vmem:[#allocation16_spill] sm:$0xff] %v4886_v48  ;;  %v3980_v1 = vunpack.i.h.bf16 %v4884_v43 }
 0x13e   :  { %v397_v11 = vpack.c.bf16 %v3914_v53, %v3914_v53  ;;  %v1012_v27 = vunpack.c.l.b16 %v398_v3 }
 0x140   :  { %v1011_v26 = vunpack.c.l.b16 %v397_v11 }
 0x141   :  { %4167 = vrot.lane.b32.xlu2 %v4852_v18, %s4687_s2  ;;  %906 = vrot.lane.b32.xlu1 %v4890_v49, %s4685_s30 }
 0x142   :  { %4177 = vrot.lane.b32.xlu0 %v4852_v18, %s4693_s11  ;;  %v4926_v50 = vpack.c.b16 %v1012_v27, %v1011_v26  ;;  %v391_v26 = vpack.c.bf16 %v3979_v59, %v3979_v59  ;;  %v4004_v59 = vunpack.i.l.bf16 %v4882_v42 }
 0x143   :  { %v4906_v60 = vpop.permute.xlu1 %4017  ;;  %v4908_v61 = vpop.permute.xlu2 %3992 }
 0x144   :  { %6481 = vst [vmem:[#allocation17_spill] sm:$0xff] %v4906_v60  ;;  %v3973_v4 = vpop.permute.xlu0 %3972  ;;  %v3995_v11 = vunpack.i.h.bf16 %v4908_v61  ;;  %v3994_v3 = vunpack.i.l.bf16 %v4908_v61  ;;  %v3990_v61 = vunpack.i.h.bf16 %v4870_v30 }
 0x145   :  { %v3975_v28 = vunpack.i.h.bf16 %v3973_v4  ;;  %v3974_v29 = vunpack.i.l.bf16 %v3973_v4 }
 0x147   :  { %v383_v52 = vpack.c.bf16 %v3974_v29, %v3974_v29  ;;  %v384_v54 = vpack.c.bf16 %v3975_v28, %v3975_v28  ;;  %v392_v29 = vpack.c.bf16 %v3980_v1, %v3980_v1 }
 0x149   :  { %4172 = vrot.lane.b32.xlu2 %v4852_v18, %s4692_s10  ;;  %1122 = vrot.lane.b32.xlu1 %v4910_v15, %s4685_s30  ;;  %v1336_v18 = vunpack.c.l.b16 %v422_v17  ;;  %v822_v9 = vunpack.c.l.b16 %v383_v52  ;;  %v823_v10 = vunpack.c.l.b16 %v384_v54  ;;  %v930_v54 = vunpack.c.l.b16 %v391_v26 }
 0x14a   :  { %771 = vrot.lane.b32.xlu0 %v4912_v20, %s4685_s30 }
 0x14b   :  { %v4922_v31 = vpop.permute.xlu1 %4037  ;;  %v4924_v32 = vpop.permute.xlu2 %4007  ;;  %v4928_v51 = vpack.c.b16 %v1336_v18, %v1335_v34  ;;  %v4946_v27 = vpack.c.b16 %v823_v10, %v822_v9  ;;  %v415_v18 = vpack.c.bf16 %v3994_v3, %v3994_v3  ;;  %v408_v10 = vpack.c.bf16 %v3990_v61, %v3990_v61 }
 0x14c   :  { %6482 = vst [vmem:[#allocation18_spill] sm:$0xff] %v4922_v31  ;;  %v3983_v36 = vpop.permute.xlu0 %3982 }
 0x14d   :  { %v3985_v41 = vunpack.i.h.bf16 %v3983_v36  ;;  %v3984_v44 = vunpack.i.l.bf16 %v3983_v36  ;;  %v416_v36 = vpack.c.bf16 %v3995_v11, %v3995_v11  ;;  %v1254_v0 = vunpack.c.l.b16 %v415_v18 }
 0x14e   :  { %v1147_v26 = vunpack.c.l.b16 %v408_v10 }
 0x14f   :  { %v399_v53 = vpack.c.bf16 %v3984_v44, %v3984_v44  ;;  %v400_v58 = vpack.c.bf16 %v3985_v41, %v3985_v41  ;;  %v3989_v41 = vunpack.i.l.bf16 %v4870_v30  ;;  %v1255_v1 = vunpack.c.l.b16 %v416_v36 }
 0x151   :  { %1014 = vrot.lane.b32.xlu2 %v4926_v50, %s4685_s30  ;;  %1338 = vrot.lane.b32.xlu1 %v4928_v51, %s4685_s30  ;;  %v1038_v17 = vunpack.c.l.b16 %v399_v53  ;;  %v1039_v5 = vunpack.c.l.b16 %v400_v58  ;;  %v931_v53 = vunpack.c.l.b16 %v392_v29  ;;  %v4005_v58 = vunpack.i.h.bf16 %v4882_v42 }
 0x152   :  { %1446 = vrot.lane.b32.xlu0 %v4930_v55, %s4685_s30  ;;  %v407_v9 = vpack.c.bf16 %v3989_v41, %v3989_v41 }
 0x153   :  { %v4940_v2 = vpop.permute.xlu2 %4032  ;;  %v4043_v4 = vpop.permute.xlu1 %4042  ;;  %v4948_v34 = vpack.c.b16 %v1039_v5, %v1038_v17  ;;  %v4966_v3 = vpack.c.b16 %v931_v53, %v930_v54  ;;  %v431_v17 = vpack.c.bf16 %v4004_v59, %v4004_v59  ;;  %v432_v5 = vpack.c.bf16 %v4005_v58, %v4005_v58 }
 0x154   :  { %6483 = vst [vmem:[#allocation19_spill] sm:$0xff] %v4940_v2  ;;  %v3998_v16 = vpop.permute.xlu0 %3997  ;;  %v4045_v38 = vunpack.i.h.bf16 %v4043_v4  ;;  %v4044_v39 = vunpack.i.l.bf16 %v4043_v4 }
 0x155   :  { %v4000_v21 = vunpack.i.h.bf16 %v3998_v16  ;;  %v3999_v24 = vunpack.i.l.bf16 %v3998_v16  ;;  %v4968_v16 = vpack.c.b16 %v1255_v1, %v1254_v0  ;;  %v1470_v61 = vunpack.c.l.b16 %v431_v17 }
 0x156   :  { %v385_v4 = vpack.c.bf16 %v4044_v39, %v4044_v39  ;;  %v386_v30 = vpack.c.bf16 %v4045_v38, %v4045_v38  ;;  %v1471_v41 = vunpack.c.l.b16 %v432_v5 }
 0x157   :  { %v423_v43 = vpack.c.bf16 %v3999_v24, %v3999_v24  ;;  %v424_v28 = vpack.c.bf16 %v4000_v21, %v4000_v21  ;;  %v1146_v24 = vunpack.c.l.b16 %v407_v9 }
 0x158   :  { %v849_v42 = vunpack.c.l.b16 %v385_v4  ;;  %v850_v21 = vunpack.c.l.b16 %v386_v30  ;;  %v4984_v0 = vpack.c.b16 %v1471_v41, %v1470_v61 }
 0x159   :  { %1230 = vrot.lane.b32.xlu2 %v4944_v25, %s4685_s30  ;;  %825 = vrot.lane.b32.xlu1 %v4946_v27, %s4685_s30  ;;  %v1362_v7 = vunpack.c.l.b16 %v423_v43  ;;  %v1363_v52 = vunpack.c.l.b16 %v424_v28 }
 0x15a   :  { %1041 = vrot.lane.b32.xlu0 %v4948_v34, %s4685_s30 }
 0x15b   :  { %v4958_v44 = vpop.permute.xlu2 %4057  ;;  %v4053_v47 = vpop.permute.xlu1 %4052  ;;  %v4964_v11 = vpack.c.b16 %v1363_v52, %v1362_v7  ;;  %v4980_v7 = vpack.c.b16 %v850_v21, %v849_v42  ;;  %v4982_v52 = vpack.c.b16 %v1147_v26, %v1146_v24 }
 0x15c   :  { %v4962_v62 = vpop.permute.xlu0 %4012  ;;  %v4055_v43 = vunpack.i.h.bf16 %v4053_v47  ;;  %v4054_v28 = vunpack.i.l.bf16 %v4053_v47  ;;  %v4060_v41 = vunpack.i.h.bf16 %v4958_v44 }
 0x15e   :  { %v401_v54 = vpack.c.bf16 %v4054_v28, %v4054_v28  ;;  %v402_v53 = vpack.c.bf16 %v4055_v43, %v4055_v43 }
 0x160   :  { %v1065_v4 = vunpack.c.l.b16 %v401_v54  ;;  %v1066_v30 = vunpack.c.l.b16 %v402_v53  ;;  %v4059_v54 = vunpack.i.l.bf16 %v4958_v44 }
 0x161   :  { %1365 = vrot.lane.b32.xlu2 %v4964_v11, %s4685_s30  ;;  %933 = vrot.lane.b32.xlu1 %v4966_v3, %s4685_s30 }
 0x162   :  { %1257 = vrot.lane.b32.xlu0 %v4968_v16, %s4685_s30  ;;  %v4998_v5 = vpack.c.b16 %v1066_v30, %v1065_v4  ;;  %v409_v30 = vpack.c.bf16 %v4059_v54, %v4059_v54 }
 0x163   :  { %v4976_v29 = vpop.permute.xlu2 %4072  ;;  %v4068_v18 = vpop.permute.xlu1 %4067 }
 0x164   :  { %v4978_v36 = vpop.permute.xlu0 %4022  ;;  %v4070_v38 = vunpack.i.h.bf16 %v4068_v18  ;;  %v4069_v39 = vunpack.i.l.bf16 %v4068_v18  ;;  %v1173_v44 = vunpack.c.l.b16 %v409_v30  ;;  %v4074_v54 = vunpack.i.l.bf16 %v4976_v29 }
 0x165   :  { %6484 = vst [vmem:[#allocation20_spill] sm:$0xff] %v4978_v36 }
 0x166   :  { %v425_v58 = vpack.c.bf16 %v4069_v39, %v4069_v39  ;;  %v426_v59 = vpack.c.bf16 %v4070_v38, %v4070_v38 }
 0x168   :  { %v1389_v9 = vunpack.c.l.b16 %v425_v58  ;;  %v1390_v10 = vunpack.c.l.b16 %v426_v59 }
 0x169   :  { %852 = vrot.lane.b32.xlu2 %v4980_v7, %s4685_s30  ;;  %1149 = vrot.lane.b32.xlu1 %v4982_v52, %s4685_s30 }
 0x16a   :  { %1473 = vrot.lane.b32.xlu0 %v4984_v0, %s4685_s30  ;;  %v5000_v42 = vpack.c.b16 %v1390_v10, %v1389_v9  ;;  %v410_v9 = vpack.c.bf16 %v4060_v41, %v4060_v41 }
 0x16b   :  { %v4992_v47 = vpop.permute.xlu2 %4087  ;;  %v4994_v1 = vpop.permute.xlu1 %4082 }
 0x16c   :  { %6485 = vst [vmem:[#allocation21_spill] sm:$0xff] %v4992_v47  ;;  %v4996_v17 = vpop.permute.xlu0 %4027 }
 0x16d   :  { %6486 = vst [vmem:[#allocation22_spill] sm:$0xff] %v4996_v17  ;;  %v433_v17 = vpack.c.bf16 %v4074_v54, %v4074_v54 }
 0x171   :  { %1068 = vrot.lane.b32.xlu2 %v4998_v5, %s4685_s30  ;;  %1392 = vrot.lane.b32.xlu1 %v5000_v42, %s4685_s30 }
 0x173   :  { %v5006_v21 = vpop.permute.xlu2 %4107  ;;  %v5008_v24 = vpop.permute.xlu1 %4092 }
 0x174   :  { %6487 = vst [vmem:[#allocation23_spill] sm:$0xff] %v5006_v21  ;;  %v718_v26 = vpop.permute.xlu0 %717 }
 0x175   :  { %6488 = vst [vmem:[#allocation24_spill] sm:$0xff] %v5008_v24  ;;  %v723_v43 = vsel %vm691_vm1, %v718_v26, 0 }
 0x176   :  { %732 = vmatpush.bf16.xpose.msrb.mxu1 %v723_v43 }
 0x17b   :  { %v5011_v28 = vpop.permute.xlu1 %4102  ;;  %v4123_v18 = vpop.permute.xlu2 %4122 }
 0x17c   :  { %6489 = vst [vmem:[#allocation25_spill] sm:$0xff] %v5011_v28  ;;  %v4048_v38 = vpop.permute.xlu0 %4047 }
 0x17d   :  { %v4050_v39 = vunpack.i.h.bf16 %v4048_v38  ;;  %v4049_v61 = vunpack.i.l.bf16 %v4048_v38  ;;  %3781 = vmatmul.msk.bf16.vlgmr.msrb.gmra.mxu1 %vm691_vm1, %v4808_v63 }
 0x17f   :  { %v393_v53 = vpack.c.bf16 %v4049_v61, %v4049_v61  ;;  %v394_v58 = vpack.c.bf16 %v4050_v39, %v4050_v39  ;;  %v1174_v61 = vunpack.c.l.b16 %v410_v9  ;;  %v4075_v39 = vunpack.i.h.bf16 %v4976_v29 }
 0x181   :  { %v957_v59 = vunpack.c.l.b16 %v393_v53  ;;  %v958_v4 = vunpack.c.l.b16 %v394_v58  ;;  %v434_v30 = vpack.c.bf16 %v4075_v39, %v4075_v39 }
 0x183   :  { %v5017_v10 = vpop.permute.xlu2 %4137  ;;  %v4113_v26 = vpop.permute.xlu1 %4112  ;;  %v5019_v43 = vpack.c.b16 %v958_v4, %v957_v59 }
 0x184   :  { %v4063_v31 = vpop.permute.xlu0 %4062  ;;  %v4115_v2 = vunpack.i.h.bf16 %v4113_v26  ;;  %v4114_v63 = vunpack.i.l.bf16 %v4113_v26  ;;  %v5029_v26 = vpack.c.b16 %v1174_v61, %v1173_v44  ;;  %v1497_v44 = vunpack.c.l.b16 %v433_v17 }
 0x185   :  { %v4065_v38 = vunpack.i.h.bf16 %v4063_v31  ;;  %v4064_v48 = vunpack.i.l.bf16 %v4063_v31  ;;  %960 = vrot.lane.b32.xlu0 %v5019_v43, %s4685_s30  ;;  %v1498_v61 = vunpack.c.l.b16 %v434_v30 }
 0x186   :  { %v387_v59 = vpack.c.bf16 %v4114_v63, %v4114_v63  ;;  %v388_v4 = vpack.c.bf16 %v4115_v2, %v4115_v2  ;;  %v4124_v63 = vunpack.i.l.bf16 %v4123_v18 }
 0x187   :  { %v417_v41 = vpack.c.bf16 %v4064_v48, %v4064_v48  ;;  %v418_v53 = vpack.c.bf16 %v4065_v38, %v4065_v38  ;;  %v5043_v24 = vpack.c.b16 %v1498_v61, %v1497_v44 }
 0x188   :  { %v876_v48 = vunpack.c.l.b16 %v387_v59  ;;  %v877_v2 = vunpack.c.l.b16 %v388_v4  ;;  %v403_v14 = vpack.c.bf16 %v4124_v63, %v4124_v63 }
 0x189   :  { %v1281_v58 = vunpack.c.l.b16 %v417_v41  ;;  %v1282_v21 = vunpack.c.l.b16 %v418_v53 }
 0x18a   :  { %v5037_v41 = vpack.c.b16 %v877_v2, %v876_v48  ;;  %v1092_v30 = vunpack.c.l.b16 %v403_v14 }
 0x18b   :  { %v5025_v22 = vpop.permute.xlu2 %4152  ;;  %v4118_v31 = vpop.permute.xlu1 %4117  ;;  %v5027_v28 = vpack.c.b16 %v1282_v21, %v1281_v58  ;;  %v4125_v21 = vunpack.i.h.bf16 %v4123_v18 }
 0x18c   :  { %v5031_v9 = vpop.permute.xlu0 %4077  ;;  %v4120_v23 = vunpack.i.h.bf16 %v4118_v31  ;;  %v4119_v36 = vunpack.i.l.bf16 %v4118_v31 }
 0x18d   :  { %1284 = vrot.lane.b32.xlu2 %v5027_v28, %s4685_s30  ;;  %1176 = vrot.lane.b32.xlu0 %v5029_v26, %s4685_s30  ;;  %v404_v59 = vpack.c.bf16 %v4125_v21, %v4125_v21 }
 0x18e   :  { %v395_v29 = vpack.c.bf16 %v4119_v36, %v4119_v36  ;;  %v396_v38 = vpack.c.bf16 %v4120_v23, %v4120_v23 }
 0x18f   :  { %v1093_v48 = vunpack.c.l.b16 %v404_v59 }
 0x190   :  { %v984_v54 = vunpack.c.l.b16 %v395_v29  ;;  %v985_v39 = vunpack.c.l.b16 %v396_v38 }
 0x191   :  { %v5059_v44 = vpack.c.b16 %v1093_v48, %v1092_v30 }
 0x192   :  { %v5039_v53 = vpack.c.b16 %v985_v39, %v984_v54 }
 0x193   :  { %v5041_v58 = vpop.permute.xlu2 %4162  ;;  %v4133_v31 = vpop.permute.xlu1 %4132 }
 0x194   :  { %6490 = vst [vmem:[#allocation26_spill] sm:$0xff] %v5041_v58  ;;  %v5045_v4 = vpop.permute.xlu0 %4097  ;;  %v4135_v23 = vunpack.i.h.bf16 %v4133_v31  ;;  %v4134_v36 = vunpack.i.l.bf16 %v4133_v31  ;;  %987 = vrot.lane.b32.xlu1 %v5039_v53, %s4685_s30 }
 0x195   :  { %6491 = vst [vmem:[#allocation27_spill] sm:$0xff] %v5045_v4  ;;  %1500 = vrot.lane.b32.xlu2 %v5043_v24, %s4685_s30  ;;  %879 = vrot.lane.b32.xlu0 %v5037_v41, %s4685_s30 }
 0x196   :  { %v419_v17 = vpack.c.bf16 %v4134_v36, %v4134_v36  ;;  %v420_v18 = vpack.c.bf16 %v4135_v23, %v4135_v23  ;;  %v4140_v36 = vunpack.i.h.bf16 %v5017_v10 }
 0x198   :  { %v1308_v2 = vunpack.c.l.b16 %v419_v17  ;;  %v1309_v29 = vunpack.c.l.b16 %v420_v18  ;;  %v4139_v17 = vunpack.i.l.bf16 %v5017_v10 }
 0x19a   :  { %v5053_v38 = vpack.c.b16 %v1309_v29, %v1308_v2 }
 0x19b   :  { %v5055_v21 = vpop.permute.xlu2 %4167  ;;  %v5057_v63 = vpop.permute.xlu1 %4147 }
 0x19c   :  { %6492 = vst [vmem:[#allocation28_spill] sm:$0xff] %v5055_v21  ;;  %v745_v61 = vpop.permute.xlu0 %744  ;;  %v428_v21 = vpack.c.bf16 %v4140_v36, %v4140_v36 }
 0x19d   :  { %v750_v54 = vsel %vm691_vm1, %v745_v61, 0  ;;  %1095 = vrot.lane.b32.xlu2 %v5059_v44, %s4685_s30  ;;  %1311 = vrot.lane.b32.xlu0 %v5053_v38, %s4685_s30 }
 0x19e   :  { %759 = vmatpush.bf16.xpose.msra.mxu2 %v750_v54  ;;  %v1417_v10 = vunpack.c.l.b16 %v428_v21 }
 0x1a3   :  { %v5066_v14 = vpop.permute.xlu2 %4172  ;;  %v5068_v39 = vpop.permute.xlu1 %4157 }
 0x1a4   :  { %6493 = vst [vmem:[#allocation29_spill] sm:$0xff] %v5066_v14  ;;  %v4128_v31 = vpop.permute.xlu0 %4127  ;;  %v427_v14 = vpack.c.bf16 %v4139_v17, %v4139_v17 }
 0x1a5   :  { %6494 = vst [vmem:[#allocation30_spill] sm:$0xff] %v5068_v39  ;;  %v4130_v59 = vunpack.i.h.bf16 %v4128_v31  ;;  %v4129_v23 = vunpack.i.l.bf16 %v4128_v31  ;;  %3782 = vmatmul.msk.bf16.vlgmr.msra.gmra.mxu2 %vm691_vm1, %v4854_v19 }
 0x1a6   :  { %v1416_v19 = vunpack.c.l.b16 %v427_v14 }
 0x1a7   :  { %v411_v18 = vpack.c.bf16 %v4129_v23, %v4129_v23  ;;  %v412_v30 = vpack.c.bf16 %v4130_v59, %v4130_v59 }
 0x1a9   :  { %v1200_v48 = vunpack.c.l.b16 %v411_v18  ;;  %v1201_v2 = vunpack.c.l.b16 %v412_v30 }
 0x1ab   :  { %v1015_v29 = vpop.permute.xlu2 %1014  ;;  %v799_v61 = vpop.permute.xlu1 %798  ;;  %v5074_v54 = vpack.c.b16 %v1201_v2, %v1200_v48  ;;  %v5079_v2 = vpack.c.b16 %v1417_v10, %v1416_v19 }
 0x1ac   :  { %v4143_v4 = vpop.permute.xlu0 %4142  ;;  %v804_v31 = vsel %vm691_vm1, %v799_v61, 0 }
 0x1ad   :  { %v4145_v58 = vunpack.i.h.bf16 %v4143_v4  ;;  %v4144_v39 = vunpack.i.l.bf16 %v4143_v4  ;;  %1203 = vrot.lane.b32.xlu1 %v5074_v54, %s4685_s30  ;;  %813 = vmatpush.bf16.xpose.msrb.mxu2 %v804_v31 }
 0x1af   :  { %v435_v59 = vpack.c.bf16 %v4144_v39, %v4144_v39  ;;  %v436_v23 = vpack.c.bf16 %v4145_v58, %v4145_v58  ;;  %v677_v58 = vlaneseq }
 0x1b1   :  { %v1524_v18 = vunpack.c.l.b16 %v435_v59  ;;  %v1525_v30 = vunpack.c.l.b16 %v436_v23  ;;  %v678_v39 = vshrl.u32 %v677_v58, 7  ;;  %v681_v10 = vand.u32 127, %v677_v58 }
 0x1b3   :  { %v1231_v47 = vpop.permute.xlu2 %1230  ;;  %v907_v48 = vpop.permute.xlu1 %906  ;;  %v5081_v36 = vpack.c.b16 %v1525_v30, %v1524_v18  ;;  %v679_v19 = vadd.s32 8, %v678_v39  ;;  %vm5114_vm4 = vcmp.le.s32.totalorder %v681_v10, %v678_v39 }
 0x1b4   :  { %v5083_v17 = vpop.permute.xlu0 %4177 }
 0x1b5   :  { %6495 = vst [vmem:[#allocation31_spill] sm:$0xff] %v5083_v17  ;;  %3784 = vmatmul.msk.bf16.vlgmr.msrb.gmra.mxu2 %vm691_vm1, %v4875_v35  ;;  %1419 = vrot.lane.b32.xlu1 %v5079_v2, %s4685_s30  ;;  %vm5094_vm2 = vcmp.le.s32.totalorder %v681_v10, %v679_v19  ;;  %v1020_v19 = vsel %vm691_vm1, %v1015_v29, 0  ;;  %v1236_v10 = vsel %vm691_vm1, %v1231_v47, 0 }
 0x1b6   :  { %1527 = vrot.lane.b32.xlu0 %v5081_v36, %s4685_s30 }
 0x1b9   :  { %v707_v4 = vpop.f32.mrf.mxu0 }
 0x1bb   :  { %v5091_v21 = vpop.permute.xlu2 %1365  ;;  %v1123_v14 = vpop.permute.xlu1 %1122 }
 0x1bc   :  { %v772_v61 = vpop.permute.xlu0 %771 }
 0x1bd   :  { %v777_v31 = vsel %vm691_vm1, %v772_v61, 0  ;;  %v912_v61 = vsel %vm691_vm1, %v907_v48, 0 }
 0x1be   :  { %786 = vmatpush.bf16.xpose.msra.mxu3 %v777_v31 }
 0x1c1   :  { %v709_v59 = vpop.f32.mrf.mxu0 }
 0x1c2   :  { %v1550_v23 = vmul.f32 0.125, %v709_v59 }
 0x1c3   :  { %v853_v18 = vpop.permute.xlu2 %852  ;;  %v1339_v30 = vpop.permute.xlu1 %1338 }
 0x1c4   :  { %v858_v17 = vsel %vm691_vm1, %v853_v18, 0  ;;  %v5101_v60 = vsel %vm5094_vm2, %v1550_v23, -3.4028235e+38  ;;  %v1447_v48 = vpop.permute.xlu0 %1446  ;;  %v1344_v47 = vsel %vm691_vm1, %v1339_v30, 0 }
 0x1c5   :  { %3783 = vmatmul.msk.bf16.vlgmr.msra.gmra.mxu3 %vm691_vm1, %v4912_v20  ;;  %867 = vmatpush.bf16.xpose.msra.mxu2 %v858_v17  ;;  %v1685_v58 = vsel %vm1681_vm3, %v5101_v60, -inf  ;;  %v1549_v20 = vmul.f32 0.125, %v707_v4 }
 0x1c6   :  { %1686 = vmax.xlane.f32.xlu2 %v1685_v58 }
 0x1c7   :  { %v5120_v29 = vsel %vm5114_vm4, %v1549_v20, -3.4028235e+38 }
 0x1c8   :  { %v1682_v18 = vsel %vm1681_vm3, %v5120_v29, -inf }
 0x1cb   :  { %v826_v31 = vpop.permute.xlu1 %825  ;;  %v1069_v4 = vpop.permute.xlu2 %1068 }
 0x1cc   :  { %3786 = vmatmul.msk.bf16.vlgmr.msra.gmra.mxu2 %vm691_vm1, %v4980_v7  ;;  %v831_v59 = vsel %vm691_vm1, %v826_v31, 0  ;;  %v1042_v23 = vpop.permute.xlu0 %1041  ;;  %v1128_v7 = vsel %vm691_vm1, %v1123_v14, 0 }
 0x1cd   :  { %921 = vmatpush.bf16.xpose.msrb.mxu2 %v912_v61  ;;  %840 = vmatpush.bf16.xpose.msrb.mxu3 %v831_v59 }
 0x1d3   :  { %v934_v39 = vpop.permute.xlu1 %933 }
 0x1d5   :  { %1029 = vmatpush.bf16.xpose.msra.mxu2 %v1020_v19  ;;  %3785 = vmatmul.msk.bf16.vlgmr.msrb.gmra.mxu3 %vm691_vm1, %v4946_v27  ;;  %v5127_v27 = vpop.permute.xlu0 %1257  ;;  %v1074_v19 = vsel %vm691_vm1, %v1069_v4, 0 }
 0x1db   :  { %v1150_v58 = vpop.permute.xlu1 %1149 }
 0x1dc   :  { %3788 = vmatmul.msk.bf16.vlgmr.msrb.gmra.mxu2 %vm691_vm1, %v4890_v49 }
 0x1dd   :  { %1137 = vmatpush.bf16.xpose.msrb.mxu2 %v1128_v7  ;;  %v5132_v61 = vpop.permute.xlu0 %1473 }
 0x1df   :  { %1683 = vmax.xlane.f32.xlu1 %v1682_v18 }
 0x1e3   :  { %v1393_v18 = vpop.permute.xlu1 %1392 }
 0x1e7   :  { %v1285_v14 = vpop.permute.xlu2 %1284 }
 0x1ec   :  { %3792 = vmatmul.msk.bf16.vlgmr.msra.gmra.mxu2 %vm691_vm1, %v4926_v50 }
 0x1ed   :  { %1245 = vmatpush.bf16.xpose.msra.mxu2 %v1236_v10 }
 0x1ef   :  { %v5136_v20 = vpop.permute.xlu2 %1500 }
 0x1f7   :  { %v961_v49 = vpop.permute.xlu0 %960 }
 0x1f8   :  { %v966_v31 = vsel %vm691_vm1, %v961_v49, 0 }
 0x1f9   :  { %975 = vmatpush.bf16.xpose.msra.mxu0 %v966_v31 }
 0x1fa   :  { %v734_v59 = vpop.f32.mrf.mxu1 }
 0x1fb   :  { %v1551_v7 = vmul.f32 0.125, %v734_v59 }
 0x1fc   :  { %3796 = vmatmul.msk.bf16.vlgmr.msrb.gmra.mxu2 %vm691_vm1, %v4910_v15 }
 0x1fd   :  { %1353 = vmatpush.bf16.xpose.msrb.mxu2 %v1344_v47  ;;  %v5143_v50 = vsel %vm5114_vm4, %v1551_v7, -3.4028235e+38 }
 0x1fe   :  { %v1688_v4 = vsel %vm1681_vm3, %v5143_v50, -inf }
 0x1ff   :  { %1689 = vmax.xlane.f32.xlu1 %v1688_v4  ;;  %v1177_v10 = vpop.permute.xlu0 %1176 }
 0x200   :  { %v1182_v49 = vsel %vm691_vm1, %v1177_v10, 0  ;;  %3790 = vmatmul.msk.bf16.vlgmr.msra.gmra.mxu0 %vm691_vm1, %v5019_v43 }
 0x201   :  { %1083 = vmatpush.bf16.xpose.msrb.mxu0 %v1074_v19  ;;  %v1096_v19 = vpop.permute.xlu2 %1095 }
 0x202   :  { %v736_v30 = vpop.f32.mrf.mxu1  ;;  %v1101_v43 = vsel %vm691_vm1, %v1096_v19, 0 }
 0x203   :  { %v1552_v31 = vmul.f32 0.125, %v736_v30  ;;  %v1452_v30 = vsel %vm691_vm1, %v1447_v48, 0  ;;  %v613_v48 = vpack.c.bf16 %v4751_v37, %v4751_v37  ;;  %v1155_v37 = vsel %vm691_vm1, %v1150_v58, 0 }
 0x205   :  { %v5152_v15 = vsel %vm5094_vm2, %v1552_v31, -3.4028235e+38  ;;  %v1047_v31 = vsel %vm691_vm1, %v1042_v23, 0  ;;  %v3939_v23 = vunpack.i.l.bf16 %v4846_v13 }
 0x206   :  { %v988_v59 = vpop.permute.xlu1 %987  ;;  %v1691_v7 = vsel %vm1681_vm3, %v5152_v15, -inf }
 0x207   :  { %v993_v47 = vsel %vm691_vm1, %v988_v59, 0  ;;  %1692 = vmax.xlane.f32.xlu2 %v1691_v7  ;;  %v880_v4 = vpop.permute.xlu0 %879  ;;  %v1290_v59 = vsel %vm691_vm1, %v1285_v14, 0 }
 0x208   :  { %v885_v10 = vsel %vm691_vm1, %v880_v4, 0  ;;  %1002 = vmatpush.bf16.xpose.msra.mxu1 %v993_v47 }
 0x209   :  { %1191 = vmatpush.bf16.xpose.msra.mxu0 %v1182_v49  ;;  %v939_v49 = vsel %vm691_vm1, %v934_v39, 0  ;;  %894 = vmatpush.bf16.xpose.msra.mxu3 %v885_v10  ;;  %v2457_v39 = vunpack.c.l.b16 %v613_v48 }
 0x20c   :  { %3800 = vmatmul.msk.bf16.vlgmr.msra.gmra.mxu2 %vm691_vm1, %v4944_v25  ;;  %v614_v25 = vpack.c.bf16 %v4756_v40, %v4756_v40  ;;  %v1398_v40 = vsel %vm691_vm1, %v1393_v18, 0 }
 0x20d   :  { %1461 = vmatpush.bf16.xpose.msra.mxu2 %v1452_v30 }
 0x20f   :  { %3791 = vmatmul.msk.bf16.vlgmr.msra.gmra.mxu1 %vm691_vm1, %v5039_v53  ;;  %v2458_v53 = vunpack.c.l.b16 %v614_v25  ;;  %v1312_v14 = vpop.permute.xlu0 %1311 }
 0x210   :  { %1110 = vmatpush.bf16.xpose.msrb.mxu1 %v1101_v43  ;;  %3787 = vmatmul.msk.bf16.vlgmr.msra.gmra.mxu3 %vm691_vm1, %v5037_v41  ;;  %v3940_v41 = vunpack.i.h.bf16 %v4846_v13  ;;  %v1317_v13 = vsel %vm691_vm1, %v1312_v14, 0 }
 0x211   :  { %948 = vmatpush.bf16.xpose.msrb.mxu3 %v939_v49  ;;  %3794 = vmatmul.msk.bf16.vlgmr.msrb.gmra.mxu0 %vm691_vm1, %v4998_v5  ;;  %v2459_v19 = vpack.c.b16 %v2458_v53, %v2457_v39  ;;  %v1263_v49 = vsel %vm691_vm1, %v5127_v27, 0 }
 0x212   :  { %1299 = vmatpush.bf16.xpose.msrb.mxu0 %v1290_v59 }
 0x219   :  { %1056 = vmatpush.bf16.xpose.msra.mxu3 %v1047_v31 }
 0x21c   :  { %3804 = vmatmul.msk.bf16.vlgmr.msrb.gmra.mxu2 %vm691_vm1, %v4928_v51  ;;  %v622_v51 = vpack.c.bf16 %v3940_v41, %v3940_v41 }
 0x21d   :  { %2471 = vmatpush.bf16.msrb.mxu2 %v2459_v19 }
 0x21e   :  { %v2570_v47 = vunpack.c.l.b16 %v622_v51 }
 0x21f   :  { %v1204_v5 = vpop.permute.xlu1 %1203  ;;  %3795 = vmatmul.msk.bf16.vlgmr.msrb.gmra.mxu1 %vm691_vm1, %v5059_v44  ;;  %v621_v44 = vpack.c.bf16 %v3939_v23, %v3939_v23  ;;  %v1371_v23 = vsel %vm691_vm1, %v5091_v21, 0  ;;  %v4079_v21 = vunpack.i.l.bf16 %v5031_v9 }
 0x220   :  { %v1209_v7 = vsel %vm691_vm1, %v1204_v5, 0  ;;  %3789 = vmatmul.msk.bf16.vlgmr.msrb.gmra.mxu3 %vm691_vm1, %v4966_v3 }
 0x221   :  { %3798 = vmatmul.msk.bf16.vlgmr.msra.gmra.mxu0 %vm691_vm1, %v5029_v26  ;;  %1164 = vmatpush.bf16.xpose.msrb.mxu3 %v1155_v37  ;;  %v2569_v58 = vunpack.c.l.b16 %v621_v44  ;;  %v620_v37 = vpack.c.bf16 %v4844_v12, %v4844_v12 }
 0x222   :  { %1407 = vmatpush.bf16.xpose.msra.mxu0 %v1398_v40  ;;  %1218 = vmatpush.bf16.xpose.msra.mxu1 %v1209_v7  ;;  %v625_v7 = vpack.c.bf16 %v4079_v21, %v4079_v21 }
 0x223   :  { %v2571_v10 = vpack.c.b16 %v2570_v47, %v2569_v58  ;;  %v2542_v58 = vunpack.c.l.b16 %v620_v37  ;;  %v4009_v37 = vunpack.i.l.bf16 %v4924_v32 }
 0x227   :  { %v1420_v26 = vpop.permute.xlu1 %1419 }
 0x228   :  { %v761_v4 = vpop.f32.mrf.mxu2  ;;  %v1425_v30 = vsel %vm691_vm1, %v1420_v26, 0  ;;  %v1528_v19 = vpop.permute.xlu0 %1527 }
 0x229   :  { %v1553_v18 = vmul.f32 0.125, %v761_v4  ;;  %v1533_v5 = vsel %vm691_vm1, %v1528_v19, 0 }
 0x22a   :  { %1326 = vmatpush.bf16.xpose.msrb.mxu1 %v1317_v13 }
 0x22b   :  { %v5191_v43 = vsel %vm5114_vm4, %v1553_v18, -3.4028235e+38  ;;  %v2625_v18 = vunpack.c.l.b16 %v625_v7 }
 0x22c   :  { %v1694_v3 = vsel %vm1681_vm3, %v5191_v43, -inf  ;;  %3808 = vmatmul.msk.bf16.vlgmr.msra.gmra.mxu2 %vm691_vm1, %v4930_v55  ;;  %v1506_v55 = vsel %vm691_vm1, %v5136_v20, 0 }
 0x22d   :  { %1695 = vmax.xlane.f32.xlu0 %v1694_v3  ;;  %2583 = vmatpush.bf16.msra.mxu2 %v2571_v10 }
 0x22f   :  { %3799 = vmatmul.msk.bf16.vlgmr.msra.gmra.mxu1 %vm691_vm1, %v5074_v54 }
 0x230   :  { %v763_v31 = vpop.f32.mrf.mxu2  ;;  %3793 = vmatmul.msk.bf16.vlgmr.msra.gmra.mxu3 %vm691_vm1, %v4948_v34  ;;  %v617_v34 = vpack.c.bf16 %v4793_v56, %v4793_v56 }
 0x231   :  { %3802 = vmatmul.msk.bf16.vlgmr.msrb.gmra.mxu0 %vm691_vm1, %v5027_v28  ;;  %v1554_v59 = vmul.f32 0.125, %v763_v31  ;;  %1272 = vmatpush.bf16.xpose.msra.mxu3 %v1263_v49  ;;  %v618_v28 = vpack.c.bf16 %v4801_v57, %v4801_v57  ;;  %v1479_v49 = vsel %vm691_vm1, %v5132_v61, 0 }
 0x232   :  { %1434 = vmatpush.bf16.xpose.msra.mxu1 %v1425_v30  ;;  %1515 = vmatpush.bf16.xpose.msrb.mxu0 %v1506_v55  ;;  %v2513_v39 = vunpack.c.l.b16 %v617_v34  ;;  %v4150_v55 = vunpack.i.h.bf16 %v5057_v63 }
 0x233   :  { %v5210_v54 = vsel %vm5094_vm2, %v1554_v59, -3.4028235e+38  ;;  %v2514_v53 = vunpack.c.l.b16 %v618_v28  ;;  %v4149_v59 = vunpack.i.l.bf16 %v5057_v63  ;;  %v615_v63 = vpack.c.bf16 %v4766_v45, %v4766_v45 }
 0x234   :  { %v1697_v27 = vsel %vm1681_vm3, %v5210_v54, -inf }
 0x235   :  { %1698 = vmax.xlane.f32.xlu2 %v1697_v27  ;;  %v2515_v56 = vpack.c.b16 %v2514_v53, %v2513_v39  ;;  %v627_v28 = vpack.c.bf16 %v4149_v59, %v4149_v59  ;;  %v616_v39 = vpack.c.bf16 %v4774_v46, %v4774_v46  ;;  %v2485_v45 = vunpack.c.l.b16 %v615_v63 }
 0x238   :  { %v815_v48 = vpop.f32.mrf.mxu2 }
 0x239   :  { %v1687_v20 = vpop.xlane.xlu2 %1686  ;;  %v1557_v34 = vmul.f32 0.125, %v815_v48 }
 0x23a   :  { %v1875_v25 = vsub.f32 %v5101_v60, %v1687_v20 }
 0x23b   :  { %v5275_v19 = vsel %vm5114_vm4, %v1557_v34, -3.4028235e+38 }
 0x23c   :  { %v1940_v41 = vmul.f32 1.442695, %v1875_v25  ;;  %v1706_v46 = vsel %vm1681_vm3, %v5275_v19, -inf }
 0x23e   :  { %4322 = vpow2.f32 %v1940_v41 }
 0x23f   :  { %3803 = vmatmul.msk.bf16.vlgmr.msrb.gmra.mxu1 %vm691_vm1, %v5053_v38  ;;  %v4080_v38 = vunpack.i.h.bf16 %v5031_v9 }
 0x240   :  { %v817_v14 = vpop.f32.mrf.mxu2  ;;  %3797 = vmatmul.msk.bf16.vlgmr.msrb.gmra.mxu3 %vm691_vm1, %v4982_v52  ;;  %1542 = vmatpush.bf16.xpose.msrb.mxu1 %v1533_v5 }
 0x241   :  { %3806 = vmatmul.msk.bf16.vlgmr.msra.gmra.mxu0 %vm691_vm1, %v5000_v42  ;;  %v1558_v57 = vmul.f32 0.125, %v817_v14  ;;  %1380 = vmatpush.bf16.xpose.msrb.mxu3 %v1371_v23  ;;  %v619_v42 = vpack.c.bf16 %v4830_v6, %v4830_v6  ;;  %v626_v40 = vpack.c.bf16 %v4080_v38, %v4080_v38  ;;  %v2653_v23 = vunpack.c.l.b16 %v627_v28 }
 0x242   :  { %2527 = vmatpush.bf16.msra.mxu0 %v2515_v56  ;;  %v2486_v14 = vunpack.c.l.b16 %v616_v39 }
 0x243   :  { %v5230_v60 = vsel %vm5094_vm2, %v1558_v57, -3.4028235e+38  ;;  %v2541_v9 = vunpack.c.l.b16 %v619_v42  ;;  %v2626_v4 = vunpack.c.l.b16 %v626_v40  ;;  %v4010_v42 = vunpack.i.h.bf16 %v4924_v32 }
 0x244   :  { %v1709_v52 = vsel %vm1681_vm3, %v5230_v60, -inf  ;;  %v5240_v51 = vpop.eup %4322  ;;  %v2487_v57 = vpack.c.b16 %v2486_v14, %v2485_v45 }
 0x245   :  { %1710 = vmax.xlane.f32.xlu1 %v1709_v52  ;;  %v2069_v6 = vsel %vm1681_vm3, %v5240_v51, 0.0  ;;  %v2543_v3 = vpack.c.b16 %v2542_v58, %v2541_v9  ;;  %v2627_v26 = vpack.c.b16 %v2626_v4, %v2625_v18 }
 0x248   :  { %v788_v13 = vpop.f32.mrf.mxu3 }
 0x249   :  { %v1555_v44 = vmul.f32 0.125, %v788_v13  ;;  %v624_v13 = vpack.c.bf16 %v4010_v42, %v4010_v42 }
 0x24b   :  { %v5244_v47 = vsel %vm5114_vm4, %v1555_v44, -3.4028235e+38  ;;  %v623_v44 = vpack.c.bf16 %v4009_v37, %v4009_v37  ;;  %v2598_v32 = vunpack.c.l.b16 %v624_v13 }
 0x24c   :  { %v1700_v12 = vsel %vm1681_vm3, %v5244_v47, -inf }
 0x24d   :  { %2070 = vadd.xlane.f32.xlu1 %v2069_v6  ;;  %1701 = vmax.xlane.f32.xlu2 %v1700_v12  ;;  %v2597_v58 = vunpack.c.l.b16 %v623_v44 }
 0x24f   :  { %v5250_v10 = vpop.f32.mrf.mxu2  ;;  %3807 = vmatmul.msk.bf16.vlgmr.msra.gmra.mxu1 %vm691_vm1, %v5079_v2  ;;  %v2599_v18 = vpack.c.b16 %v2598_v32, %v2597_v58 }
 0x250   :  { %v790_v30 = vpop.f32.mrf.mxu3  ;;  %3801 = vmatmul.msk.bf16.vlgmr.msra.gmra.mxu3 %vm691_vm1, %v4968_v16  ;;  %2555 = vmatpush.bf16.msra.mxu1 %v2543_v3  ;;  %v1561_v34 = vmul.f32 0.125, %v5250_v10 }
 0x251   :  { %3810 = vmatmul.msk.bf16.vlgmr.msrb.gmra.mxu0 %vm691_vm1, %v5043_v24  ;;  %v1556_v31 = vmul.f32 0.125, %v790_v30  ;;  %1488 = vmatpush.bf16.xpose.msra.mxu3 %v1479_v49  ;;  %v628_v24 = vpack.c.bf16 %v4150_v55, %v4150_v55 }
 0x252   :  { %2639 = vmatpush.bf16.msrb.mxu0 %v2627_v26  ;;  %v1684_v2 = vpop.xlane.xlu1 %1683 }
 0x253   :  { %v1874_v27 = vsub.f32 %v5120_v29, %v1684_v2  ;;  %v5265_v61 = vsel %vm5094_vm2, %v1556_v31, -3.4028235e+38  ;;  %v2654_v41 = vunpack.c.l.b16 %v628_v24  ;;  %v5328_v24 = vsel %vm5114_vm4, %v1561_v34, -3.4028235e+38 }
 0x254   :  { %v1703_v16 = vsel %vm1681_vm3, %v5265_v61, -inf  ;;  %v1718_v39 = vsel %vm1681_vm3, %v5328_v24, -inf }
 0x255   :  { %1704 = vmax.xlane.f32.xlu0 %v1703_v16  ;;  %v1938_v20 = vmul.f32 1.442695, %v1874_v27  ;;  %v2655_v56 = vpack.c.b16 %v2654_v41, %v2653_v23 }
 0x257   :  { %v871_v25 = vpop.f32.mrf.mxu2  ;;  %4324 = vpow2.f32 %v1938_v20 }
 0x258   :  { %v842_v29 = vpop.f32.mrf.mxu3  ;;  %v1562_v53 = vmul.f32 0.125, %v871_v25 }
 0x25a   :  { %v5279_v48 = vsel %vm5094_vm2, %v1562_v53, -3.4028235e+38 }
 0x25b   :  { %v1721_v5 = vsel %vm1681_vm3, %v5279_v48, -inf }
 0x25c   :  { %1722 = vmax.xlane.f32.xlu2 %v1721_v5 }
 0x25d   :  { %1707 = vmax.xlane.f32.xlu0 %v1706_v46  ;;  %v5289_v21 = vpop.eup %4324 }
 0x25f   :  { %3811 = vmatmul.msk.bf16.vlgmr.msrb.gmra.mxu1 %vm691_vm1, %v5081_v36  ;;  %v2066_v36 = vsel %vm1681_vm3, %v5289_v21, 0.0  ;;  %v923_v63 = vpop.f32.mrf.mxu2 }
 0x260   :  { %v844_v38 = vpop.f32.mrf.mxu3  ;;  %3805 = vmatmul.msk.bf16.vlgmr.msrb.gmra.mxu3 %vm691_vm1, %v4964_v11  ;;  %2667 = vmatpush.bf16.msrb.mxu1 %v2655_v56  ;;  %v1559_v11 = vmul.f32 0.125, %v842_v29  ;;  %v1565_v41 = vmul.f32 0.125, %v923_v63 }
 0x261   :  { %v1560_v52 = vmul.f32 0.125, %v844_v38  ;;  %2499 = vmatpush.bf16.msrb.mxu3 %v2487_v57 }
 0x262   :  { %v5303_v9 = vsel %vm5114_vm4, %v1559_v11, -3.4028235e+38  ;;  %v5344_v45 = vsel %vm5114_vm4, %v1565_v41, -3.4028235e+38 }
 0x263   :  { %v5295_v40 = vsel %vm5094_vm2, %v1560_v52, -3.4028235e+38  ;;  %v1712_v4 = vsel %vm1681_vm3, %v5303_v9, -inf  ;;  %v1730_v57 = vsel %vm1681_vm3, %v5344_v45, -inf }
 0x264   :  { %v1715_v7 = vsel %vm1681_vm3, %v5295_v40, -inf }
 0x265   :  { %2067 = vadd.xlane.f32.xlu0 %v2066_v36  ;;  %1716 = vmax.xlane.f32.xlu1 %v1715_v7 }
 0x26d   :  { %1713 = vmax.xlane.f32.xlu0 %v1712_v4 }
 0x270   :  { %3809 = vmatmul.msk.bf16.vlgmr.msra.gmra.mxu3 %vm691_vm1, %v4984_v0 }
 0x271   :  { %2611 = vmatpush.bf16.msra.mxu3 %v2599_v18 }
 0x272   :  { %v1690_v6 = vpop.xlane.xlu1 %1689 }
 0x273   :  { %v1876_v12 = vsub.f32 %v5143_v50, %v1690_v6 }
 0x275   :  { %v1942_v3 = vmul.f32 1.442695, %v1876_v12 }
 0x277   :  { %4326 = vpow2.f32 %v1942_v3 }
 0x27a   :  { %v1693_v26 = vpop.xlane.xlu2 %1692 }
 0x27b   :  { %v1877_v49 = vsub.f32 %v5152_v15, %v1693_v26 }
 0x27d   :  { %v5311_v30 = vpop.eup %4326  ;;  %v1944_v31 = vmul.f32 1.442695, %v1877_v49  ;;  %v977_v55 = vpop.f32.mrf.mxu0 }
 0x27e   :  { %v2072_v59 = vsel %vm1681_vm3, %v5311_v30, 0.0  ;;  %v1569_v2 = vmul.f32 0.125, %v977_v55 }
 0x27f   :  { %4328 = vpow2.f32 %v1944_v31  ;;  %2073 = vadd.xlane.f32.xlu0 %v2072_v59 }
 0x280   :  { %v5317_v0 = vsel %vm5114_vm4, %v1569_v2, -3.4028235e+38 }
 0x281   :  { %v1742_v16 = vsel %vm1681_vm3, %v5317_v0, -inf }
 0x285   :  { %v5319_v50 = vpop.eup %4328  ;;  %v979_v27 = vpop.f32.mrf.mxu0 }
 0x286   :  { %v2075_v15 = vsel %vm1681_vm3, %v5319_v50, 0.0  ;;  %v1570_v29 = vmul.f32 0.125, %v979_v27 }
 0x287   :  { %2076 = vadd.xlane.f32.xlu1 %v2075_v15  ;;  %1743 = vmax.xlane.f32.xlu0 %v1742_v16  ;;  %v925_v15 = vpop.f32.mrf.mxu2 }
 0x288   :  { %v5340_v23 = vsel %vm5094_vm2, %v1570_v29, -3.4028235e+38  ;;  %v1566_v63 = vmul.f32 0.125, %v925_v15 }
 0x289   :  { %v1745_v46 = vsel %vm1681_vm3, %v5340_v23, -inf }
 0x28a   :  { %v5398_v41 = vsel %vm5094_vm2, %v1566_v63, -3.4028235e+38 }
 0x28c   :  { %v1004_v28 = vpop.f32.mrf.mxu1 }
 0x28d   :  { %v1571_v20 = vmul.f32 0.125, %v1004_v28 }
 0x28e   :  { %v1085_v25 = vpop.f32.mrf.mxu0 }
 0x28f   :  { %1719 = vmax.xlane.f32.xlu1 %v1718_v39  ;;  %v5334_v53 = vsel %vm5114_vm4, %v1571_v20, -3.4028235e+38  ;;  %v1577_v56 = vmul.f32 0.125, %v1085_v25 }
 0x290   :  { %v1748_v10 = vsel %vm1681_vm3, %v5334_v53, -inf }
 0x291   :  { %1749 = vmax.xlane.f32.xlu2 %v1748_v10  ;;  %v5352_v52 = vsel %vm5114_vm4, %v1577_v56, -3.4028235e+38  ;;  %v1733_v56 = vsel %vm1681_vm3, %v5398_v41, -inf }
 0x292   :  { %v1766_v7 = vsel %vm1681_vm3, %v5352_v52, -inf }
 0x293   :  { %v896_v5 = vpop.f32.mrf.mxu3 }
 0x294   :  { %v1006_v42 = vpop.f32.mrf.mxu1  ;;  %v1563_v11 = vmul.f32 0.125, %v896_v5  ;;  %v1031_v5 = vpop.f32.mrf.mxu2 }
 0x295   :  { %v1572_v27 = vmul.f32 0.125, %v1006_v42 }
 0x296   :  { %v1087_v14 = vpop.f32.mrf.mxu0  ;;  %v5365_v18 = vsel %vm5114_vm4, %v1563_v11, -3.4028235e+38 }
 0x297   :  { %1746 = vmax.xlane.f32.xlu1 %v1745_v46  ;;  %v1578_v38 = vmul.f32 0.125, %v1087_v14  ;;  %v1724_v12 = vsel %vm1681_vm3, %v5365_v18, -inf  ;;  %v5384_v34 = vsel %vm5094_vm2, %v1572_v27, -3.4028235e+38 }
 0x298   :  { %v1751_v25 = vsel %vm1681_vm3, %v5384_v34, -inf }
 0x299   :  { %1731 = vmax.xlane.f32.xlu2 %v1730_v57  ;;  %v5356_v37 = vsel %vm5094_vm2, %v1578_v38, -3.4028235e+38  ;;  %v1573_v57 = vmul.f32 0.125, %v1031_v5 }
 0x29a   :  { %v1769_v44 = vsel %vm1681_vm3, %v5356_v37, -inf }
 0x29b   :  { %v898_v36 = vpop.f32.mrf.mxu3 }
 0x29c   :  { %v1564_v32 = vmul.f32 0.125, %v898_v36  ;;  %v1112_v3 = vpop.f32.mrf.mxu1 }
 0x29d   :  { %v1579_v39 = vmul.f32 0.125, %v1112_v3 }
 0x29e   :  { %v5369_v6 = vsel %vm5094_vm2, %v1564_v32, -3.4028235e+38 }
 0x29f   :  { %1767 = vmax.xlane.f32.xlu1 %v1766_v7  ;;  %v5394_v10 = vsel %vm5114_vm4, %v1579_v39, -3.4028235e+38 }
 0x2a0   :  { %v1696_v13 = vpop.xlane.xlu0 %1695  ;;  %v1772_v46 = vsel %vm1681_vm3, %v5394_v10, -inf }
 0x2a1   :  { %v1878_v58 = vsub.f32 %v5191_v43, %v1696_v13  ;;  %1770 = vmax.xlane.f32.xlu2 %v1769_v44  ;;  %v1727_v43 = vsel %vm1681_vm3, %v5369_v6, -inf  ;;  %v5411_v13 = vsel %vm5114_vm4, %v1573_v57, -3.4028235e+38 }
 0x2a3   :  { %v1946_v4 = vmul.f32 1.442695, %v1878_v58  ;;  %v950_v59 = vpop.f32.mrf.mxu3  ;;  %v1033_v58 = vpop.f32.mrf.mxu2 }
 0x2a4   :  { %v5380_v16 = vpop.f32.mrf.mxu1  ;;  %v1567_v63 = vmul.f32 0.125, %v950_v59 }
 0x2a5   :  { %4330 = vpow2.f32 %v1946_v4  ;;  %v1754_v4 = vsel %vm1681_vm3, %v5411_v13, -inf }
 0x2a7   :  { %1725 = vmax.xlane.f32.xlu1 %v1724_v12 }
 0x2a8   :  { %v1699_v26 = vpop.xlane.xlu2 %1698 }
 0x2a9   :  { %v1879_v49 = vsub.f32 %v5210_v54, %v1699_v26  ;;  %1728 = vmax.xlane.f32.xlu2 %v1727_v43  ;;  %v1193_v54 = vpop.f32.mrf.mxu0 }
 0x2aa   :  { %v1585_v38 = vmul.f32 0.125, %v1193_v54 }
 0x2ab   :  { %v5376_v31 = vpop.eup %4330  ;;  %v1948_v55 = vmul.f32 1.442695, %v1879_v49  ;;  %v952_v29 = vpop.f32.mrf.mxu3 }
 0x2ac   :  { %v2078_v2 = vsel %vm1681_vm3, %v5376_v31, 0.0  ;;  %v5400_v14 = vpop.f32.mrf.mxu1  ;;  %v5415_v44 = vsel %vm5114_vm4, %v1585_v38, -3.4028235e+38  ;;  %v5446_v38 = vsel %vm5114_vm4, %v1567_v63, -3.4028235e+38 }
 0x2ad   :  { %4332 = vpow2.f32 %v1948_v55  ;;  %2079 = vadd.xlane.f32.xlu0 %v2078_v2  ;;  %v1790_v12 = vsel %vm1681_vm3, %v5415_v44, -inf }
 0x2b1   :  { %v1195_v42 = vpop.f32.mrf.mxu0 }
 0x2b2   :  { %v1586_v3 = vmul.f32 0.125, %v1195_v42 }
 0x2b3   :  { %v5386_v28 = vpop.eup %4332  ;;  %v5406_v36 = vpop.f32.mrf.mxu3 }
 0x2b4   :  { %v2081_v20 = vsel %vm1681_vm3, %v5386_v28, 0.0  ;;  %v1222_v26 = vpop.f32.mrf.mxu1  ;;  %v5426_v2 = vsel %vm5094_vm2, %v1586_v3, -3.4028235e+38  ;;  %v1580_v3 = vmul.f32 0.125, %v5380_v16 }
 0x2b5   :  { %2082 = vadd.xlane.f32.xlu1 %v2081_v20  ;;  %1752 = vmax.xlane.f32.xlu0 %v1751_v25  ;;  %6500 = vst [vmem:[#allocation32_spill] sm:$0xff] %v5426_v2  ;;  %v1793_v20 = vsel %vm1681_vm3, %v5426_v2, -inf }
 0x2b9   :  { %v1301_v43 = vpop.f32.mrf.mxu0 }
 0x2ba   :  { %v1593_v39 = vmul.f32 0.125, %v1301_v43  ;;  %v1568_v43 = vmul.f32 0.125, %v952_v29  ;;  %v3945_v29 = vunpack.i.h.bf16 %v4837_v8 }
 0x2bb   :  { %v5428_v27 = vpop.f32.mrf.mxu3 }
 0x2bc   :  { %v5436_v5 = vpop.f32.mrf.mxu1  ;;  %v5442_v57 = vsel %vm5114_vm4, %v1593_v39, -3.4028235e+38  ;;  %v5473_v16 = vsel %vm5094_vm2, %v1568_v43, -3.4028235e+38  ;;  %v3944_v39 = vunpack.i.l.bf16 %v4837_v8  ;;  %v1588_v43 = vmul.f32 0.125, %v1222_v26 }
 0x2bd   :  { %1773 = vmax.xlane.f32.xlu1 %v1772_v46  ;;  %1734 = vmax.xlane.f32.xlu0 %v1733_v56  ;;  %6501 = vst [vmem:[#allocation33_spill] sm:$0xff] %v5442_v57  ;;  %v630_v33 = vpack.c.bf16 %v3945_v29, %v3945_v29 }
 0x2be   :  { %v5499_v26 = vsel %vm5094_vm2, %v1588_v43, -3.4028235e+38  ;;  %v1576_v43 = vmul.f32 0.125, %v5428_v27 }
 0x2bf   :  { %6505 = vst [vmem:[#allocation37_spill] sm:$0xff] %v5499_v26  ;;  %v2682_v29 = vunpack.c.l.b16 %v630_v33 }
 0x2c0   :  { %v1702_v7 = vpop.xlane.xlu2 %1701  ;;  %v5522_v27 = vsel %vm5094_vm2, %v1576_v43, -3.4028235e+38 }
 0x2c1   :  { %v1880_v11 = vsub.f32 %v5244_v47, %v1702_v7  ;;  %v5421_v47 = vpop.xlane.xlu1 %1710  ;;  %v5448_v42 = vpop.f32.mrf.mxu0 }
 0x2c3   :  { %v1950_v32 = vmul.f32 1.442695, %v1880_v11  ;;  %v5452_v7 = vpop.f32.mrf.mxu3  ;;  %v1814_v11 = vsel %vm1681_vm3, %v5442_v57, -inf  ;;  %v629_v57 = vpack.c.bf16 %v3944_v39, %v3944_v39 }
 0x2c4   :  { %v1330_v63 = vpop.f32.mrf.mxu1 }
 0x2c5   :  { %4334 = vpow2.f32 %v1950_v32  ;;  %1755 = vmax.xlane.f32.xlu1 %v1754_v4  ;;  %1791 = vmax.xlane.f32.xlu0 %v1790_v12  ;;  %v1736_v32 = vsel %vm1681_vm3, %v5446_v38, -inf  ;;  %v2681_v39 = vunpack.c.l.b16 %v629_v57 }
 0x2c8   :  { %v1705_v49 = vpop.xlane.xlu0 %1704 }
 0x2c9   :  { %v1881_v55 = vsub.f32 %v5265_v61, %v1705_v49  ;;  %v1139_v61 = vpop.f32.mrf.mxu2  ;;  %v2071_v46 = vpop.xlane.xlu1 %2070 }
 0x2ca   :  { %v1581_v12 = vmul.f32 0.125, %v1139_v61  ;;  %v5477_v61 = vpop.f32.mrf.mxu0 }
 0x2cb   :  { %v5430_v15 = vpop.eup %4334  ;;  %v1952_v54 = vmul.f32 1.442695, %v1881_v55 }
 0x2cc   :  { %v2084_v25 = vsel %vm1681_vm3, %v5430_v15, 0.0 }
 0x2cd   :  { %4336 = vpow2.f32 %v1952_v54  ;;  %1794 = vmax.xlane.f32.xlu1 %v1793_v20  ;;  %2085 = vadd.xlane.f32.xlu2 %v2084_v25  ;;  %v5465_v20 = vsel %vm5114_vm4, %v1581_v12, -3.4028235e+38  ;;  %v5469_v25 = vsel %vm5094_vm2, %v1580_v3, -3.4028235e+38  ;;  %v1596_v12 = vmul.f32 0.125, %v1330_v63 }
 0x2ce   :  { %4338 = vrcp.f32 %v2071_v46  ;;  %6502 = vst [vmem:[#allocation34_spill] sm:$0xff] %v5465_v20  ;;  %v1739_v3 = vsel %vm1681_vm3, %v5473_v16, -inf }
 0x2d0   :  { %v5438_v56 = vpop.xlane.xlu0 %1707 }
 0x2d1   :  { %v5461_v49 = vpop.f32.mrf.mxu2 }
 0x2d2   :  { %v1411_v33 = vpop.f32.mrf.mxu0 }
 0x2d3   :  { %v5450_v59 = vpop.eup %4336 }
 0x2d4   :  { %v2087_v4 = vsel %vm1681_vm3, %v5450_v59, 0.0  ;;  %v4339_v54 = vpop.eup %4338 }
 0x2d5   :  { %1815 = vmax.xlane.f32.xlu1 %v1814_v11  ;;  %1737 = vmax.xlane.f32.xlu2 %v1736_v32  ;;  %v2323_v46 = vmul.f32 %v4339_v54, %v5240_v51  ;;  %v1778_v11 = vsel %vm1681_vm3, %v5465_v20, -inf  ;;  %v1775_v32 = vsel %vm1681_vm3, %v5469_v25, -inf }
 0x2d6   :  { %2088 = vadd.xlane.f32.xlu0 %v2087_v4  ;;  %v1574_v4 = vmul.f32 0.125, %v1033_v58  ;;  %v5493_v58 = vsel %vm5094_vm2, %v1596_v12, -3.4028235e+38  ;;  %v1587_v12 = vmul.f32 0.125, %v5400_v14 }
 0x2d7   :  { %v2387_v51 = vpack.c.bf16 %v2323_v46, %v2323_v46  ;;  %6504 = vst [vmem:[#allocation36_spill] sm:$0xff] %v5493_v58 }
 0x2d8   :  { %v2068_v55 = vpop.xlane.xlu0 %2067  ;;  %v5489_v20 = vsel %vm5094_vm2, %v1574_v4, -3.4028235e+38  ;;  %v1823_v4 = vsel %vm1681_vm3, %v5493_v58, -inf  ;;  %v5536_v43 = vpop.xlane.xlu1 %1716 }
 0x2d9   :  { %4340 = vrcp.f32 %v2068_v55  ;;  %v1168_v55 = vpop.f32.mrf.mxu3  ;;  %6503 = vst [vmem:[#allocation35_spill] sm:$0xff] %v5489_v20  ;;  %v5495_v63 = vpop.f32.mrf.mxu2  ;;  %v2453_v46 = vunpack.c.l.b16 %v2387_v51  ;;  %v2683_v51 = vpack.c.b16 %v2682_v29, %v2681_v39 }
 0x2dd   :  { %1779 = vmax.xlane.f32.xlu1 %v1778_v11  ;;  %1776 = vmax.xlane.f32.xlu2 %v1775_v32 }
 0x2de   :  { %1740 = vmax.xlane.f32.xlu0 %v1739_v3  ;;  %v1584_v3 = vmul.f32 0.125, %v1168_v55  ;;  %v1436_v55 = vpop.f32.mrf.mxu1 }
 0x2df   :  { %v4341_v8 = vpop.eup %4340 }
 0x2e0   :  { %v2322_v54 = vmul.f32 %v4341_v8, %v5289_v21  ;;  %v1757_v21 = vsel %vm1681_vm3, %v5489_v20, -inf  ;;  %v1799_v8 = vsel %vm1681_vm3, %v5499_v26, -inf  ;;  %v5516_v14 = vsel %vm5094_vm2, %v1584_v3, -3.4028235e+38 }
 0x2e1   :  { %6507 = vst [vmem:[#allocation39_spill] sm:$0xff] %v5516_v14  ;;  %v5524_v29 = vpop.f32.mrf.mxu2  ;;  %v1595_v3 = vmul.f32 0.125, %v5436_v5 }
 0x2e2   :  { %v2386_v11 = vpack.c.bf16 %v2322_v54, %v2322_v54  ;;  %v1274_v54 = vpop.f32.mrf.mxu3 }
 0x2e4   :  { %v2452_v32 = vunpack.c.l.b16 %v2386_v11  ;;  %v5512_v11 = vsel %vm5114_vm4, %v1587_v12, -3.4028235e+38  ;;  %v1763_v12 = vsel %vm1681_vm3, %v5522_v27, -inf }
 0x2e5   :  { %1758 = vmax.xlane.f32.xlu2 %v1757_v21  ;;  %1824 = vmax.xlane.f32.xlu1 %v1823_v4  ;;  %6506 = vst [vmem:[#allocation38_spill] sm:$0xff] %v5512_v11  ;;  %v5518_v21 = vpop.xlane.xlu0 %1713  ;;  %v1796_v39 = vsel %vm1681_vm3, %v5512_v11, -inf  ;;  %v1603_v4 = vmul.f32 0.125, %v1436_v55 }
 0x2e6   :  { %v2454_v57 = vpack.c.b16 %v2453_v46, %v2452_v32  ;;  %1800 = vmax.xlane.f32.xlu0 %v1799_v8  ;;  %v1787_v46 = vsel %vm1681_vm3, %v5516_v14, -inf  ;;  %v1575_v32 = vmul.f32 0.125, %v5406_v36  ;;  %v5534_v8 = vpop.f32.mrf.mxu0 }
 0x2e7   :  { %v5544_v36 = vsel %vm5114_vm4, %v1603_v4, -3.4028235e+38 }
 0x2e8   :  { %3812 = vmatmul.msk.bf16.vlgmr.msrb.gmra.mxu2 %vm1681_vm3, %v2454_v57  ;;  %v5540_v57 = vsel %vm5114_vm4, %v1575_v32, -3.4028235e+38  ;;  %6509 = vst [vmem:[#allocation41_spill] sm:$0xff] %v5544_v36  ;;  %v1594_v32 = vmul.f32 0.125, %v5448_v42 }
 0x2e9   :  { %2695 = vmatpush.bf16.msrb.mxu2 %v2683_v51  ;;  %6508 = vst [vmem:[#allocation40_spill] sm:$0xff] %v5540_v57  ;;  %v1760_v5 = vsel %vm1681_vm3, %v5540_v57, -inf  ;;  %v5559_v58 = vpop.f32.mrf.mxu2 }
 0x2ea   :  { %v5546_v51 = vpop.f32.mrf.mxu3  ;;  %v5564_v14 = vsel %vm5094_vm2, %v1594_v32, -3.4028235e+38 }
 0x2eb   :  { %6511 = vst [vmem:[#allocation43_spill] sm:$0xff] %v5564_v14  ;;  %v1817_v32 = vsel %vm1681_vm3, %v5564_v14, -inf }
 0x2ed   :  { %1797 = vmax.xlane.f32.xlu2 %v1796_v39  ;;  %1788 = vmax.xlane.f32.xlu1 %v1787_v46  ;;  %v5550_v39 = vsel %vm5114_vm4, %v1595_v3, -3.4028235e+38  ;;  %v1844_v46 = vsel %vm1681_vm3, %v5544_v36, -inf  ;;  %v1583_v3 = vmul.f32 0.125, %v5452_v7 }
 0x2ee   :  { %1764 = vmax.xlane.f32.xlu0 %v1763_v12  ;;  %6510 = vst [vmem:[#allocation42_spill] sm:$0xff] %v5550_v39  ;;  %v1591_v12 = vmul.f32 0.125, %v1274_v54  ;;  %v1820_v4 = vsel %vm1681_vm3, %v5550_v39, -inf  ;;  %v1519_v42 = vpop.f32.mrf.mxu0  ;;  %v1582_v39 = vmul.f32 0.125, %v5461_v49 }
 0x2ef   :  { %v1610_v11 = vmul.f32 0.125, %v1519_v42 }
 0x2f0   :  { %v5568_v36 = vsel %vm5114_vm4, %v1591_v12, -3.4028235e+38  ;;  %v4014_v12 = vunpack.i.l.bf16 %v4962_v62 }
 0x2f1   :  { %6512 = vst [vmem:[#allocation44_spill] sm:$0xff] %v5568_v36  ;;  %v1357_v57 = vpop.f32.mrf.mxu2 }
 0x2f2   :  { %v2074_v55 = vpop.xlane.xlu0 %2073  ;;  %v5575_v7 = vpop.f32.mrf.mxu3  ;;  %v631_v2 = vpack.c.bf16 %v4014_v12, %v4014_v12 }
 0x2f3   :  { %4342 = vrcp.f32 %v2074_v55  ;;  %v5572_v55 = vsel %vm5114_vm4, %v1583_v3, -3.4028235e+38 }
 0x2f4   :  { %v1784_v3 = vsel %vm1681_vm3, %v5572_v55, -inf }
 0x2f5   :  { %1761 = vmax.xlane.f32.xlu2 %v1760_v5  ;;  %1845 = vmax.xlane.f32.xlu1 %v1844_v46  ;;  %v4015_v46 = vunpack.i.h.bf16 %v4962_v62  ;;  %v5592_v62 = vsel %vm5094_vm2, %v1582_v39, -3.4028235e+38  ;;  %v1598_v39 = vmul.f32 0.125, %v1357_v57 }
 0x2f6   :  { %1821 = vmax.xlane.f32.xlu0 %v1820_v4  ;;  %v1808_v4 = vsel %vm1681_vm3, %v5568_v36, -inf  ;;  %v5588_v36 = vsel %vm5094_vm2, %v1610_v11, -3.4028235e+38 }
 0x2f7   :  { %v632_v20 = vpack.c.bf16 %v4015_v46, %v4015_v46  ;;  %6513 = vst [vmem:[#allocation45_spill] sm:$0xff] %v5588_v36  ;;  %v1781_v46 = vsel %vm1681_vm3, %v5592_v62, -inf  ;;  %v1865_v11 = vsel %vm1681_vm3, %v5588_v36, -inf }
 0x2f9   :  { %v4343_v5 = vpop.eup %4342  ;;  %v1463_v57 = vpop.f32.mrf.mxu2 }
 0x2fa   :  { %v2077_v54 = vpop.xlane.xlu1 %2076  ;;  %v2324_v26 = vmul.f32 %v4343_v5, %v5311_v30  ;;  %v5609_v12 = vpop.f32.mrf.mxu3 }
 0x2fb   :  { %4344 = vrcp.f32 %v2077_v54  ;;  %v1602_v54 = vmul.f32 0.125, %v1411_v33  ;;  %v2710_v33 = vunpack.c.l.b16 %v632_v20 }
 0x2fc   :  { %v2388_v49 = vpack.c.bf16 %v2324_v26, %v2324_v26  ;;  %v1601_v26 = vmul.f32 0.125, %v5477_v61 }
 0x2fd   :  { %1818 = vmax.xlane.f32.xlu2 %v1817_v32  ;;  %1809 = vmax.xlane.f32.xlu1 %v1808_v4  ;;  %v5599_v30 = vsel %vm5094_vm2, %v1602_v54, -3.4028235e+38  ;;  %v2709_v4 = vunpack.c.l.b16 %v631_v2  ;;  %v5613_v2 = vsel %vm5094_vm2, %v1598_v39, -3.4028235e+38  ;;  %v1605_v39 = vmul.f32 0.125, %v1463_v57 }
 0x2fe   :  { %1785 = vmax.xlane.f32.xlu0 %v1784_v3  ;;  %v2480_v20 = vunpack.c.l.b16 %v2388_v49  ;;  %v5617_v61 = vsel %vm5114_vm4, %v1601_v26, -3.4028235e+38  ;;  %v5624_v49 = vpop.xlane.xlu2 %1722 }
 0x301   :  { %v4345_v14 = vpop.eup %4344 }
 0x302   :  { %v2325_v42 = vmul.f32 %v4345_v14, %v5319_v50  ;;  %v5595_v32 = vpop.xlane.xlu1 %1719  ;;  %v1841_v50 = vsel %vm1681_vm3, %v5599_v30, -inf  ;;  %v1590_v14 = vmul.f32 0.125, %v5524_v29 }
 0x304   :  { %v2389_v5 = vpack.c.bf16 %v2325_v42, %v2325_v42  ;;  %v2711_v42 = vpack.c.b16 %v2710_v33, %v2709_v4  ;;  %v5622_v29 = vsel %vm5094_vm2, %v1590_v14, -3.4028235e+38  ;;  %v1884_v33 = vsub.f32 %v5303_v9, %v5518_v21  ;;  %v5638_v21 = vpop.f32.mrf.mxu3 }
 0x305   :  { %1782 = vmax.xlane.f32.xlu2 %v1781_v46  ;;  %1866 = vmax.xlane.f32.xlu1 %v1865_v11  ;;  %v1838_v46 = vsel %vm1681_vm3, %v5617_v61, -inf  ;;  %v1829_v11 = vsel %vm1681_vm3, %v5613_v2, -inf  ;;  %v1589_v4 = vmul.f32 0.125, %v5495_v63  ;;  %v1805_v26 = vsel %vm1681_vm3, %v5622_v29, -inf }
 0x306   :  { %v2481_v3 = vunpack.c.l.b16 %v2389_v5  ;;  %1842 = vmax.xlane.f32.xlu0 %v1841_v50  ;;  %v1609_v50 = vmul.f32 0.125, %v5534_v8  ;;  %v1958_v9 = vmul.f32 1.442695, %v1884_v33  ;;  %v5642_v14 = vsel %vm5114_vm4, %v1605_v39, -3.4028235e+38 }
 0x307   :  { %v5646_v63 = vsel %vm5114_vm4, %v1589_v4, -3.4028235e+38  ;;  %v5661_v4 = vpop.xlane.xlu0 %1743 }
 0x308   :  { %v2482_v54 = vpack.c.b16 %v2481_v3, %v2480_v20  ;;  %v1438_v20 = vpop.f32.mrf.mxu1  ;;  %v5650_v3 = vsel %vm5114_vm4, %v1609_v50, -3.4028235e+38  ;;  %4346 = vpow2.f32 %v1958_v9  ;;  %v1802_v8 = vsel %vm1681_vm3, %v5646_v63, -inf }
 0x309   :  { %6514 = vst [vmem:[#allocation46_spill] sm:$0xff] %v5650_v3  ;;  %v1604_v57 = vmul.f32 0.125, %v1438_v20  ;;  %v1862_v33 = vsel %vm1681_vm3, %v5650_v3, -inf }
 0x30a   :  { %3813 = vmatmul.msk.bf16.vlgmr.msrb.gmra.mxu3 %vm1681_vm3, %v2482_v54  ;;  %v5628_v5 = vpop.xlane.xlu1 %1746  ;;  %v1750_v54 = vpop.xlane.xlu2 %1749 }
 0x30b   :  { %2723 = vmatpush.bf16.msrb.mxu3 %v2711_v42  ;;  %v1850_v42 = vsel %vm1681_vm3, %v5642_v14, -inf  ;;  %v5669_v50 = vsel %vm5094_vm2, %v1604_v57, -3.4028235e+38  ;;  %v1592_v57 = vmul.f32 0.125, %v5546_v51 }
 0x30c   :  { %6516 = vst [vmem:[#allocation48_spill] sm:$0xff] %v5669_v50  ;;  %v1492_v20 = vpop.f32.mrf.mxu3 }
 0x30d   :  { %1839 = vmax.xlane.f32.xlu2 %v1838_v46  ;;  %1830 = vmax.xlane.f32.xlu1 %v1829_v11  ;;  %v1597_v46 = vmul.f32 0.125, %v5559_v58  ;;  %v1886_v58 = vsub.f32 %v5328_v24, %v5595_v32  ;;  %v1608_v3 = vmul.f32 0.125, %v1492_v20  ;;  %v5696_v51 = vsel %vm5094_vm2, %v1592_v57, -3.4028235e+38 }
 0x30e   :  { %1806 = vmax.xlane.f32.xlu0 %v1805_v26  ;;  %v5663_v39 = vpop.eup %4346  ;;  %v1882_v26 = vsub.f32 %v5275_v19, %v5438_v56 }
 0x30f   :  { %6515 = vst [vmem:[#allocation47_spill] sm:$0xff] %v5663_v39  ;;  %v5673_v9 = vsel %vm5114_vm4, %v1597_v46, -3.4028235e+38  ;;  %v2096_v19 = vsel %vm1681_vm3, %v5663_v39, 0.0  ;;  %v1962_v36 = vmul.f32 1.442695, %v1886_v58  ;;  %v1896_v58 = vsub.f32 %v5334_v53, %v1750_v54 }
 0x310   :  { %v1954_v56 = vmul.f32 1.442695, %v1882_v26  ;;  %v1826_v24 = vsel %vm1681_vm3, %v5673_v9, -inf  ;;  %v5692_v26 = vsel %vm5094_vm2, %v1608_v3, -3.4028235e+38 }
 0x311   :  { %6517 = vst [vmem:[#allocation49_spill] sm:$0xff] %v5692_v26  ;;  %v1859_v3 = vsel %vm1681_vm3, %v5692_v26, -inf }
 0x312   :  { %v5659_v11 = vpop.xlane.xlu1 %1767  ;;  %v5684_v46 = vpop.xlane.xlu2 %1731  ;;  %4348 = vpow2.f32 %v1954_v56 }
 0x313   :  { %4350 = vpow2.f32 %v1962_v36 }
 0x315   :  { %1803 = vmax.xlane.f32.xlu2 %v1802_v8  ;;  %1851 = vmax.xlane.f32.xlu1 %v1850_v42  ;;  %v1544_v8 = vpop.f32.mrf.mxu1  ;;  %v1883_v42 = vsub.f32 %v5230_v60, %v5421_v47 }
 0x316   :  { %1863 = vmax.xlane.f32.xlu0 %v1862_v33  ;;  %v1847_v33 = vsel %vm1681_vm3, %v5669_v50, -inf  ;;  %v1611_v32 = vmul.f32 0.125, %v1544_v8  ;;  %v1811_v8 = vsel %vm1681_vm3, %v5696_v51, -inf }
 0x317   :  { %v1956_v60 = vmul.f32 1.442695, %v1883_v42 }
 0x318   :  { %v5700_v20 = vsel %vm5114_vm4, %v1611_v32, -3.4028235e+38  ;;  %v4084_v32 = vunpack.i.l.bf16 %v4994_v1 }
 0x319   :  { %6518 = vst [vmem:[#allocation50_spill] sm:$0xff] %v5700_v20  ;;  %v1868_v42 = vsel %vm1681_vm3, %v5700_v20, -inf }
 0x31a   :  { %v5688_v47 = vpop.xlane.xlu1 %1725  ;;  %v1771_v36 = vpop.xlane.xlu2 %1770 }
 0x31d   :  { %1848 = vmax.xlane.f32.xlu2 %v1847_v33  ;;  %2097 = vadd.xlane.f32.xlu1 %v2096_v19  ;;  %v5709_v33 = vpop.eup %4348  ;;  %v1982_v19 = vmul.f32 1.442695, %v1896_v58 }
 0x31e   :  { %1827 = vmax.xlane.f32.xlu0 %v1826_v24  ;;  %v5711_v56 = vpop.eup %4350  ;;  %v4085_v24 = vunpack.i.h.bf16 %v4994_v1  ;;  %v1600_v1 = vmul.f32 0.125, %v5609_v12  ;;  %v1885_v12 = vsub.f32 %v5295_v40, %v5536_v43 }
 0x31f   :  { %6519 = vst [vmem:[#allocation51_spill] sm:$0xff] %v5711_v56 }
 0x320   :  { %v2080_v50 = vpop.xlane.xlu0 %2079  ;;  %v634_v26 = vpack.c.bf16 %v4085_v24, %v4085_v24  ;;  %v1465_v24 = vpop.f32.mrf.mxu2 }
 0x321   :  { %4352 = vrcp.f32 %v2080_v50  ;;  %v1606_v43 = vmul.f32 0.125, %v1465_v24 }
 0x322   :  { %4354 = vpow2.f32 %v1956_v60  ;;  %v1903_v60 = vsub.f32 %v5356_v37, %v1771_v36 }
 0x323   :  { %v5761_v24 = vsel %vm5094_vm2, %v1606_v43, -3.4028235e+38 }
 0x325   :  { %1812 = vmax.xlane.f32.xlu2 %v1811_v8  ;;  %1860 = vmax.xlane.f32.xlu1 %v1859_v3  ;;  %v1599_v8 = vmul.f32 0.125, %v5575_v7  ;;  %v2090_v3 = vsel %vm1681_vm3, %v5709_v33, 0.0  ;;  %v1996_v7 = vmul.f32 1.442695, %v1903_v60 }
 0x326   :  { %1869 = vmax.xlane.f32.xlu0 %v1868_v42  ;;  %v2102_v42 = vsel %vm1681_vm3, %v5711_v56, 0.0 }
 0x327   :  { %v4353_v50 = vpop.eup %4352 }
 0x328   :  { %v2083_v53 = vpop.xlane.xlu1 %2082  ;;  %v5713_v54 = vpop.xlane.xlu0 %1752  ;;  %v2326_v58 = vmul.f32 %v4353_v50, %v5376_v31  ;;  %v5731_v31 = vsel %vm5114_vm4, %v1599_v8, -3.4028235e+38 }
 0x329   :  { %4356 = vrcp.f32 %v2083_v53  ;;  %v5715_v57 = vpop.eup %4354 }
 0x32a   :  { %4358 = vpow2.f32 %v1982_v19  ;;  %v2093_v53 = vsel %vm1681_vm3, %v5715_v57, 0.0  ;;  %v633_v19 = vpack.c.bf16 %v4084_v32, %v4084_v32  ;;  %v2390_v36 = vpack.c.bf16 %v2326_v58, %v2326_v58 }
 0x32b   :  { %v5742_v32 = vsel %vm5094_vm2, %v1600_v1, -3.4028235e+38  ;;  %4360 = vpow2.f32 %v1996_v7 }
 0x32c   :  { %v2737_v8 = vunpack.c.l.b16 %v633_v19  ;;  %v1835_v1 = vsel %vm1681_vm3, %v5742_v32, -inf }
 0x32d   :  { %2091 = vadd.xlane.f32.xlu2 %v2090_v3  ;;  %2103 = vadd.xlane.f32.xlu1 %v2102_v42  ;;  %v2738_v3 = vunpack.c.l.b16 %v634_v26  ;;  %v1895_v42 = vsub.f32 %v5340_v23, %v5628_v5  ;;  %v2508_v26 = vunpack.c.l.b16 %v2390_v36  ;;  %v1729_v23 = vpop.xlane.xlu2 %1728 }
 0x32e   :  { %2094 = vadd.xlane.f32.xlu0 %v2093_v53 }
 0x32f   :  { %v4357_v37 = vpop.eup %4356  ;;  %v2739_v19 = vpack.c.b16 %v2738_v3, %v2737_v8  ;;  %v1902_v3 = vsub.f32 %v5352_v52, %v5659_v11  ;;  %v1853_v8 = vsel %vm1681_vm3, %v5761_v24, -inf }
 0x330   :  { %v2327_v50 = vmul.f32 %v4357_v37, %v5386_v28  ;;  %v5734_v56 = vpop.xlane.xlu1 %1773  ;;  %v1735_v39 = vpop.xlane.xlu0 %1734  ;;  %v1832_v28 = vsel %vm1681_vm3, %v5731_v31, -inf  ;;  %v1960_v37 = vmul.f32 1.442695, %v1885_v12  ;;  %v1894_v12 = vsub.f32 %v5317_v0, %v5661_v4 }
 0x331   :  { %v5736_v20 = vpop.eup %4358  ;;  %v1891_v58 = vsub.f32 %v5398_v41, %v1735_v39  ;;  %v1607_v41 = vmul.f32 0.125, %v5638_v21  ;;  %v1994_v17 = vmul.f32 1.442695, %v1902_v3  ;;  %v4155_v3 = vunpack.i.h.bf16 %v5025_v22 }
 0x332   :  { %v2391_v60 = vpack.c.bf16 %v2327_v50, %v2327_v50  ;;  %v2132_v40 = vsel %vm1681_vm3, %v5736_v20, 0.0  ;;  %v1980_v50 = vmul.f32 1.442695, %v1895_v42  ;;  %v5757_v36 = vpop.eup %4360  ;;  %4362 = vpow2.f32 %v1960_v37 }
 0x333   :  { %v1972_v7 = vmul.f32 1.442695, %v1891_v58  ;;  %v5767_v21 = vsel %vm5114_vm4, %v1607_v41, -3.4028235e+38  ;;  %v2153_v58 = vsel %vm1681_vm3, %v5757_v36, 0.0 }
 0x334   :  { %v2509_v53 = vunpack.c.l.b16 %v2391_v60  ;;  %v1889_v60 = vsub.f32 %v5369_v6, %v1729_v23  ;;  %v1978_v0 = vmul.f32 1.442695, %v1894_v12  ;;  %v1856_v4 = vsel %vm1681_vm3, %v5767_v21, -inf }
 0x335   :  { %1833 = vmax.xlane.f32.xlu2 %v1832_v28  ;;  %2133 = vadd.xlane.f32.xlu1 %v2132_v40  ;;  %4364 = vpow2.f32 %v1972_v7 }
 0x336   :  { %v2510_v39 = vpack.c.b16 %v2509_v53, %v2508_v26  ;;  %1836 = vmax.xlane.f32.xlu0 %v1835_v1  ;;  %4366 = vpow2.f32 %v1980_v50  ;;  %v1968_v28 = vmul.f32 1.442695, %v1889_v60  ;;  %v1887_v53 = vsub.f32 %v5279_v48, %v5624_v49 }
 0x337   :  { %4368 = vpow2.f32 %v1978_v0  ;;  %v1890_v1 = vsub.f32 %v5344_v45, %v5684_v46  ;;  %v1897_v60 = vsub.f32 %v5384_v34, %v5713_v54  ;;  %v1888_v0 = vsub.f32 %v5365_v18, %v5688_v47 }
 0x338   :  { %v5754_v5 = vpop.xlane.xlu1 %1755  ;;  %3814 = vmatmul.msk.bf16.vlgmr.msra.gmra.mxu0 %vm1681_vm3, %v2510_v39  ;;  %v1792_v52 = vpop.xlane.xlu0 %1791  ;;  %4370 = vpow2.f32 %v1994_v17  ;;  %v1964_v39 = vmul.f32 1.442695, %v1887_v53 }
 0x339   :  { %2751 = vmatpush.bf16.msra.mxu0 %v2739_v19  ;;  %v5778_v11 = vpop.eup %4362  ;;  %4372 = vpow2.f32 %v1968_v28  ;;  %v1910_v43 = vsub.f32 %v5415_v44, %v1792_v52  ;;  %v1970_v45 = vmul.f32 1.442695, %v1890_v1  ;;  %v1966_v52 = vmul.f32 1.442695, %v1888_v0 }
 0x33a   :  { %v2099_v37 = vsel %vm1681_vm3, %v5778_v11, 0.0 }
 0x33b   :  { %v5782_v26 = vpop.eup %4364  ;;  %v2010_v44 = vmul.f32 1.442695, %v1910_v43 }
 0x33c   :  { %v5786_v40 = vpop.eup %4366  ;;  %v2117_v41 = vsel %vm1681_vm3, %v5782_v26, 0.0 }
 0x33d   :  { %1854 = vmax.xlane.f32.xlu2 %v1853_v8  ;;  %2154 = vadd.xlane.f32.xlu1 %v2153_v58  ;;  %v2129_v48 = vsel %vm1681_vm3, %v5786_v40, 0.0  ;;  %v5797_v49 = vpop.eup %4368  ;;  %v4154_v8 = vunpack.i.l.bf16 %v5025_v22  ;;  %v1898_v58 = vsub.f32 %v5411_v13, %v5754_v5  ;;  %v636_v22 = vpack.c.bf16 %v4155_v3, %v4155_v3 }
 0x33e   :  { %1857 = vmax.xlane.f32.xlu0 %v1856_v4  ;;  %v5799_v19 = vpop.eup %4370  ;;  %v2126_v4 = vsel %vm1681_vm3, %v5797_v49, 0.0  ;;  %v1984_v13 = vmul.f32 1.442695, %v1897_v60 }
 0x33f   :  { %v5805_v50 = vpop.eup %4372  ;;  %v2150_v34 = vsel %vm1681_vm3, %v5799_v19, 0.0  ;;  %v635_v5 = vpack.c.bf16 %v4154_v8, %v4154_v8  ;;  %v1986_v18 = vmul.f32 1.442695, %v1898_v58 }
 0x340   :  { %v5780_v6 = vpop.xlane.xlu1 %1794  ;;  %v2086_v42 = vpop.xlane.xlu2 %2085  ;;  %v2111_v17 = vsel %vm1681_vm3, %v5805_v50, 0.0 }
 0x341   :  { %4374 = vrcp.f32 %v2086_v42 }
 0x342   :  { %4376 = vpow2.f32 %v1964_v39  ;;  %v2766_v39 = vunpack.c.l.b16 %v636_v22 }
 0x345   :  { %2100 = vadd.xlane.f32.xlu2 %v2099_v37  ;;  %2118 = vadd.xlane.f32.xlu1 %v2117_v41 }
 0x346   :  { %2130 = vadd.xlane.f32.xlu0 %v2129_v48  ;;  %v2765_v48 = vunpack.c.l.b16 %v635_v5 }
 0x347   :  { %v4375_v12 = vpop.eup %4374 }
 0x348   :  { %v5801_v46 = vpop.xlane.xlu1 %1815  ;;  %v5803_v7 = vpop.xlane.xlu2 %1737  ;;  %v2328_v28 = vmul.f32 %v4375_v12, %v5430_v15 }
 0x349   :  { %v2089_v23 = vpop.xlane.xlu0 %2088  ;;  %v5822_v54 = vpop.eup %4376 }
 0x34a   :  { %4378 = vrcp.f32 %v2089_v23  ;;  %v2392_v15 = vpack.c.bf16 %v2328_v28, %v2328_v28  ;;  %v2105_v12 = vsel %vm1681_vm3, %v5822_v54, 0.0 }
 0x34b   :  { %4380 = vpow2.f32 %v2010_v44  ;;  %v1904_v44 = vsub.f32 %v5394_v10, %v5734_v56  ;;  %v1546_v10 = vpop.f32.mrf.mxu1 }
 0x34c   :  { %4382 = vpow2.f32 %v1970_v45  ;;  %v2536_v3 = vunpack.c.l.b16 %v2392_v15  ;;  %v1612_v5 = vmul.f32 0.125, %v1546_v10 }
 0x34d   :  { %2127 = vadd.xlane.f32.xlu2 %v2126_v4  ;;  %2112 = vadd.xlane.f32.xlu1 %v2111_v17  ;;  %4384 = vpow2.f32 %v1984_v13  ;;  %v1998_v56 = vmul.f32 1.442695, %v1904_v44 }
 0x34e   :  { %2151 = vadd.xlane.f32.xlu0 %v2150_v34  ;;  %4386 = vpow2.f32 %v1986_v18  ;;  %v1892_v18 = vsub.f32 %v5446_v38, %v5803_v7 }
 0x34f   :  { %4388 = vpow2.f32 %v1966_v52 }
 0x350   :  { %v4379_v47 = vpop.eup %4378  ;;  %v5824_v42 = vpop.xlane.xlu1 %1779  ;;  %4390 = vpow2.f32 %v1998_v56 }
 0x351   :  { %v1777_v53 = vpop.xlane.xlu2 %1776  ;;  %v5826_v43 = vpop.eup %4380  ;;  %v2329_v1 = vmul.f32 %v4379_v47, %v5450_v59 }
 0x352   :  { %v1741_v37 = vpop.xlane.xlu0 %1740  ;;  %v5829_v41 = vpop.eup %4382  ;;  %v1905_v23 = vsub.f32 %v5469_v25, %v1777_v53  ;;  %v2174_v59 = vsel %vm1681_vm3, %v5826_v43, 0.0  ;;  %v2767_v25 = vpack.c.b16 %v2766_v39, %v2765_v48  ;;  %v5860_v39 = vsel %vm5094_vm2, %v1612_v5, -3.4028235e+38 }
 0x353   :  { %v2393_v45 = vpack.c.bf16 %v2329_v1, %v2329_v1  ;;  %v2114_v8 = vsel %vm1681_vm3, %v5829_v41, 0.0  ;;  %v5840_v0 = vpop.eup %4384  ;;  %v1893_v47 = vsub.f32 %v5473_v16, %v1741_v37  ;;  %v1974_v1 = vmul.f32 1.442695, %v1892_v18 }
 0x354   :  { %v2000_v4 = vmul.f32 1.442695, %v1905_v23  ;;  %v5844_v34 = vpop.eup %4386  ;;  %v2135_v52 = vsel %vm1681_vm3, %v5840_v0, 0.0  ;;  %v6520_v23 = vld [vmem:[#allocation32_spill] sm:$0xff]  ;;  %v1871_v35 = vsel %vm1681_vm3, %v5860_v39, -inf }
 0x355   :  { %v2537_v60 = vunpack.c.l.b16 %v2393_v45  ;;  %2106 = vadd.xlane.f32.xlu2 %v2105_v12  ;;  %2175 = vadd.xlane.f32.xlu1 %v2174_v59  ;;  %v5847_v13 = vpop.eup %4388  ;;  %v2138_v53 = vsel %vm1681_vm3, %v5844_v34, 0.0  ;;  %v1976_v38 = vmul.f32 1.442695, %v1893_v47  ;;  %v1911_v12 = vsub.f32 %v6520_v23, %v5780_v6  ;;  %v6521_v59 = vld [vmem:[#allocation33_spill] sm:$0xff]  ;;  %v6523_v47 = vld [vmem:[#allocation35_spill] sm:$0xff] }
 0x356   :  { %2115 = vadd.xlane.f32.xlu0 %v2114_v8  ;;  %4392 = vpow2.f32 %v2000_v4  ;;  %v2108_v15 = vsel %vm1681_vm3, %v5847_v13, 0.0  ;;  %v5864_v37 = vpop.eup %4390 }
 0x357   :  { %v2538_v58 = vpack.c.b16 %v2537_v60, %v2536_v3  ;;  %4394 = vpow2.f32 %v1974_v1  ;;  %v1918_v3 = vsub.f32 %v6521_v59, %v5801_v46  ;;  %v2156_v8 = vsel %vm1681_vm3, %v5864_v37, 0.0  ;;  %v6522_v46 = vld [vmem:[#allocation40_spill] sm:$0xff] }
 0x358   :  { %v5842_v28 = vpop.xlane.xlu1 %1824  ;;  %4396 = vpow2.f32 %v1976_v38 }
 0x359   :  { %v1759_v17 = vpop.xlane.xlu2 %1758  ;;  %3815 = vmatmul.msk.bf16.vlgmr.msra.gmra.mxu1 %vm1681_vm3, %v2538_v58  ;;  %v2026_v6 = vmul.f32 1.442695, %v1918_v3 }
 0x35a   :  { %v1801_v22 = vpop.xlane.xlu0 %1800  ;;  %2779 = vmatpush.bf16.msra.mxu1 %v2767_v25 }
 0x35c   :  { %v5866_v44 = vpop.eup %4392 }
 0x35d   :  { %2136 = vadd.xlane.f32.xlu2 %v2135_v52  ;;  %2139 = vadd.xlane.f32.xlu1 %v2138_v53  ;;  %v2159_v10 = vsel %vm1681_vm3, %v5866_v44, 0.0  ;;  %v5881_v25 = vpop.eup %4394  ;;  %v1899_v52 = vsub.f32 %v6523_v47, %v1759_v17 }
 0x35e   :  { %2109 = vadd.xlane.f32.xlu0 %v2108_v15  ;;  %v5886_v18 = vpop.eup %4396  ;;  %v6524_v15 = vld [vmem:[#allocation37_spill] sm:$0xff]  ;;  %v2120_v38 = vsel %vm1681_vm3, %v5881_v25, 0.0 }
 0x35f   :  { %v1913_v1 = vsub.f32 %v6524_v15, %v1801_v22 }
 0x360   :  { %v5862_v16 = vpop.xlane.xlu1 %1788 }
 0x361   :  { %v1798_v7 = vpop.xlane.xlu2 %1797  ;;  %v2016_v17 = vmul.f32 1.442695, %v1913_v1 }
 0x362   :  { %v1765_v48 = vpop.xlane.xlu0 %1764 }
 0x363   :  { %v1901_v45 = vsub.f32 %v5522_v27, %v1765_v48  ;;  %v2012_v27 = vmul.f32 1.442695, %v1911_v12  ;;  %v1988_v12 = vmul.f32 1.442695, %v1899_v52 }
 0x365   :  { %v1992_v60 = vmul.f32 1.442695, %v1901_v45  ;;  %2157 = vadd.xlane.f32.xlu2 %v2156_v8  ;;  %1872 = vmax.xlane.f32.xlu1 %v1871_v35  ;;  %v2123_v45 = vsel %vm1681_vm3, %v5886_v18, 0.0 }
 0x366   :  { %2160 = vadd.xlane.f32.xlu0 %v2159_v10  ;;  %v6526_v10 = vld [vmem:[#allocation38_spill] sm:$0xff] }
 0x367   :  { %4398 = vpow2.f32 %v1992_v60 }
 0x368   :  { %v5879_v58 = vpop.xlane.xlu1 %1845  ;;  %4400 = vpow2.f32 %v2012_v27  ;;  %v1912_v27 = vsub.f32 %v6526_v10, %v1798_v7 }
 0x369   :  { %v1762_v56 = vpop.xlane.xlu2 %1761  ;;  %4402 = vpow2.f32 %v2026_v6 }
 0x36a   :  { %v1900_v4 = vsub.f32 %v6522_v46, %v1762_v56  ;;  %v5884_v5 = vpop.xlane.xlu0 %1821 }
 0x36c   :  { %v1990_v53 = vmul.f32 1.442695, %v1900_v4  ;;  %v2014_v4 = vmul.f32 1.442695, %v1912_v27 }
 0x36d   :  { %v5892_v48 = vpop.eup %4398  ;;  %2121 = vadd.xlane.f32.xlu2 %v2120_v38  ;;  %v6527_v38 = vld [vmem:[#allocation34_spill] sm:$0xff] }
 0x36e   :  { %4404 = vpow2.f32 %v1990_v53  ;;  %2124 = vadd.xlane.f32.xlu0 %v2123_v45  ;;  %v2147_v23 = vsel %vm1681_vm3, %v5892_v48, 0.0  ;;  %v5900_v22 = vpop.eup %4400  ;;  %v1906_v45 = vsub.f32 %v6527_v38, %v5824_v42 }
 0x36f   :  { %2148 = vadd.xlane.f32.xlu1 %v2147_v23  ;;  %v5904_v60 = vpop.eup %4402  ;;  %4406 = vpow2.f32 %v1988_v12  ;;  %v2177_v6 = vsel %vm1681_vm3, %v5900_v22, 0.0  ;;  %v6528_v12 = vld [vmem:[#allocation39_spill] sm:$0xff] }
 0x370   :  { %v5898_v59 = vpop.xlane.xlu1 %1809  ;;  %6525 = vst [vmem:[#allocation32_spill] sm:$0xff] %v5904_v60  ;;  %4408 = vpow2.f32 %v2016_v17  ;;  %v2198_v46 = vsel %vm1681_vm3, %v5904_v60, 0.0  ;;  %v1909_v17 = vsub.f32 %v6528_v12, %v5862_v16  ;;  %v2002_v27 = vmul.f32 1.442695, %v1906_v45  ;;  %v6529_v16 = vld [vmem:[#allocation43_spill] sm:$0xff] }
 0x371   :  { %v1819_v35 = vpop.xlane.xlu2 %1818  ;;  %4410 = vpow2.f32 %v2014_v4 }
 0x372   :  { %v5902_v3 = vpop.xlane.xlu0 %1785 }
 0x374   :  { %v5906_v8 = vpop.eup %4404 }
 0x375   :  { %v2144_v56 = vsel %vm1681_vm3, %v5906_v8, 0.0  ;;  %2178 = vadd.xlane.f32.xlu2 %v2177_v6  ;;  %v5917_v53 = vpop.eup %4406  ;;  %v2008_v6 = vmul.f32 1.442695, %v1909_v17 }
 0x376   :  { %2145 = vadd.xlane.f32.xlu0 %v2144_v56  ;;  %v5922_v1 = vpop.eup %4408  ;;  %v2141_v10 = vsel %vm1681_vm3, %v5917_v53, 0.0 }
 0x377   :  { %2199 = vadd.xlane.f32.xlu1 %v2198_v46 }
 0x378   :  { %v5915_v52 = vpop.xlane.xlu1 %1866 }
 0x379   :  { %v1783_v47 = vpop.xlane.xlu2 %1782 }
 0x37a   :  { %v1907_v7 = vsub.f32 %v5592_v62, %v1783_v47  ;;  %v5920_v15 = vpop.xlane.xlu0 %1842  ;;  %v2183_v62 = vsel %vm1681_vm3, %v5922_v1, 0.0  ;;  %v5932_v47 = vpop.eup %4410 }
 0x37c   :  { %v2004_v23 = vmul.f32 1.442695, %v1907_v7  ;;  %v1919_v7 = vsub.f32 %v6529_v16, %v1819_v35  ;;  %v1908_v16 = vsub.f32 %v5572_v55, %v5902_v3 }
 0x37d   :  { %2142 = vadd.xlane.f32.xlu2 %v2141_v10 }
 0x37e   :  { %4412 = vpow2.f32 %v2004_v23  ;;  %2184 = vadd.xlane.f32.xlu0 %v2183_v62  ;;  %v2180_v23 = vsel %vm1681_vm3, %v5932_v47, 0.0  ;;  %v2028_v12 = vmul.f32 1.442695, %v1919_v7 }
 0x37f   :  { %4414 = vpow2.f32 %v2002_v27 }
 0x380   :  { %v1831_v46 = vpop.xlane.xlu1 %1830  ;;  %4416 = vpow2.f32 %v2008_v6  ;;  %v6530_v6 = vld [vmem:[#allocation42_spill] sm:$0xff] }
 0x381   :  { %v1840_v56 = vpop.xlane.xlu2 %1839  ;;  %4418 = vpow2.f32 %v2028_v12 }
 0x382   :  { %v1807_v42 = vpop.xlane.xlu0 %1806  ;;  %v1926_v38 = vsub.f32 %v5617_v61, %v1840_v56  ;;  %v1920_v56 = vsub.f32 %v6530_v6, %v5884_v5  ;;  %v2006_v5 = vmul.f32 1.442695, %v1908_v16 }
 0x384   :  { %v5934_v4 = vpop.eup %4412  ;;  %v2042_v17 = vmul.f32 1.442695, %v1926_v38  ;;  %v6531_v38 = vld [vmem:[#allocation44_spill] sm:$0xff] }
 0x385   :  { %v2165_v45 = vsel %vm1681_vm3, %v5934_v4, 0.0  ;;  %2181 = vadd.xlane.f32.xlu2 %v2180_v23  ;;  %v5944_v60 = vpop.eup %4414  ;;  %v1916_v23 = vsub.f32 %v6531_v38, %v5898_v59 }
 0x386   :  { %2166 = vadd.xlane.f32.xlu0 %v2165_v45  ;;  %v5949_v61 = vpop.eup %4416  ;;  %4420 = vpow2.f32 %v2042_v17  ;;  %v2162_v45 = vsel %vm1681_vm3, %v5944_v60, 0.0 }
 0x387   :  { %v2022_v12 = vmul.f32 1.442695, %v1916_v23  ;;  %v5965_v3 = vpop.eup %4418 }
 0x388   :  { %v5942_v62 = vpop.xlane.xlu1 %1851  ;;  %v2201_v16 = vsel %vm1681_vm3, %v5965_v3, 0.0 }
 0x389   :  { %v1804_v10 = vpop.xlane.xlu2 %1803 }
 0x38a   :  { %v1914_v35 = vsub.f32 %v5646_v63, %v1804_v10  ;;  %v5947_v27 = vpop.xlane.xlu0 %1863  ;;  %v2171_v63 = vsel %vm1681_vm3, %v5949_v61, 0.0  ;;  %v2030_v10 = vmul.f32 1.442695, %v1920_v56  ;;  %v1923_v56 = vsub.f32 %v5613_v2, %v1831_v46 }
 0x38c   :  { %v2018_v7 = vmul.f32 1.442695, %v1914_v35  ;;  %v5969_v17 = vpop.eup %4420 }
 0x38d   :  { %2163 = vadd.xlane.f32.xlu2 %v2162_v45  ;;  %6532 = vst [vmem:[#allocation33_spill] sm:$0xff] %v5969_v17  ;;  %v2222_v23 = vsel %vm1681_vm3, %v5969_v17, 0.0  ;;  %v6534_v45 = vld [vmem:[#allocation36_spill] sm:$0xff] }
 0x38e   :  { %4422 = vpow2.f32 %v2018_v7  ;;  %2172 = vadd.xlane.f32.xlu0 %v2171_v63  ;;  %v1915_v7 = vsub.f32 %v5622_v29, %v1807_v42  ;;  %v1921_v63 = vsub.f32 %v6534_v45, %v5842_v28  ;;  %v2036_v42 = vmul.f32 1.442695, %v1923_v56 }
 0x38f   :  { %4424 = vpow2.f32 %v2030_v10 }
 0x390   :  { %v5963_v55 = vpop.xlane.xlu1 %2097  ;;  %4426 = vpow2.f32 %v2006_v5  ;;  %v2020_v10 = vmul.f32 1.442695, %v1915_v7  ;;  %v6538_v7 = vld [vmem:[#allocation41_spill] sm:$0xff] }
 0x391   :  { %v5961_v6 = vpop.xlane.xlu2 %1848  ;;  %4428 = vpow2.f32 %v2022_v12  ;;  %v1928_v56 = vsub.f32 %v6538_v7, %v5879_v58 }
 0x392   :  { %v5967_v59 = vpop.xlane.xlu0 %1827  ;;  %4430 = vpow2.f32 %v2020_v10 }
 0x393   :  { %4432 = vpow2.f32 %v2036_v42  ;;  %v1930_v42 = vsub.f32 %v5642_v14, %v5942_v62 }
 0x394   :  { %v5971_v35 = vpop.eup %4422 }
 0x395   :  { %6533 = vst [vmem:[#allocation40_spill] sm:$0xff] %v5971_v35  ;;  %v2186_v38 = vsel %vm1681_vm3, %v5971_v35, 0.0  ;;  %2202 = vadd.xlane.f32.xlu2 %v2201_v16  ;;  %v5983_v29 = vpop.eup %4424 }
 0x396   :  { %2187 = vadd.xlane.f32.xlu1 %v2186_v38  ;;  %2223 = vadd.xlane.f32.xlu0 %v2222_v23  ;;  %6535 = vst [vmem:[#allocation35_spill] sm:$0xff] %v5983_v29  ;;  %v5987_v5 = vpop.eup %4426  ;;  %v1927_v38 = vsub.f32 %v5599_v30, %v5920_v15  ;;  %v2032_v23 = vmul.f32 1.442695, %v1921_v63  ;;  %v2204_v45 = vsel %vm1681_vm3, %v5983_v29, 0.0  ;;  %v2046_v15 = vmul.f32 1.442695, %v1928_v56 }
 0x397   :  { %6536 = vst [vmem:[#allocation37_spill] sm:$0xff] %v5987_v5  ;;  %v5992_v35 = vpop.eup %4428 }
 0x398   :  { %v5985_v46 = vpop.xlane.xlu1 %1860  ;;  %6537 = vst [vmem:[#allocation38_spill] sm:$0xff] %v5992_v35  ;;  %v2044_v30 = vmul.f32 1.442695, %v1927_v38  ;;  %v6006_v58 = vpop.eup %4430  ;;  %v1922_v38 = vsub.f32 %v5673_v9, %v5967_v59 }
 0x399   :  { %v1813_v2 = vpop.xlane.xlu2 %1812  ;;  %6539 = vst [vmem:[#allocation34_spill] sm:$0xff] %v6006_v58  ;;  %v2189_v56 = vsel %vm1681_vm3, %v6006_v58, 0.0 }
 0x39a   :  { %v1917_v12 = vsub.f32 %v5696_v51, %v1813_v2  ;;  %v5990_v16 = vpop.xlane.xlu0 %1869  ;;  %v2168_v51 = vsel %vm1681_vm3, %v5987_v5, 0.0  ;;  %v2192_v2 = vsel %vm1681_vm3, %v5992_v35, 0.0  ;;  %v2034_v59 = vmul.f32 1.442695, %v1922_v38 }
 0x39c   :  { %v2024_v28 = vmul.f32 1.442695, %v1917_v12 }
 0x39d   :  { %2169 = vadd.xlane.f32.xlu2 %v2168_v51  ;;  %v2050_v51 = vmul.f32 1.442695, %v1930_v42 }
 0x39e   :  { %4434 = vpow2.f32 %v2024_v28  ;;  %2205 = vadd.xlane.f32.xlu1 %v2204_v45  ;;  %2193 = vadd.xlane.f32.xlu0 %v2192_v2  ;;  %v6010_v28 = vpop.eup %4432  ;;  %v6542_v45 = vld [vmem:[#allocation15_spill] sm:$0xff] }
 0x39f   :  { %4436 = vpow2.f32 %v2032_v23  ;;  %6540 = vst [vmem:[#allocation39_spill] sm:$0xff] %v6010_v28  ;;  %v3950_v14 = vunpack.i.h.bf16 %v6542_v45  ;;  %v3949_v62 = vunpack.i.l.bf16 %v6542_v45  ;;  %v2213_v2 = vsel %vm1681_vm3, %v6010_v28, 0.0 }
 0x3a0   :  { %v6004_v10 = vpop.xlane.xlu1 %2103 }
 0x3a1   :  { %v2092_v63 = vpop.xlane.xlu2 %2091  ;;  %v638_v45 = vpack.c.bf16 %v3950_v14, %v3950_v14  ;;  %v637_v42 = vpack.c.bf16 %v3949_v62, %v3949_v62 }
 0x3a2   :  { %4438 = vrcp.f32 %v2092_v63  ;;  %v2095_v12 = vpop.xlane.xlu0 %2094 }
 0x3a3   :  { %4440 = vpow2.f32 %v2044_v30 }
 0x3a4   :  { %v6012_v7 = vpop.eup %4434  ;;  %4442 = vrcp.f32 %v2095_v12 }
 0x3a5   :  { %6541 = vst [vmem:[#allocation43_spill] sm:$0xff] %v6012_v7  ;;  %4444 = vpow2.f32 %v2046_v15  ;;  %v2195_v23 = vsel %vm1681_vm3, %v6012_v7, 0.0  ;;  %2190 = vadd.xlane.f32.xlu2 %v2189_v56  ;;  %v6024_v30 = vpop.eup %4436 }
 0x3a6   :  { %2196 = vadd.xlane.f32.xlu1 %v2195_v23  ;;  %2214 = vadd.xlane.f32.xlu0 %v2213_v2  ;;  %4446 = vpow2.f32 %v2050_v51  ;;  %v6543_v23 = vld [vmem:[#allocation48_spill] sm:$0xff]  ;;  %v2207_v14 = vsel %vm1681_vm3, %v6024_v30, 0.0 }
 0x3a7   :  { %v1929_v56 = vsub.f32 %v6543_v23, %v5961_v6  ;;  %4448 = vpow2.f32 %v2034_v59  ;;  %v2793_v23 = vunpack.c.l.b16 %v637_v42 }
 0x3a8   :  { %v4439_v9 = vpop.eup %4438  ;;  %v6029_v35 = vpop.xlane.xlu1 %2133 }
 0x3a9   :  { %v6026_v15 = vpop.eup %4440  ;;  %v2330_v63 = vmul.f32 %v4439_v9, %v5709_v33  ;;  %v1834_v12 = vpop.xlane.xlu2 %1833  ;;  %v6544_v33 = vld [vmem:[#allocation45_spill] sm:$0xff] }
 0x3aa   :  { %v4443_v29 = vpop.eup %4442  ;;  %v1837_v17 = vpop.xlane.xlu0 %1836  ;;  %v1935_v9 = vsub.f32 %v6544_v33, %v5915_v52  ;;  %v1924_v58 = vsub.f32 %v5731_v31, %v1834_v12  ;;  %v2225_v6 = vsel %vm1681_vm3, %v6026_v15, 0.0 }
 0x3ab   :  { %v6031_v28 = vpop.eup %4444  ;;  %v2394_v2 = vpack.c.bf16 %v2330_v63, %v2330_v63  ;;  %v2331_v38 = vmul.f32 %v4443_v29, %v5715_v57  ;;  %v1925_v7 = vsub.f32 %v5742_v32, %v1837_v17  ;;  %v2794_v63 = vunpack.c.l.b16 %v638_v45 }
 0x3ac   :  { %v2228_v57 = vsel %vm1681_vm3, %v6031_v28, 0.0  ;;  %v2048_v32 = vmul.f32 1.442695, %v1929_v56  ;;  %v6046_v31 = vpop.eup %4446  ;;  %v2038_v17 = vmul.f32 1.442695, %v1924_v58 }
 0x3ad   :  { %v2564_v62 = vunpack.c.l.b16 %v2394_v2  ;;  %v2395_v51 = vpack.c.bf16 %v2331_v38, %v2331_v38  ;;  %v2040_v5 = vmul.f32 1.442695, %v1925_v7  ;;  %2208 = vadd.xlane.f32.xlu2 %v2207_v14  ;;  %6545 = vst [vmem:[#allocation42_spill] sm:$0xff] %v6046_v31  ;;  %v2060_v29 = vmul.f32 1.442695, %v1935_v9  ;;  %v6050_v2 = vpop.eup %4448  ;;  %v6546_v38 = vld [vmem:[#allocation50_spill] sm:$0xff] }
 0x3ae   :  { %2226 = vadd.xlane.f32.xlu1 %v2225_v6  ;;  %2229 = vadd.xlane.f32.xlu0 %v2228_v57  ;;  %v2795_v45 = vpack.c.b16 %v2794_v63, %v2793_v23  ;;  %v1936_v33 = vsub.f32 %v6546_v38, %v5990_v16  ;;  %v2234_v9 = vsel %vm1681_vm3, %v6046_v31, 0.0 }
 0x3af   :  { %v2565_v52 = vunpack.c.l.b16 %v2395_v51  ;;  %4450 = vpow2.f32 %v2040_v5 }
 0x3b0   :  { %v6048_v12 = vpop.xlane.xlu1 %2154  ;;  %4452 = vrcp.f32 %v5963_v55  ;;  %v2210_v55 = vsel %vm1681_vm3, %v6050_v2, 0.0  ;;  %v2062_v6 = vmul.f32 1.442695, %v1936_v33 }
 0x3b1   :  { %v2566_v59 = vpack.c.b16 %v2565_v52, %v2564_v62  ;;  %v1855_v7 = vpop.xlane.xlu2 %1854  ;;  %4454 = vpow2.f32 %v2048_v32  ;;  %v6549_v52 = vld [vmem:[#allocation46_spill] sm:$0xff] }
 0x3b2   :  { %v1858_v42 = vpop.xlane.xlu0 %1857  ;;  %v1931_v56 = vsub.f32 %v5761_v24, %v1855_v7  ;;  %4456 = vpow2.f32 %v2038_v17  ;;  %v1934_v17 = vsub.f32 %v6549_v52, %v5947_v27 }
 0x3b3   :  { %3816 = vmatmul.msk.bf16.vlgmr.msra.gmra.mxu2 %vm1681_vm3, %v2566_v59  ;;  %v1932_v5 = vsub.f32 %v5767_v21, %v1858_v42  ;;  %4458 = vpow2.f32 %v2060_v29  ;;  %v6550_v29 = vld [vmem:[#allocation17_spill] sm:$0xff] }
 0x3b4   :  { %2807 = vmatpush.bf16.msra.mxu2 %v2795_v45  ;;  %v2052_v14 = vmul.f32 1.442695, %v1931_v56  ;;  %v4020_v59 = vunpack.i.h.bf16 %v6550_v29  ;;  %v4019_v7 = vunpack.i.l.bf16 %v6550_v29  ;;  %v6551_v45 = vld [vmem:[#allocation47_spill] sm:$0xff]  ;;  %v2058_v38 = vmul.f32 1.442695, %v1934_v17  ;;  %v6555_v17 = vld [vmem:[#allocation49_spill] sm:$0xff] }
 0x3b5   :  { %v6056_v58 = vpop.eup %4450  ;;  %2211 = vadd.xlane.f32.xlu2 %v2210_v55  ;;  %v2054_v62 = vmul.f32 1.442695, %v1932_v5 }
 0x3b6   :  { %2235 = vadd.xlane.f32.xlu1 %v2234_v9  ;;  %v2219_v24 = vsel %vm1681_vm3, %v6056_v58, 0.0  ;;  %v4453_v21 = vpop.eup %4452  ;;  %v640_v9 = vpack.c.bf16 %v4020_v59, %v4020_v59  ;;  %v639_v55 = vpack.c.bf16 %v4019_v7, %v4019_v7 }
 0x3b7   :  { %2220 = vadd.xlane.f32.xlu0 %v2219_v24  ;;  %v6066_v51 = vpop.eup %4454  ;;  %v2332_v42 = vmul.f32 %v4453_v21, %v6551_v45  ;;  %v1933_v45 = vsub.f32 %v6555_v17, %v5985_v46 }
 0x3b8   :  { %v2119_v16 = vpop.xlane.xlu1 %2118  ;;  %v6068_v23 = vpop.eup %4456  ;;  %v2231_v56 = vsel %vm1681_vm3, %v6066_v51, 0.0  ;;  %v2822_v59 = vunpack.c.l.b16 %v640_v9  ;;  %v2821_v7 = vunpack.c.l.b16 %v639_v55 }
 0x3b9   :  { %v2101_v63 = vpop.xlane.xlu2 %2100  ;;  %6547 = vst [vmem:[#allocation44_spill] sm:$0xff] %v6068_v23  ;;  %v6072_v32 = vpop.eup %4458  ;;  %v2216_v5 = vsel %vm1681_vm3, %v6068_v23, 0.0  ;;  %v2056_v46 = vmul.f32 1.442695, %v1933_v45 }
 0x3ba   :  { %4460 = vrcp.f32 %v2101_v63  ;;  %v6070_v57 = vpop.xlane.xlu0 %2130  ;;  %6548 = vst [vmem:[#allocation36_spill] sm:$0xff] %v6072_v32  ;;  %v2249_v27 = vsel %vm1681_vm3, %v6072_v32, 0.0  ;;  %v2823_v9 = vpack.c.b16 %v2822_v59, %v2821_v7 }
 0x3bb   :  { %4462 = vpow2.f32 %v2052_v14  ;;  %v2396_v14 = vpack.c.bf16 %v2332_v42, %v2332_v42 }
 0x3bc   :  { %4464 = vpow2.f32 %v2054_v62 }
 0x3bd   :  { %4466 = vpow2.f32 %v2062_v6  ;;  %2217 = vadd.xlane.f32.xlu2 %v2216_v5  ;;  %v2592_v42 = vunpack.c.l.b16 %v2396_v14 }
 0x3be   :  { %2232 = vadd.xlane.f32.xlu1 %v2231_v56  ;;  %4468 = vpow2.f32 %v2058_v38 }
 0x3bf   :  { %2250 = vadd.xlane.f32.xlu0 %v2249_v27  ;;  %4470 = vrcp.f32 %v6004_v10 }
 0x3c0   :  { %v4461_v33 = vpop.eup %4460  ;;  %v2113_v6 = vpop.xlane.xlu1 %2112  ;;  %4472 = vrcp.f32 %v2119_v16 }
 0x3c1   :  { %v6085_v24 = vpop.eup %4462  ;;  %v2333_v21 = vmul.f32 %v4461_v33, %v5778_v11  ;;  %v2128_v62 = vpop.xlane.xlu2 %2127 }
 0x3c2   :  { %6552 = vst [vmem:[#allocation41_spill] sm:$0xff] %v6085_v24  ;;  %v6088_v63 = vpop.eup %4464  ;;  %v6090_v52 = vpop.xlane.xlu0 %2151  ;;  %v2237_v11 = vsel %vm1681_vm3, %v6085_v24, 0.0 }
 0x3c3   :  { %6553 = vst [vmem:[#allocation15_spill] sm:$0xff] %v6088_v63  ;;  %v6092_v29 = vpop.eup %4466  ;;  %v2397_v56 = vpack.c.bf16 %v2333_v21, %v2333_v21  ;;  %v2240_v27 = vsel %vm1681_vm3, %v6088_v63, 0.0 }
 0x3c4   :  { %6554 = vst [vmem:[#allocation48_spill] sm:$0xff] %v6092_v29  ;;  %v2252_v38 = vsel %vm1681_vm3, %v6092_v29, 0.0  ;;  %v6103_v55 = vpop.eup %4468 }
 0x3c5   :  { %v2593_v5 = vunpack.c.l.b16 %v2397_v56  ;;  %2238 = vadd.xlane.f32.xlu2 %v2237_v11  ;;  %6556 = vst [vmem:[#allocation45_spill] sm:$0xff] %v6103_v55  ;;  %v4471_v21 = vpop.eup %4470  ;;  %v6557_v56 = vld [vmem:[#allocation21_spill] sm:$0xff]  ;;  %v2246_v7 = vsel %vm1681_vm3, %v6103_v55, 0.0 }
 0x3c6   :  { %2241 = vadd.xlane.f32.xlu1 %v2240_v27  ;;  %v4473_v17 = vpop.eup %4472  ;;  %v4090_v11 = vunpack.i.h.bf16 %v6557_v56  ;;  %v4089_v45 = vunpack.i.l.bf16 %v6557_v56 }
 0x3c7   :  { %v2594_v33 = vpack.c.b16 %v2593_v5, %v2592_v42  ;;  %2253 = vadd.xlane.f32.xlu0 %v2252_v38  ;;  %v6558_v42 = vld [vmem:[#allocation51_spill] sm:$0xff]  ;;  %v6559_v5 = vld [vmem:[#allocation12_spill] sm:$0xff] }
 0x3c8   :  { %v6106_v14 = vpop.xlane.xlu1 %2175  ;;  %v2334_v59 = vmul.f32 %v4471_v21, %v6558_v42  ;;  %v3955_v27 = vunpack.i.h.bf16 %v6559_v5  ;;  %v3954_v38 = vunpack.i.l.bf16 %v6559_v5 }
 0x3c9   :  { %3817 = vmatmul.msk.bf16.vlgmr.msra.gmra.mxu3 %vm1681_vm3, %v2594_v33  ;;  %v2107_v10 = vpop.xlane.xlu2 %2106  ;;  %v2339_v33 = vmul.f32 %v4473_v17, %v5782_v26 }
 0x3ca   :  { %2835 = vmatpush.bf16.msra.mxu3 %v2823_v9  ;;  %4474 = vrcp.f32 %v2107_v10  ;;  %v2116_v16 = vpop.xlane.xlu0 %2115  ;;  %v642_v9 = vpack.c.bf16 %v4090_v11, %v4090_v11  ;;  %v641_v10 = vpack.c.bf16 %v4089_v45, %v4089_v45  ;;  %v2398_v56 = vpack.c.bf16 %v2334_v59, %v2334_v59 }
 0x3cb   :  { %4476 = vpow2.f32 %v2056_v46  ;;  %v646_v55 = vpack.c.bf16 %v3955_v27, %v3955_v27  ;;  %v645_v32 = vpack.c.bf16 %v3954_v38, %v3954_v38 }
 0x3cc   :  { %4478 = vrcp.f32 %v2116_v16  ;;  %v2850_v45 = vunpack.c.l.b16 %v642_v9  ;;  %v2620_v59 = vunpack.c.l.b16 %v2398_v56 }
 0x3cd   :  { %4480 = vrcp.f32 %v2113_v6  ;;  %2247 = vadd.xlane.f32.xlu2 %v2246_v7  ;;  %v2403_v6 = vpack.c.bf16 %v2339_v33, %v2339_v33  ;;  %v2849_v7 = vunpack.c.l.b16 %v641_v10  ;;  %v2906_v27 = vunpack.c.l.b16 %v646_v55 }
 0x3ce   :  { %4482 = vrcp.f32 %v2128_v62  ;;  %v2905_v38 = vunpack.c.l.b16 %v645_v32  ;;  %v6561_v62 = vld [vmem:[#allocation30_spill] sm:$0xff] }
 0x3cf   :  { %4484 = vrcp.f32 %v6070_v57  ;;  %v4160_v31 = vunpack.i.h.bf16 %v6561_v62  ;;  %v4159_v33 = vunpack.i.l.bf16 %v6561_v62  ;;  %v2677_v57 = vunpack.c.l.b16 %v2403_v6 }
 0x3d0   :  { %v4475_v46 = vpop.eup %4474  ;;  %v6119_v42 = vpop.xlane.xlu1 %2139 }
 0x3d1   :  { %v6116_v29 = vpop.eup %4476  ;;  %v2335_v16 = vmul.f32 %v4475_v46, %v5822_v54  ;;  %v2137_v21 = vpop.xlane.xlu2 %2136  ;;  %v643_v23 = vpack.c.bf16 %v4159_v33, %v4159_v33  ;;  %v6563_v33 = vld [vmem:[#allocation20_spill] sm:$0xff] }
 0x3d2   :  { %6560 = vst [vmem:[#allocation50_spill] sm:$0xff] %v6116_v29  ;;  %v4479_v63 = vpop.eup %4478  ;;  %v2110_v5 = vpop.xlane.xlu0 %2109  ;;  %v2243_v24 = vsel %vm1681_vm3, %v6116_v29, 0.0  ;;  %v644_v29 = vpack.c.bf16 %v4160_v31, %v4160_v31 }
 0x3d3   :  { %v2399_v26 = vpack.c.bf16 %v2335_v16, %v2335_v16  ;;  %v2338_v17 = vmul.f32 %v4479_v63, %v5829_v41  ;;  %v4481_v11 = vpop.eup %4480  ;;  %4486 = vrcp.f32 %v2110_v5  ;;  %v2851_v16 = vpack.c.b16 %v2850_v45, %v2849_v7  ;;  %v6562_v7 = vld [vmem:[#allocation24_spill] sm:$0xff] }
 0x3d4   :  { %v2337_v41 = vmul.f32 %v4481_v11, %v5805_v50  ;;  %v4483_v10 = vpop.eup %4482  ;;  %4488 = vrcp.f32 %v2137_v21 }
 0x3d5   :  { %v2621_v54 = vunpack.c.l.b16 %v2399_v26  ;;  %v2402_v46 = vpack.c.bf16 %v2338_v17, %v2338_v17  ;;  %2244 = vadd.xlane.f32.xlu2 %v2243_v24  ;;  %v4485_v56 = vpop.eup %4484  ;;  %v2907_v17 = vpack.c.b16 %v2906_v27, %v2905_v38  ;;  %v2342_v50 = vmul.f32 %v4483_v10, %v5797_v49 }
 0x3d6   :  { %v2401_v11 = vpack.c.bf16 %v2337_v41, %v2337_v41  ;;  %4490 = vrcp.f32 %v6029_v35  ;;  %v2878_v27 = vunpack.c.l.b16 %v644_v29  ;;  %v2877_v38 = vunpack.c.l.b16 %v643_v23 }
 0x3d7   :  { %v2622_v63 = vpack.c.b16 %v2621_v54, %v2620_v59  ;;  %v2676_v9 = vunpack.c.l.b16 %v2402_v46  ;;  %v4095_v59 = vunpack.i.h.bf16 %v6562_v7  ;;  %v4094_v54 = vunpack.i.l.bf16 %v6562_v7 }
 0x3d8   :  { %v1873_v55 = vpop.xlane.xlu1 %1872  ;;  %v2406_v49 = vpack.c.bf16 %v2342_v50, %v2342_v50  ;;  %v2649_v62 = vunpack.c.l.b16 %v2401_v11 }
 0x3d9   :  { %v2678_v5 = vpack.c.b16 %v2677_v57, %v2676_v9  ;;  %3818 = vmatmul.msk.bf16.vlgmr.msrb.gmra.mxu0 %vm1681_vm3, %v2622_v63  ;;  %v6129_v26 = vpop.xlane.xlu2 %2157  ;;  %v4487_v32 = vpop.eup %4486  ;;  %v1937_v24 = vsub.f32 %v5860_v39, %v1873_v55  ;;  %v2343_v39 = vmul.f32 %v4485_v56, %v5786_v40  ;;  %v4025_v57 = vunpack.i.h.bf16 %v6563_v33 }
 0x3da   :  { %2863 = vmatpush.bf16.msrb.mxu0 %v2851_v16  ;;  %v6132_v6 = vpop.xlane.xlu0 %2160  ;;  %v2336_v45 = vmul.f32 %v4487_v32, %v5847_v13  ;;  %v650_v41 = vpack.c.bf16 %v4095_v59, %v4095_v59  ;;  %v649_v63 = vpack.c.bf16 %v4094_v54, %v4094_v54  ;;  %v4024_v9 = vunpack.i.l.bf16 %v6563_v33  ;;  %v4489_v16 = vpop.eup %4488 }
 0x3db   :  { %3820 = vmatmul.msk.bf16.vlgmr.msrb.gmra.mxu2 %vm1681_vm3, %v2678_v5  ;;  %v2064_v46 = vmul.f32 1.442695, %v1937_v24  ;;  %v2407_v21 = vpack.c.bf16 %v2343_v39, %v2343_v39  ;;  %v2879_v40 = vpack.c.b16 %v2878_v27, %v2877_v38  ;;  %v2732_v56 = vunpack.c.l.b16 %v2406_v49 }
 0x3dc   :  { %2919 = vmatpush.bf16.msrb.mxu2 %v2907_v17  ;;  %v2400_v31 = vpack.c.bf16 %v2336_v45, %v2336_v45  ;;  %v4491_v23 = vpop.eup %4490  ;;  %v648_v55 = vpack.c.bf16 %v4025_v57, %v4025_v57  ;;  %v2962_v32 = vunpack.c.l.b16 %v650_v41  ;;  %v2961_v17 = vunpack.c.l.b16 %v649_v63  ;;  %v6564_v45 = vld [vmem:[#allocation26_spill] sm:$0xff] }
 0x3dd   :  { %4492 = vpow2.f32 %v2064_v46  ;;  %v2733_v24 = vunpack.c.l.b16 %v2407_v21  ;;  %v2345_v50 = vmul.f32 %v4489_v16, %v5840_v0  ;;  %v4165_v7 = vunpack.i.h.bf16 %v6564_v45 }
 0x3de   :  { %v2648_v13 = vunpack.c.l.b16 %v2400_v31  ;;  %4494 = vrcp.f32 %v6090_v52  ;;  %v647_v52 = vpack.c.bf16 %v4024_v9, %v4024_v9  ;;  %v4164_v59 = vunpack.i.l.bf16 %v6564_v45  ;;  %v6567_v45 = vld [vmem:[#allocation22_spill] sm:$0xff] }
 0x3df   :  { %v2344_v46 = vmul.f32 %v4491_v23, %v5736_v20  ;;  %v2734_v39 = vpack.c.b16 %v2733_v24, %v2732_v56  ;;  %v2934_v27 = vunpack.c.l.b16 %v648_v55  ;;  %v652_v57 = vpack.c.bf16 %v4165_v7, %v4165_v7 }
 0x3e0   :  { %v2650_v10 = vpack.c.b16 %v2649_v62, %v2648_v13  ;;  %v2933_v49 = vunpack.c.l.b16 %v647_v52  ;;  %v2409_v62 = vpack.c.bf16 %v2345_v50, %v2345_v50  ;;  %v651_v41 = vpack.c.bf16 %v4164_v59, %v4164_v59 }
 0x3e1   :  { %v2122_v35 = vpop.xlane.xlu2 %2121  ;;  %v2408_v21 = vpack.c.bf16 %v2344_v46, %v2344_v46  ;;  %v4030_v7 = vunpack.i.h.bf16 %v6567_v45 }
 0x3e2   :  { %4496 = vrcp.f32 %v2122_v35  ;;  %v2125_v29 = vpop.xlane.xlu0 %2124  ;;  %3819 = vmatmul.msk.bf16.vlgmr.msrb.gmra.mxu1 %vm1681_vm3, %v2650_v10  ;;  %v2149_v20 = vpop.xlane.xlu1 %2148  ;;  %v2989_v56 = vunpack.c.l.b16 %v651_v41  ;;  %v2935_v46 = vpack.c.b16 %v2934_v27, %v2933_v49 }
 0x3e3   :  { %4498 = vrcp.f32 %v2125_v29  ;;  %v6145_v5 = vpop.eup %4492  ;;  %2891 = vmatpush.bf16.msrb.mxu1 %v2879_v40  ;;  %v2760_v24 = vunpack.c.l.b16 %v2408_v21  ;;  %v656_v27 = vpack.c.bf16 %v4030_v7, %v4030_v7 }
 0x3e4   :  { %4500 = vrcp.f32 %v6048_v12  ;;  %v2255_v11 = vsel %vm1681_vm3, %v6145_v5, 0.0  ;;  %v4495_v54 = vpop.eup %4494  ;;  %v2963_v12 = vpack.c.b16 %v2962_v32, %v2961_v17  ;;  %v6566_v17 = vld [vmem:[#allocation14_spill] sm:$0xff] }
 0x3e5   :  { %2256 = vadd.xlane.f32.xlu1 %v2255_v11  ;;  %4502 = vrcp.f32 %v6119_v42  ;;  %v2350_v10 = vmul.f32 %v4495_v54, %v5799_v19  ;;  %v6565_v42 = vld [vmem:[#allocation27_spill] sm:$0xff]  ;;  %v3960_v19 = vunpack.i.h.bf16 %v6566_v17  ;;  %v3959_v52 = vunpack.i.l.bf16 %v6566_v17 }
 0x3e6   :  { %4504 = vrcp.f32 %v6129_v26  ;;  %v4099_v16 = vunpack.i.l.bf16 %v6565_v42  ;;  %v2761_v26 = vunpack.c.l.b16 %v2409_v62  ;;  %v4029_v62 = vunpack.i.l.bf16 %v6567_v45 }
 0x3e7   :  { %v2414_v50 = vpack.c.bf16 %v2350_v10, %v2350_v10  ;;  %v654_v41 = vpack.c.bf16 %v3960_v19, %v3960_v19 }
 0x3e8   :  { %v4497_v31 = vpop.eup %4496  ;;  %v657_v59 = vpack.c.bf16 %v4099_v16, %v4099_v16  ;;  %v6568_v16 = vld [vmem:[#allocation28_spill] sm:$0xff] }
 0x3e9   :  { %v4499_v38 = vpop.eup %4498  ;;  %v2340_v0 = vmul.f32 %v4497_v31, %v5881_v25  ;;  %v2179_v13 = vpop.xlane.xlu2 %2178  ;;  %3822 = vmatmul.msk.bf16.vlgmr.msra.gmra.mxu0 %vm1681_vm3, %v2734_v39  ;;  %v4100_v25 = vunpack.i.h.bf16 %v6565_v42  ;;  %v2762_v31 = vpack.c.b16 %v2761_v26, %v2760_v24 }
 0x3ea   :  { %v4501_v33 = vpop.eup %4500  ;;  %v2341_v63 = vmul.f32 %v4499_v38, %v5886_v18  ;;  %2975 = vmatpush.bf16.msra.mxu0 %v2963_v12  ;;  %v2146_v9 = vpop.xlane.xlu0 %2145  ;;  %v2990_v18 = vunpack.c.l.b16 %v652_v57 }
 0x3eb   :  { %v2404_v35 = vpack.c.bf16 %v2340_v0, %v2340_v0  ;;  %4506 = vrcp.f32 %v2146_v9  ;;  %v2351_v29 = vmul.f32 %v4501_v33, %v5757_v36  ;;  %v4503_v32 = vpop.eup %4502 }
 0x3ec   :  { %4508 = vrcp.f32 %v6132_v6  ;;  %v2405_v40 = vpack.c.bf16 %v2341_v63, %v2341_v63  ;;  %v4505_v11 = vpop.eup %4504  ;;  %v658_v6 = vpack.c.bf16 %v4100_v25, %v4100_v25  ;;  %v2991_v0 = vpack.c.b16 %v2990_v18, %v2989_v56 }
 0x3ed   :  { %v2704_v23 = vunpack.c.l.b16 %v2404_v35  ;;  %4510 = vrcp.f32 %v2149_v20  ;;  %v2415_v39 = vpack.c.bf16 %v2351_v29, %v2351_v29  ;;  %v653_v20 = vpack.c.bf16 %v3959_v52, %v3959_v52 }
 0x3ee   :  { %v2705_v55 = vunpack.c.l.b16 %v2405_v40  ;;  %4512 = vrcp.f32 %v2179_v13  ;;  %v2844_v63 = vunpack.c.l.b16 %v2414_v50  ;;  %v3074_v49 = vunpack.c.l.b16 %v658_v6  ;;  %v6569_v6 = vld [vmem:[#allocation25_spill] sm:$0xff] }
 0x3ef   :  { %v3073_v13 = vunpack.c.l.b16 %v657_v59  ;;  %v2845_v21 = vunpack.c.l.b16 %v2415_v39  ;;  %v2346_v10 = vmul.f32 %v4503_v32, %v5844_v34  ;;  %v2352_v35 = vmul.f32 %v4505_v11, %v5864_v37 }
 0x3f0   :  { %v2706_v54 = vpack.c.b16 %v2705_v55, %v2704_v23  ;;  %v655_v25 = vpack.c.bf16 %v4029_v62, %v4029_v62  ;;  %v4170_v40 = vunpack.i.h.bf16 %v6568_v16  ;;  %v3018_v23 = vunpack.c.l.b16 %v654_v41 }
 0x3f1   :  { %v4507_v36 = vpop.eup %4506  ;;  %v2143_v12 = vpop.xlane.xlu2 %2142  ;;  %v2846_v18 = vpack.c.b16 %v2845_v21, %v2844_v63  ;;  %v3046_v55 = vunpack.c.l.b16 %v656_v27  ;;  %v3075_v17 = vpack.c.b16 %v3074_v49, %v3073_v13  ;;  %v2410_v32 = vpack.c.bf16 %v2346_v10, %v2346_v10 }
 0x3f2   :  { %v4509_v38 = vpop.eup %4508  ;;  %4514 = vrcp.f32 %v2143_v12  ;;  %3821 = vmatmul.msk.bf16.vlgmr.msrb.gmra.mxu3 %vm1681_vm3, %v2706_v54  ;;  %v2185_v33 = vpop.xlane.xlu0 %2184  ;;  %3823 = vmatmul.msk.bf16.vlgmr.msra.gmra.mxu1 %vm1681_vm3, %v2762_v31  ;;  %v2348_v9 = vmul.f32 %v4507_v36, %v5906_v8  ;;  %v3017_v8 = vunpack.c.l.b16 %v653_v20  ;;  %v2416_v37 = vpack.c.bf16 %v2352_v35, %v2352_v35 }
 0x3f3   :  { %v4511_v57 = vpop.eup %4510  ;;  %4516 = vrcp.f32 %v6106_v14  ;;  %2947 = vmatpush.bf16.msrb.mxu3 %v2935_v46  ;;  %3003 = vmatpush.bf16.msra.mxu1 %v2991_v0  ;;  %v2353_v42 = vmul.f32 %v4509_v38, %v5866_v44  ;;  %v4169_v14 = vunpack.i.l.bf16 %v6568_v16  ;;  %v3045_v50 = vunpack.c.l.b16 %v655_v25  ;;  %v2200_v13 = vpop.xlane.xlu1 %2199 }
 0x3f4   :  { %v2349_v29 = vmul.f32 %v4511_v57, %v5892_v48  ;;  %v4513_v26 = vpop.eup %4512  ;;  %v2412_v19 = vpack.c.bf16 %v2348_v9, %v2348_v9  ;;  %v660_v11 = vpack.c.bf16 %v4170_v40, %v4170_v40  ;;  %v4105_v59 = vunpack.i.h.bf16 %v6569_v6  ;;  %v6570_v40 = vld [vmem:[#allocation13_spill] sm:$0xff] }
 0x3f5   :  { %v2417_v52 = vpack.c.bf16 %v2353_v42, %v2353_v42  ;;  %v659_v48 = vpack.c.bf16 %v4169_v14, %v4169_v14  ;;  %v2359_v54 = vmul.f32 %v4513_v26, %v5900_v22  ;;  %v4104_v46 = vunpack.i.l.bf16 %v6569_v6 }
 0x3f6   :  { %v2413_v45 = vpack.c.bf16 %v2349_v29, %v2349_v29  ;;  %v2788_v31 = vunpack.c.l.b16 %v2410_v32  ;;  %v2872_v12 = vunpack.c.l.b16 %v2416_v37  ;;  %v3102_v0 = vunpack.c.l.b16 %v660_v11 }
 0x3f7   :  { %v2873_v38 = vunpack.c.l.b16 %v2417_v52  ;;  %v3101_v57 = vunpack.c.l.b16 %v659_v48  ;;  %v2423_v20 = vpack.c.bf16 %v2359_v54, %v2359_v54  ;;  %v3019_v27 = vpack.c.b16 %v3018_v23, %v3017_v8 }
 0x3f8   :  { %v4515_v56 = vpop.eup %4514  ;;  %v2817_v41 = vunpack.c.l.b16 %v2413_v45  ;;  %v666_v22 = vpack.c.bf16 %v4105_v59, %v4105_v59  ;;  %v665_v49 = vpack.c.bf16 %v4104_v46, %v4104_v46  ;;  %v3047_v10 = vpack.c.b16 %v3046_v55, %v3045_v50 }
 0x3f9   :  { %v4517_v34 = vpop.eup %4516  ;;  %v2347_v44 = vmul.f32 %v4515_v56, %v5917_v53  ;;  %v2182_v24 = vpop.xlane.xlu2 %2181  ;;  %3826 = vmatmul.msk.bf16.vlgmr.msrb.gmra.mxu0 %vm1681_vm3, %v2846_v18  ;;  %v2816_v53 = vunpack.c.l.b16 %v2412_v19  ;;  %v2874_v35 = vpack.c.b16 %v2873_v38, %v2872_v12  ;;  %v3103_v16 = vpack.c.b16 %v3102_v0, %v3101_v57  ;;  %v6571_v19 = vld [vmem:[#allocation29_spill] sm:$0xff] }
 0x3fa   :  { %3087 = vmatpush.bf16.msrb.mxu0 %v3075_v17  ;;  %v2167_v7 = vpop.xlane.xlu0 %2166  ;;  %4518 = vrcp.f32 %v2182_v24  ;;  %v2358_v39 = vmul.f32 %v4517_v34, %v5826_v43  ;;  %v3965_v14 = vunpack.i.h.bf16 %v6570_v40  ;;  %v2957_v29 = vunpack.c.l.b16 %v2423_v20 }
 0x3fb   :  { %v2411_v36 = vpack.c.bf16 %v2347_v44, %v2347_v44  ;;  %4520 = vrcp.f32 %v2167_v7  ;;  %v2818_v9 = vpack.c.b16 %v2817_v41, %v2816_v53  ;;  %v3964_v23 = vunpack.i.l.bf16 %v6570_v40 }
 0x3fc   :  { %4522 = vrcp.f32 %v2185_v33  ;;  %v2422_v43 = vpack.c.bf16 %v2358_v39, %v2358_v39  ;;  %v3186_v18 = vunpack.c.l.b16 %v666_v22  ;;  %v3185_v56 = vunpack.c.l.b16 %v665_v49 }
 0x3fd   :  { %v2789_v62 = vunpack.c.l.b16 %v2411_v36  ;;  %v4175_v34 = vunpack.i.h.bf16 %v6571_v19  ;;  %v4174_v32 = vunpack.i.l.bf16 %v6571_v19  ;;  %v662_v37 = vpack.c.bf16 %v3965_v14, %v3965_v14 }
 0x3fe   :  { %v2956_v8 = vunpack.c.l.b16 %v2422_v43  ;;  %v661_v50 = vpack.c.bf16 %v3964_v23, %v3964_v23  ;;  %v3187_v11 = vpack.c.b16 %v3186_v18, %v3185_v56 }
 0x3ff   :  { %v2790_v63 = vpack.c.b16 %v2789_v62, %v2788_v31  ;;  %v667_v54 = vpack.c.bf16 %v4174_v32, %v4174_v32  ;;  %v3130_v46 = vunpack.c.l.b16 %v662_v37  ;;  %v6572_v31 = vld [vmem:[#allocation23_spill] sm:$0xff]  ;;  %v6573_v62 = vld [vmem:[#allocation32_spill] sm:$0xff] }
 0x400   :  { %v4519_v21 = vpop.eup %4518  ;;  %v2958_v52 = vpack.c.b16 %v2957_v29, %v2956_v8  ;;  %v3129_v53 = vunpack.c.l.b16 %v661_v50  ;;  %v4110_v12 = vunpack.i.h.bf16 %v6572_v31  ;;  %v4109_v38 = vunpack.i.l.bf16 %v6572_v31  ;;  %v6574_v29 = vld [vmem:[#allocation19_spill] sm:$0xff]  ;;  %v6575_v50 = vld [vmem:[#allocation37_spill] sm:$0xff] }
 0x401   :  { %v2164_v42 = vpop.xlane.xlu2 %2163  ;;  %3824 = vmatmul.msk.bf16.vlgmr.msra.gmra.mxu2 %vm1681_vm3, %v2790_v63  ;;  %v4521_v25 = vpop.eup %4520  ;;  %v2360_v55 = vmul.f32 %v4519_v21, %v5932_v47  ;;  %v3213_v63 = vunpack.c.l.b16 %v667_v54  ;;  %v4034_v56 = vunpack.i.l.bf16 %v6574_v29 }
 0x402   :  { %4524 = vrcp.f32 %v2164_v42  ;;  %3825 = vmatmul.msk.bf16.vlgmr.msra.gmra.mxu3 %vm1681_vm3, %v2818_v9  ;;  %3031 = vmatpush.bf16.msra.mxu2 %v3019_v27  ;;  %v2173_v33 = vpop.xlane.xlu0 %2172  ;;  %v4523_v26 = vpop.eup %4522  ;;  %v2355_v17 = vmul.f32 %v4521_v25, %v5934_v4  ;;  %v668_v4 = vpack.c.bf16 %v4175_v34, %v4175_v34  ;;  %v674_v9 = vpack.c.bf16 %v4110_v12, %v4110_v12 }
 0x403   :  { %4526 = vrcp.f32 %v2200_v13  ;;  %3827 = vmatmul.msk.bf16.vlgmr.msrb.gmra.mxu1 %vm1681_vm3, %v2874_v35  ;;  %3059 = vmatpush.bf16.msra.mxu3 %v3047_v10  ;;  %v2361_v44 = vmul.f32 %v4523_v26, %v5922_v1  ;;  %v2424_v45 = vpack.c.bf16 %v2360_v55, %v2360_v55  ;;  %v3131_v13 = vpack.c.b16 %v3130_v46, %v3129_v53 }
 0x404   :  { %3115 = vmatpush.bf16.msrb.mxu1 %v3103_v16  ;;  %v2419_v7 = vpack.c.bf16 %v2355_v17, %v2355_v17  ;;  %v3214_v20 = vunpack.c.l.b16 %v668_v4  ;;  %v673_v21 = vpack.c.bf16 %v4109_v38, %v4109_v38  ;;  %v4035_v26 = vunpack.i.h.bf16 %v6574_v29  ;;  %v6582_v29 = vld [vmem:[#allocation33_spill] sm:$0xff] }
 0x405   :  { %v2425_v39 = vpack.c.bf16 %v2361_v44, %v2361_v44  ;;  %v3298_v23 = vunpack.c.l.b16 %v674_v9  ;;  %v663_v37 = vpack.c.bf16 %v4034_v56, %v4034_v56 }
 0x406   :  { %v2901_v57 = vunpack.c.l.b16 %v2419_v7  ;;  %v3215_v16 = vpack.c.b16 %v3214_v20, %v3213_v63  ;;  %v3297_v18 = vunpack.c.l.b16 %v673_v21  ;;  %v664_v32 = vpack.c.bf16 %v4035_v26, %v4035_v26  ;;  %v6576_v7 = vld [vmem:[#allocation16_spill] sm:$0xff]  ;;  %v6578_v63 = vld [vmem:[#allocation34_spill] sm:$0xff] }
 0x407   :  { %v2985_v27 = vunpack.c.l.b16 %v2425_v39  ;;  %v3157_v4 = vunpack.c.l.b16 %v663_v37 }
 0x408   :  { %v4525_v24 = vpop.eup %4524  ;;  %v3299_v19 = vpack.c.b16 %v3298_v23, %v3297_v18  ;;  %v6583_v18 = vld [vmem:[#allocation35_spill] sm:$0xff] }
 0x409   :  { %v4527_v48 = vpop.eup %4526  ;;  %v2354_v6 = vmul.f32 %v4525_v24, %v5944_v60  ;;  %v2203_v59 = vpop.xlane.xlu2 %2202  ;;  %3830 = vmatmul.msk.bf16.vlgmr.msra.gmra.mxu0 %vm1681_vm3, %v2958_v52  ;;  %v2984_v60 = vunpack.c.l.b16 %v2424_v45 }
 0x40a   :  { %v2188_v47 = vpop.xlane.xlu1 %2187  ;;  %4528 = vrcp.f32 %v2203_v59  ;;  %3199 = vmatpush.bf16.msra.mxu0 %v3187_v11  ;;  %v2224_v36 = vpop.xlane.xlu0 %2223  ;;  %v2366_v0 = vmul.f32 %v4527_v48, %v6573_v62  ;;  %v3969_v59 = vunpack.i.l.bf16 %v6576_v7 }
 0x40b   :  { %v2418_v1 = vpack.c.bf16 %v2354_v6, %v2354_v6  ;;  %4530 = vrcp.f32 %v2173_v33  ;;  %v2986_v43 = vpack.c.b16 %v2985_v27, %v2984_v60 }
 0x40c   :  { %v2430_v10 = vpack.c.bf16 %v2366_v0, %v2366_v0  ;;  %v669_v62 = vpack.c.bf16 %v3969_v59, %v3969_v59 }
 0x40d   :  { %v2900_v41 = vunpack.c.l.b16 %v2418_v1 }
 0x40f   :  { %v2902_v22 = vpack.c.b16 %v2901_v57, %v2900_v41 }
 0x410   :  { %v4529_v49 = vpop.eup %4528 }
 0x411   :  { %v2367_v35 = vmul.f32 %v4529_v49, %v5965_v3  ;;  %v2170_v25 = vpop.xlane.xlu2 %2169  ;;  %3828 = vmatmul.msk.bf16.vlgmr.msrb.gmra.mxu2 %vm1681_vm3, %v2902_v22  ;;  %v4531_v33 = vpop.eup %4530  ;;  %v3068_v3 = vunpack.c.l.b16 %v2430_v10 }
 0x412   :  { %v2206_v42 = vpop.xlane.xlu1 %2205  ;;  %3143 = vmatpush.bf16.msrb.mxu2 %v3131_v13  ;;  %v2194_v40 = vpop.xlane.xlu0 %2193  ;;  %4532 = vrcp.f32 %v2170_v25  ;;  %v2357_v55 = vmul.f32 %v4531_v33, %v5949_v61  ;;  %v3970_v61 = vunpack.i.h.bf16 %v6576_v7  ;;  %v6579_v13 = vld [vmem:[#allocation18_spill] sm:$0xff]  ;;  %v6581_v25 = vld [vmem:[#allocation43_spill] sm:$0xff]  ;;  %v3241_v33 = vunpack.c.l.b16 %v669_v62 }
 0x413   :  { %v2431_v14 = vpack.c.bf16 %v2367_v35, %v2367_v35  ;;  %3831 = vmatmul.msk.bf16.vlgmr.msra.gmra.mxu1 %vm1681_vm3, %v2986_v43  ;;  %4534 = vrcp.f32 %v2188_v47  ;;  %v3158_v47 = vunpack.c.l.b16 %v664_v32  ;;  %v4040_v9 = vunpack.i.h.bf16 %v6579_v13  ;;  %v6580_v43 = vld [vmem:[#allocation31_spill] sm:$0xff] }
 0x414   :  { %3227 = vmatpush.bf16.msra.mxu1 %v3215_v16  ;;  %4536 = vrcp.f32 %v2224_v36  ;;  %v2421_v24 = vpack.c.bf16 %v2357_v55, %v2357_v55  ;;  %v6577_v36 = vld [vmem:[#allocation40_spill] sm:$0xff]  ;;  %v670_v31 = vpack.c.bf16 %v3970_v61, %v3970_v61  ;;  %v4039_v21 = vunpack.i.l.bf16 %v6579_v13 }
 0x415   :  { %v3069_v8 = vunpack.c.l.b16 %v2431_v14  ;;  %v3159_v0 = vpack.c.b16 %v3158_v47, %v3157_v4  ;;  %v4180_v35 = vunpack.i.h.bf16 %v6580_v43  ;;  %v4179_v14 = vunpack.i.l.bf16 %v6580_v43 }
 0x416   :  { %v2929_v54 = vunpack.c.l.b16 %v2421_v24  ;;  %v3242_v10 = vunpack.c.l.b16 %v670_v31 }
 0x417   :  { %v3070_v17 = vpack.c.b16 %v3069_v8, %v3068_v3  ;;  %v6584_v3 = vld [vmem:[#allocation38_spill] sm:$0xff]  ;;  %v676_v32 = vpack.c.bf16 %v4180_v35, %v4180_v35 }
 0x418   :  { %v4533_v34 = vpop.eup %4532  ;;  %v3243_v24 = vpack.c.b16 %v3242_v10, %v3241_v33 }
 0x419   :  { %v2191_v44 = vpop.xlane.xlu2 %2190  ;;  %3834 = vmatmul.msk.bf16.vlgmr.msrb.gmra.mxu0 %vm1681_vm3, %v3070_v17  ;;  %v2356_v11 = vmul.f32 %v4533_v34, %v6575_v50  ;;  %v4535_v45 = vpop.eup %4534  ;;  %v672_v17 = vpack.c.bf16 %v4040_v9, %v4040_v9  ;;  %v675_v50 = vpack.c.bf16 %v4179_v14, %v4179_v14 }
 0x41a   :  { %v2197_v52 = vpop.xlane.xlu1 %2196  ;;  %3311 = vmatpush.bf16.msrb.mxu0 %v3299_v19  ;;  %v2215_v48 = vpop.xlane.xlu0 %2214  ;;  %v2362_v46 = vmul.f32 %v4535_v45, %v6577_v36  ;;  %v671_v19 = vpack.c.bf16 %v4039_v21, %v4039_v21 }
 0x41b   :  { %4538 = vrcp.f32 %v2197_v52  ;;  %v2420_v6 = vpack.c.bf16 %v2356_v11, %v2356_v11  ;;  %v4537_v1 = vpop.eup %4536 }
 0x41c   :  { %4540 = vrcp.f32 %v2191_v44  ;;  %v2426_v20 = vpack.c.bf16 %v2362_v46, %v2362_v46  ;;  %v2374_v26 = vmul.f32 %v4537_v1, %v6582_v29  ;;  %v3269_v36 = vunpack.c.l.b16 %v671_v19 }
 0x41d   :  { %4542 = vrcp.f32 %v2206_v42  ;;  %v2928_v39 = vunpack.c.l.b16 %v2420_v6  ;;  %v6215_v42 = vpop.f32.mrf.mxu2 }
 0x41e   :  { %4544 = vrcp.f32 %v2194_v40  ;;  %v3012_v23 = vunpack.c.l.b16 %v2426_v20  ;;  %v2438_v11 = vpack.c.bf16 %v2374_v26, %v2374_v26 }
 0x41f   :  { %v2930_v12 = vpack.c.b16 %v2929_v54, %v2928_v39  ;;  %v3270_v54 = vunpack.c.l.b16 %v672_v17  ;;  %v3326_v39 = vunpack.c.l.b16 %v676_v32  ;;  %v6235_v17 = vpop.f32.mrf.mxu3 }
 0x420   :  { %v3180_v31 = vunpack.c.l.b16 %v2438_v11 }
 0x421   :  { %v4539_v53 = vpop.eup %4538  ;;  %v2209_v57 = vpop.xlane.xlu2 %2208  ;;  %3829 = vmatmul.msk.bf16.vlgmr.msrb.gmra.mxu3 %vm1681_vm3, %v2930_v12 }
 0x422   :  { %v4541_v38 = vpop.eup %4540  ;;  %v2227_v60 = vpop.xlane.xlu1 %2226  ;;  %3171 = vmatpush.bf16.msrb.mxu3 %v3159_v0  ;;  %v2365_v16 = vmul.f32 %v4539_v53, %v6581_v25  ;;  %v6585_v0 = vld [vmem:[#allocation39_spill] sm:$0xff] }
 0x423   :  { %v4543_v41 = vpop.eup %4542  ;;  %v2363_v27 = vmul.f32 %v4541_v38, %v6578_v63  ;;  %4546 = vrcp.f32 %v2227_v60  ;;  %v2230_v22 = vpop.xlane.xlu0 %2229 }
 0x424   :  { %v4545_v49 = vpop.eup %4544  ;;  %4548 = vrcp.f32 %v2209_v57  ;;  %v2368_v56 = vmul.f32 %v4543_v41, %v6583_v18  ;;  %v2429_v37 = vpack.c.bf16 %v2365_v16, %v2365_v16 }
 0x425   :  { %v2427_v40 = vpack.c.bf16 %v2363_v27, %v2363_v27  ;;  %4550 = vrcp.f32 %v2215_v48  ;;  %v2364_v8 = vmul.f32 %v4545_v49, %v6584_v3  ;;  %v6225_v38 = vpop.f32.mrf.mxu2  ;;  %v3271_v49 = vpack.c.b16 %v3270_v54, %v3269_v36 }
 0x426   :  { %v2432_v61 = vpack.c.bf16 %v2368_v56, %v2368_v56  ;;  %v3041_v1 = vunpack.c.l.b16 %v2429_v37 }
 0x427   :  { %v3013_v55 = vunpack.c.l.b16 %v2427_v40  ;;  %v2428_v6 = vpack.c.bf16 %v2364_v8, %v2364_v8 }
 0x429   :  { %v4547_v34 = vpop.eup %4546  ;;  %v3014_v52 = vpack.c.b16 %v3013_v55, %v3012_v23  ;;  %v2212_v48 = vpop.xlane.xlu2 %2211  ;;  %v3040_v62 = vunpack.c.l.b16 %v2428_v6 }
 0x42a   :  { %v4549_v44 = vpop.eup %4548  ;;  %v2375_v45 = vmul.f32 %v4547_v34, %v6026_v15  ;;  %v2236_v7 = vpop.xlane.xlu1 %2235  ;;  %4552 = vrcp.f32 %v2212_v48  ;;  %v3325_v15 = vunpack.c.l.b16 %v675_v50  ;;  %v6586_v34 = vld [vmem:[#allocation44_spill] sm:$0xff] }
 0x42b   :  { %v2369_v59 = vmul.f32 %v4549_v44, %v6024_v30  ;;  %3832 = vmatmul.msk.bf16.vlgmr.msra.gmra.mxu2 %vm1681_vm3, %v3014_v52  ;;  %v2221_v47 = vpop.xlane.xlu0 %2220  ;;  %v4551_v4 = vpop.eup %4550  ;;  %4554 = vrcp.f32 %v2230_v22  ;;  %v3096_v30 = vunpack.c.l.b16 %v2432_v61  ;;  %v3042_v20 = vpack.c.b16 %v3041_v1, %v3040_v62  ;;  %v6587_v52 = vld [vmem:[#allocation42_spill] sm:$0xff] }
 0x42c   :  { %v2439_v46 = vpack.c.bf16 %v2375_v45, %v2375_v45  ;;  %3255 = vmatpush.bf16.msra.mxu2 %v3243_v24  ;;  %4556 = vrcp.f32 %v2221_v47  ;;  %v2371_v60 = vmul.f32 %v4551_v4, %v6585_v0  ;;  %v3327_v13 = vpack.c.b16 %v3326_v39, %v3325_v15  ;;  %v6244_v39 = vpop.f32.mrf.mxu3  ;;  %v6246_v1 = vpop.f32.mrf.mxu0  ;;  %v6589_v15 = vld [vmem:[#allocation36_spill] sm:$0xff] }
 0x42d   :  { %v2433_v53 = vpack.c.bf16 %v2369_v59, %v2369_v59  ;;  %v6588_v59 = vld [vmem:[#allocation41_spill] sm:$0xff] }
 0x42e   :  { %v3181_v12 = vunpack.c.l.b16 %v2439_v46  ;;  %v2435_v10 = vpack.c.bf16 %v2371_v60, %v2371_v60  ;;  %v6590_v60 = vld [vmem:[#allocation45_spill] sm:$0xff] }
 0x42f   :  { %v3097_v57 = vunpack.c.l.b16 %v2433_v53 }
 0x430   :  { %v3182_v41 = vpack.c.b16 %v3181_v12, %v3180_v31  ;;  %v4553_v27 = vpop.eup %4552  ;;  %v3125_v40 = vunpack.c.l.b16 %v2435_v10 }
 0x431   :  { %v3098_v63 = vpack.c.b16 %v3097_v57, %v3096_v30  ;;  %v2218_v21 = vpop.xlane.xlu2 %2217  ;;  %v4555_v22 = vpop.eup %4554  ;;  %v2370_v43 = vmul.f32 %v4553_v27, %v6050_v2  ;;  %3833 = vmatmul.msk.bf16.vlgmr.msra.gmra.mxu3 %vm1681_vm3, %v3042_v20 }
 0x432   :  { %v2233_v9 = vpop.xlane.xlu1 %2232  ;;  %3838 = vmatmul.msk.bf16.vlgmr.msra.gmra.mxu0 %vm1681_vm3, %v3182_v41  ;;  %v4557_v35 = vpop.eup %4556  ;;  %3283 = vmatpush.bf16.msra.mxu3 %v3271_v49  ;;  %v2376_v16 = vmul.f32 %v4555_v22, %v6031_v28 }
 0x433   :  { %4558 = vrcp.f32 %v2233_v9  ;;  %3835 = vmatmul.msk.bf16.vlgmr.msrb.gmra.mxu1 %vm1681_vm3, %v3098_v63  ;;  %v2434_v25 = vpack.c.bf16 %v2370_v43, %v2370_v43  ;;  %v2373_v14 = vmul.f32 %v4557_v35, %v6056_v58  ;;  %v2251_v3 = vpop.xlane.xlu0 %2250 }
 0x434   :  { %4560 = vrcp.f32 %v2218_v21  ;;  %3339 = vmatpush.bf16.msrb.mxu1 %v3327_v13  ;;  %v2440_v18 = vpack.c.bf16 %v2376_v16, %v2376_v16  ;;  %v6591_v13 = vld [vmem:[#allocation15_spill] sm:$0xff]  ;;  %v6252_v22 = vpop.f32.mrf.mxu0  ;;  %v6592_v16 = vld [vmem:[#allocation50_spill] sm:$0xff] }
 0x435   :  { %4562 = vrcp.f32 %v2236_v7  ;;  %v3124_v33 = vunpack.c.l.b16 %v2434_v25  ;;  %v2437_v19 = vpack.c.bf16 %v2373_v14, %v2373_v14 }
 0x436   :  { %v2585_v29 = vpop.f32.mrf.mxu2  ;;  %v3208_v37 = vunpack.c.l.b16 %v2440_v18 }
 0x437   :  { %v3126_v2 = vpack.c.b16 %v3125_v40, %v3124_v33  ;;  %v3153_v50 = vunpack.c.l.b16 %v2437_v19  ;;  %v6256_v33 = vpop.f32.mrf.mxu1  ;;  %v6593_v19 = vld [vmem:[#allocation48_spill] sm:$0xff] }
 0x439   :  { %v4559_v26 = vpop.eup %4558  ;;  %v2239_v8 = vpop.xlane.xlu2 %2238 }
 0x43a   :  { %v4561_v23 = vpop.eup %4560  ;;  %v2377_v56 = vmul.f32 %v4559_v26, %v6066_v51  ;;  %4564 = vrcp.f32 %v2239_v8  ;;  %v2242_v4 = vpop.xlane.xlu1 %2241 }
 0x43b   :  { %v4563_v55 = vpop.eup %4562  ;;  %v2372_v32 = vmul.f32 %v4561_v23, %v6586_v34  ;;  %3836 = vmatmul.msk.bf16.vlgmr.msrb.gmra.mxu2 %vm1681_vm3, %v3126_v2  ;;  %4566 = vrcp.f32 %v2251_v3  ;;  %v2254_v25 = vpop.xlane.xlu0 %2253 }
 0x43c   :  { %v2441_v28 = vpack.c.bf16 %v2377_v56, %v2377_v56  ;;  %v2378_v44 = vmul.f32 %v4563_v55, %v6587_v52 }
 0x43d   :  { %v2436_v58 = vpack.c.bf16 %v2372_v32, %v2372_v32 }
 0x43e   :  { %v3209_v24 = vunpack.c.l.b16 %v2441_v28  ;;  %v2587_v11 = vpop.f32.mrf.mxu2  ;;  %v2442_v6 = vpack.c.bf16 %v2378_v44, %v2378_v44 }
 0x43f   :  { %v3152_v51 = vunpack.c.l.b16 %v2436_v58  ;;  %v4181_v7 = vpack.i.bf16 %v2587_v11, %v2585_v29  ;;  %v6260_v55 = vpop.f32.mrf.mxu1 }
 0x440   :  { %v3210_v45 = vpack.c.b16 %v3209_v24, %v3208_v37  ;;  %v4565_v48 = vpop.eup %4564  ;;  %v3236_v53 = vunpack.c.l.b16 %v2442_v6 }
 0x441   :  { %v3154_v61 = vpack.c.b16 %v3153_v50, %v3152_v51  ;;  %v2379_v47 = vmul.f32 %v4565_v48, %v6588_v59  ;;  %4182 = vrot.lane.b32.xlu2 %v4181_v7, %s4682_s24  ;;  %v2248_v54 = vpop.xlane.xlu2 %2247  ;;  %v4567_v36 = vpop.eup %4566 }
 0x442   :  { %4568 = vrcp.f32 %v2248_v54  ;;  %v2383_v31 = vmul.f32 %v4567_v36, %v6589_v15 }
 0x443   :  { %3837 = vmatmul.msk.bf16.vlgmr.msrb.gmra.mxu3 %vm1681_vm3, %v3154_v61  ;;  %3839 = vmatmul.msk.bf16.vlgmr.msra.gmra.mxu1 %vm1681_vm3, %v3210_v45  ;;  %v2443_v46 = vpack.c.bf16 %v2379_v47, %v2379_v47  ;;  %4570 = vrcp.f32 %v2242_v4 }
 0x444   :  { %v2447_v0 = vpack.c.bf16 %v2383_v31, %v2383_v31 }
 0x445   :  { %v3237_v12 = vunpack.c.l.b16 %v2443_v46 }
 0x446   :  { %v3293_v49 = vunpack.c.l.b16 %v2447_v0 }
 0x447   :  { %v3238_v30 = vpack.c.b16 %v3237_v12, %v3236_v53 }
 0x448   :  { %v4569_v62 = vpop.eup %4568 }
 0x449   :  { %v2382_v57 = vmul.f32 %v4569_v62, %v6590_v60  ;;  %v2245_v41 = vpop.xlane.xlu2 %2244  ;;  %v4571_v20 = vpop.eup %4570 }
 0x44a   :  { %4572 = vrcp.f32 %v2245_v41  ;;  %v2380_v9 = vmul.f32 %v4571_v20, %v6591_v13 }
 0x44b   :  { %3840 = vmatmul.msk.bf16.vlgmr.msra.gmra.mxu2 %vm1681_vm3, %v3238_v30  ;;  %v2446_v63 = vpack.c.bf16 %v2382_v57, %v2382_v57  ;;  %4574 = vrcp.f32 %v2254_v25 }
 0x44c   :  { %v2613_v27 = vpop.f32.mrf.mxu3  ;;  %v2444_v35 = vpack.c.bf16 %v2380_v9, %v2380_v9 }
 0x44d   :  { %v3292_v21 = vunpack.c.l.b16 %v2446_v63 }
 0x44e   :  { %v3264_v26 = vunpack.c.l.b16 %v2444_v35 }
 0x44f   :  { %v3294_v10 = vpack.c.b16 %v3293_v49, %v3292_v21 }
 0x450   :  { %v4573_v43 = vpop.eup %4572 }
 0x451   :  { %v2381_v40 = vmul.f32 %v4573_v43, %v6592_v16  ;;  %3842 = vmatmul.msk.bf16.vlgmr.msrb.gmra.mxu0 %vm1681_vm3, %v3294_v10  ;;  %v4575_v8 = vpop.eup %4574 }
 0x452   :  { %v2384_v34 = vmul.f32 %v4575_v8, %v6593_v19 }
 0x453   :  { %v2445_v14 = vpack.c.bf16 %v2381_v40, %v2381_v40 }
 0x454   :  { %v2615_v29 = vpop.f32.mrf.mxu3  ;;  %v2448_v52 = vpack.c.bf16 %v2384_v34, %v2384_v34 }
 0x455   :  { %v3265_v2 = vunpack.c.l.b16 %v2445_v14  ;;  %v4186_v23 = vpack.i.bf16 %v2615_v29, %v2613_v27 }
 0x456   :  { %v2641_v18 = vpop.f32.mrf.mxu0  ;;  %v3320_v50 = vunpack.c.l.b16 %v2448_v52 }
 0x457   :  { %v3266_v56 = vpack.c.b16 %v3265_v2, %v3264_v26  ;;  %4187 = vrot.lane.b32.xlu1 %v4186_v23, %s4682_s24 }
 0x458   :  { %v2257_v3 = vpop.xlane.xlu1 %2256 }
 0x459   :  { %3841 = vmatmul.msk.bf16.vlgmr.msra.gmra.mxu3 %vm1681_vm3, %v3266_v56  ;;  %4576 = vrcp.f32 %v2257_v3 }
 0x45e   :  { %v2697_v32 = vpop.f32.mrf.mxu2  ;;  %v2643_v28 = vpop.f32.mrf.mxu0 }
 0x45f   :  { %v4191_v58 = vpack.i.bf16 %v2643_v28, %v2641_v18  ;;  %v4577_v37 = vpop.eup %4576  ;;  %v2669_v11 = vpop.f32.mrf.mxu1 }
 0x460   :  { %v2385_v44 = vmul.f32 %v4577_v37, %v6145_v5 }
 0x461   :  { %4192 = vrot.lane.b32.xlu0 %v4191_v58, %s4682_s24 }
 0x462   :  { %v2449_v24 = vpack.c.bf16 %v2385_v44, %v2385_v44 }
 0x464   :  { %v3321_v51 = vunpack.c.l.b16 %v2449_v24 }
 0x466   :  { %v2699_v45 = vpop.f32.mrf.mxu2  ;;  %v2753_v7 = vpop.f32.mrf.mxu0  ;;  %v3322_v48 = vpack.c.b16 %v3321_v51, %v3320_v50 }
 0x467   :  { %v4206_v61 = vpack.i.bf16 %v2699_v45, %v2697_v32  ;;  %v2671_v47 = vpop.f32.mrf.mxu1 }
 0x468   :  { %3843 = vmatmul.msk.bf16.vlgmr.msrb.gmra.mxu1 %vm1681_vm3, %v3322_v48  ;;  %v4201_v5 = vpack.i.bf16 %v2671_v47, %v2669_v11 }
 0x469   :  { %4207 = vrot.lane.b32.xlu1 %v4206_v61, %s4694_s12 }
 0x46e   :  { %v2755_v6 = vpop.f32.mrf.mxu0 }
 0x46f   :  { %v4196_v59 = vpack.i.bf16 %v2755_v6, %v2753_v7  ;;  %v2781_v54 = vpop.f32.mrf.mxu1 }
 0x471   :  { %4197 = vrot.lane.b32.xlu0 %v4196_v59, %s4694_s12 }
 0x475   :  { %v2725_v46 = vpop.f32.mrf.mxu3 }
 0x476   :  { %v2865_v4 = vpop.f32.mrf.mxu0 }
 0x477   :  { %v2783_v15 = vpop.f32.mrf.mxu1 }
 0x478   :  { %v4216_v12 = vpack.i.bf16 %v2783_v15, %v2781_v54 }
 0x479   :  { %4202 = vrot.lane.b32.xlu0 %v4201_v5, %s4682_s24 }
 0x47d   :  { %v2727_v30 = vpop.f32.mrf.mxu3 }
 0x47e   :  { %v2867_v36 = vpop.f32.mrf.mxu0  ;;  %v4226_v63 = vpack.i.bf16 %v2727_v30, %v2725_v46 }
 0x47f   :  { %v4211_v53 = vpack.i.bf16 %v2867_v36, %v2865_v4 }
 0x480   :  { %v2893_v41 = vpop.f32.mrf.mxu1 }
 0x481   :  { %4212 = vrot.lane.b32.xlu1 %v4211_v53, %s4695_s13 }
 0x484   :  { %v2809_v31 = vpop.f32.mrf.mxu2 }
 0x485   :  { %v2837_v57 = vpop.f32.mrf.mxu3 }
 0x486   :  { %v2977_v62 = vpop.f32.mrf.mxu0 }
 0x488   :  { %v2895_v10 = vpop.f32.mrf.mxu1 }
 0x489   :  { %4217 = vrot.lane.b32.xlu1 %v4216_v12, %s4694_s12  ;;  %v4236_v35 = vpack.i.bf16 %v2895_v10, %v2893_v41 }
 0x48c   :  { %v2811_v0 = vpop.f32.mrf.mxu2 }
 0x48d   :  { %v4221_v60 = vpack.i.bf16 %v2811_v0, %v2809_v31  ;;  %v2839_v13 = vpop.f32.mrf.mxu3 }
 0x48e   :  { %v2979_v27 = vpop.f32.mrf.mxu0  ;;  %v4246_v25 = vpack.i.bf16 %v2839_v13, %v2837_v57 }
 0x48f   :  { %4222 = vrot.lane.b32.xlu2 %v4221_v60, %s4695_s13  ;;  %v4231_v9 = vpack.i.bf16 %v2979_v27, %v2977_v62 }
 0x490   :  { %v3005_v40 = vpop.f32.mrf.mxu1 }
 0x494   :  { %v2921_v20 = vpop.f32.mrf.mxu2 }
 0x496   :  { %v3089_v43 = vpop.f32.mrf.mxu0 }
 0x497   :  { %4227 = vrot.lane.b32.xlu2 %v4226_v63, %s4694_s12 }
 0x498   :  { %v3007_v18 = vpop.f32.mrf.mxu1 }
 0x499   :  { %v4271_v56 = vpack.i.bf16 %v3007_v18, %v3005_v40 }
 0x49b   :  { %v6277_v53 = vpop.permute.xlu2 %4182 }
 0x49c   :  { %v2923_v49 = vpop.f32.mrf.mxu2 }
 0x49d   :  { %v4241_v21 = vpack.i.bf16 %v2923_v49, %v2921_v20 }
 0x49e   :  { %v3091_v14 = vpop.f32.mrf.mxu0 }
 0x49f   :  { %4232 = vrot.lane.b32.xlu2 %v4231_v9, %s4696_s14  ;;  %4242 = vrot.lane.b32.xlu0 %v4241_v21, %s4696_s14  ;;  %v4251_v29 = vpack.i.bf16 %v3091_v14, %v3089_v43 }
 0x4a4   :  { %v2949_v16 = vpop.f32.mrf.mxu3 }
 0x4a7   :  { %4237 = vrot.lane.b32.xlu2 %v4236_v35, %s4695_s13  ;;  %4247 = vrot.lane.b32.xlu0 %v4246_v25, %s4695_s13  ;;  %v3875_v25 = vld [vmem:[#allocation7 + $0x18] sm:$0xff] }
 0x4a8   :  { %3876 = vmatpush.bf16.msrb.mxu3 %v3875_v25  ;;  %3687 = vmatpush.bf16.msrb.mxu2 %v3875_v25 }
 0x4ac   :  { %v2951_v26 = vpop.f32.mrf.mxu3 }
 0x4ad   :  { %v4266_v44 = vpack.i.bf16 %v2951_v26, %v2949_v16  ;;  %v3874_v16 = vld [vmem:[#allocation7 + $0x10] sm:$0xff] }
 0x4ae   :  { %v3033_v2 = vpop.f32.mrf.mxu2  ;;  %3877 = vmatpush.bf16.msrb.mxu3 %v3874_v16  ;;  %3688 = vmatpush.bf16.msrb.mxu2 %v3874_v16 }
 0x4af   :  { %4252 = vrot.lane.b32.xlu0 %v4251_v29, %s4697_s15  ;;  %v3201_v23 = vpop.f32.mrf.mxu0 }
 0x4b0   :  { %v3117_v58 = vpop.f32.mrf.mxu1 }
 0x4b4   :  { %v3061_v19 = vpop.f32.mrf.mxu3 }
 0x4b6   :  { %v3035_v3 = vpop.f32.mrf.mxu2 }
 0x4b7   :  { %v4256_v8 = vpack.i.bf16 %v3035_v3, %v3033_v2  ;;  %4272 = vrot.lane.b32.xlu0 %v4271_v56, %s4696_s14  ;;  %v3203_v34 = vpop.f32.mrf.mxu0 }
 0x4b8   :  { %v4261_v28 = vpack.i.bf16 %v3203_v34, %v3201_v23  ;;  %v3119_v50 = vpop.f32.mrf.mxu1 }
 0x4b9   :  { %4257 = vrot.lane.b32.xlu1 %v4256_v8, %s4697_s15  ;;  %v4291_v45 = vpack.i.bf16 %v3119_v50, %v3117_v58 }
 0x4bc   :  { %v3063_v37 = vpop.f32.mrf.mxu3 }
 0x4bd   :  { %v4286_v46 = vpack.i.bf16 %v3063_v37, %v3061_v19 }
 0x4be   :  { %v3145_v32 = vpop.f32.mrf.mxu2 }
 0x4c0   :  { %v3229_v48 = vpop.f32.mrf.mxu1 }
 0x4c1   :  { %4262 = vrot.lane.b32.xlu1 %v4261_v28, %s4698_s16 }
 0x4c6   :  { %v3147_v52 = vpop.f32.mrf.mxu2  ;;  %v3173_v51 = vpop.f32.mrf.mxu3 }
 0x4c7   :  { %v4276_v24 = vpack.i.bf16 %v3147_v52, %v3145_v32 }
 0x4c8   :  { %v3231_v54 = vpop.f32.mrf.mxu1 }
 0x4c9   :  { %4267 = vrot.lane.b32.xlu1 %v4266_v44, %s4696_s14  ;;  %4277 = vrot.lane.b32.xlu2 %v4276_v24, %s4698_s16  ;;  %v4306_v30 = vpack.i.bf16 %v3231_v54, %v3229_v48  ;;  %v4188_v0 = vpop.permute.xlu1 %4187 }
 0x4ca   :  { %v4190_v57 = vunpack.i.h.bf16 %v4188_v0  ;;  %v4189_v41 = vunpack.i.l.bf16 %v4188_v0 }
 0x4cc   :  { %v3573_v13 = vsel %vm691_vm1, %v6244_v39, %v4190_v57  ;;  %v3572_v9 = vsel %vm691_vm1, %v6235_v17, %v4189_v41  ;;  %v3873_v39 = vld [vmem:[#allocation7 + $0x8] sm:$0xff]  ;;  %v3872_v17 = vld [vmem:[#allocation7] sm:$0xff]  ;;  %v4185_v57 = vunpack.i.h.bf16 %v6277_v53  ;;  %v4184_v41 = vunpack.i.l.bf16 %v6277_v53 }
 0x4cd   :  { %3878 = vmatpush.bf16.msrb.mxu3 %v3873_v39  ;;  %3689 = vmatpush.bf16.msrb.mxu2 %v3873_v39 }
 0x4ce   :  { %v3257_v11 = vpop.f32.mrf.mxu2  ;;  %v3313_v7 = vpop.f32.mrf.mxu0  ;;  %v3570_v53 = vsel %vm691_vm1, %v6215_v42, %v4184_v41 }
 0x4cf   :  { %v3175_v61 = vpop.f32.mrf.mxu3 }
 0x4d0   :  { %v4301_v36 = vpack.i.bf16 %v3175_v61, %v3173_v51 }
 0x4d1   :  { %4292 = vrot.lane.b32.xlu1 %v4291_v45, %s4697_s15  ;;  %3879 = vmatpush.bf16.msrb.mxu3 %v3872_v17 }
 0x4d2   :  { %3690 = vmatpush.bf16.msrb.mxu2 %v3872_v17 }
 0x4d3   :  { %v4193_v43 = vpop.permute.xlu0 %4192 }
 0x4d4   :  { %v4195_v8 = vunpack.i.h.bf16 %v4193_v43  ;;  %v4194_v19 = vunpack.i.l.bf16 %v4193_v43 }
 0x4d6   :  { %v3259_v6 = vpop.f32.mrf.mxu2  ;;  %v3315_v47 = vpop.f32.mrf.mxu0  ;;  %v3575_v50 = vsel %vm691_vm1, %v6252_v22, %v4195_v8  ;;  %v3574_v51 = vsel %vm691_vm1, %v6246_v1, %v4194_v19 }
 0x4d7   :  { %v4296_v59 = vpack.i.bf16 %v3259_v6, %v3257_v11  ;;  %v4281_v4 = vpack.i.bf16 %v3315_v47, %v3313_v7 }
 0x4d9   :  { %4297 = vrot.lane.b32.xlu0 %v4296_v59, %s4699_s17  ;;  %4282 = vrot.lane.b32.xlu2 %v4281_v4, %s4699_s17 }
 0x4db   :  { %v6293_v40 = vpop.permute.xlu1 %4207 }
 0x4dc   :  { %v3285_v5 = vpop.f32.mrf.mxu3 }
 0x4e1   :  { %4302 = vrot.lane.b32.xlu0 %v4301_v36, %s4698_s16  ;;  %4287 = vrot.lane.b32.xlu2 %v4286_v46, %s4697_s15 }
 0x4e3   :  { %v4198_v35 = vpop.permute.xlu0 %4197 }
 0x4e4   :  { %v3287_v15 = vpop.f32.mrf.mxu3  ;;  %v4200_v32 = vunpack.i.h.bf16 %v4198_v35  ;;  %v4199_v28 = vunpack.i.l.bf16 %v4198_v35  ;;  %v3571_v35 = vsel %vm691_vm1, %v6225_v38, %v4185_v57 }
 0x4e5   :  { %v4311_v31 = vpack.i.bf16 %v3287_v15, %v3285_v5  ;;  %v3341_v12 = vpop.f32.mrf.mxu1 }
 0x4e6   :  { %v3582_v11 = vsel %vm1681_vm3, %v3574_v51, %v4199_v28  ;;  %v3583_v45 = vsel %vm1681_vm3, %v3575_v50, %v4200_v32 }
 0x4e7   :  { %4312 = vrot.lane.b32.xlu1 %v4311_v31, %s4699_s17 }
 0x4e9   :  { %v6280_v62 = vpop.permute.xlu2 %4222  ;;  %4307 = vrot.lane.b32.xlu2 %v4306_v30, %s4698_s16 }
 0x4eb   :  { %v6295_v14 = vpop.permute.xlu0 %4202 }
 0x4ed   :  { %v3343_v60 = vpop.f32.mrf.mxu1 }
 0x4ee   :  { %v4316_v20 = vpack.i.bf16 %v3343_v60, %v3341_v12 }
 0x4f0   :  { %4317 = vrot.lane.b32.xlu0 %v4316_v20, %s4699_s17  ;;  %v4210_v20 = vunpack.i.h.bf16 %v6293_v40 }
 0x4f1   :  { %v4228_v63 = vpop.permute.xlu2 %4227 }
 0x4f2   :  { %v4230_v27 = vunpack.i.h.bf16 %v4228_v63  ;;  %v4229_v49 = vunpack.i.l.bf16 %v4228_v63  ;;  %v4209_v63 = vunpack.i.l.bf16 %v6293_v40  ;;  %v3579_v40 = vsel %vm1681_vm3, %v3571_v35, %v4210_v20 }
 0x4f3   :  { %v4213_v29 = vpop.permute.xlu1 %4212 }
 0x4f4   :  { %v6288_v21 = vsel %vm1681_vm3, %v3573_v13, %v4230_v27  ;;  %v6291_v10 = vsel %vm1681_vm3, %v3572_v9, %v4229_v49  ;;  %v4215_v58 = vunpack.i.h.bf16 %v4213_v29  ;;  %v4214_v37 = vunpack.i.l.bf16 %v4213_v29 }
 0x4f5   :  { %v4225_v49 = vunpack.i.h.bf16 %v6280_v62  ;;  %v4224_v13 = vunpack.i.l.bf16 %v6280_v62  ;;  %v3578_v39 = vsel %vm1681_vm3, %v3570_v53, %v4209_v63 }
 0x4f6   :  { %v3591_v61 = vsel %vm3586_vm5, %v3582_v11, %v4214_v37  ;;  %v3592_v6 = vsel %vm3586_vm5, %v3583_v45, %v4215_v58 }
 0x4f7   :  { %v3588_v62 = vsel %vm3586_vm5, %v3579_v40, %v4225_v49  ;;  %v3587_v17 = vsel %vm3586_vm5, %v3578_v39, %v4224_v13 }
 0x4f9   :  { %v4233_v26 = vpop.permute.xlu2 %4232 }
 0x4fa   :  { %v4235_v44 = vunpack.i.h.bf16 %v4233_v26  ;;  %v4234_v24 = vunpack.i.l.bf16 %v4233_v26 }
 0x4fb   :  { %v6299_v23 = vpop.permute.xlu1 %4217 }
 0x4fc   :  { %v3600_v59 = vsel %vm3595_vm6, %v3591_v61, %v4234_v24  ;;  %v3601_v22 = vsel %vm3595_vm6, %v3592_v6, %v4235_v44 }
 0x501   :  { %v6301_v18 = vpop.permute.xlu2 %4237 }
 0x502   :  { %v4239_v57 = vunpack.i.l.bf16 %v6301_v18 }
 0x511   :  { %v6297_v2 = vpop.permute.xlu0 %4242 }
 0x512   :  { %v4245_v9 = vunpack.i.h.bf16 %v6297_v2  ;;  %v4244_v43 = vunpack.i.l.bf16 %v6297_v2 }
 0x514   :  { %v3597_v26 = vsel %vm3595_vm6, %v3588_v62, %v4245_v9  ;;  %v3596_v38 = vsel %vm3595_vm6, %v3587_v17, %v4244_v43 }
 0x519   :  { %v6303_v56 = vpop.permute.xlu0 %4247 }
 0x51a   :  { %v4250_v51 = vunpack.i.h.bf16 %v6303_v56  ;;  %v4249_v11 = vunpack.i.l.bf16 %v6303_v56  ;;  %v4205_v56 = vunpack.i.h.bf16 %v6295_v14 }
 0x51c   :  { %v3590_v61 = vsel %vm3586_vm5, %v6288_v21, %v4250_v51  ;;  %v3589_v6 = vsel %vm3586_vm5, %v6291_v10, %v4249_v11  ;;  %v4220_v10 = vunpack.i.h.bf16 %v6299_v23 }
 0x521   :  { %v4253_v52 = vpop.permute.xlu0 %4252 }
 0x522   :  { %v4255_v7 = vunpack.i.h.bf16 %v4253_v52  ;;  %v4254_v48 = vunpack.i.l.bf16 %v4253_v52 }
 0x523   :  { %v6307_v34 = vpop.permute.xlu2 %4277 }
 0x524   :  { %v3609_v54 = vsel %vm3604_vm7, %v3600_v59, %v4254_v48  ;;  %v3610_v36 = vsel %vm3604_vm7, %v3601_v22, %v4255_v7  ;;  %v4280_v8 = vunpack.i.h.bf16 %v6307_v34 }
 0x529   :  { %v6330_v27 = vpop.permute.xlu0 %4272 }
 0x52a   :  { %v4275_v20 = vunpack.i.h.bf16 %v6330_v27  ;;  %v4274_v63 = vunpack.i.l.bf16 %v6330_v27 }
 0x52b   :  { %v6305_v3 = vpop.permute.xlu1 %4257 }
 0x52c   :  { %v4260_v25 = vunpack.i.h.bf16 %v6305_v3  ;;  %v4259_v16 = vunpack.i.l.bf16 %v6305_v3  ;;  %v4279_v3 = vunpack.i.l.bf16 %v6307_v34 }
 0x52e   :  { %v3605_v2 = vsel %vm3604_vm7, %v3596_v38, %v4259_v16  ;;  %v3606_v42 = vsel %vm3604_vm7, %v3597_v26, %v4260_v25 }
 0x52f   :  { %v3614_v58 = vsel %vm3613_vm8, %v3605_v2, %v4279_v3  ;;  %v3615_v37 = vsel %vm3613_vm8, %v3606_v42, %v4280_v8 }
 0x533   :  { %v4263_v47 = vpop.permute.xlu1 %4262  ;;  %v4283_v5 = vpop.permute.xlu2 %4282 }
 0x534   :  { %v4265_v1 = vunpack.i.h.bf16 %v4263_v47  ;;  %v4264_v4 = vunpack.i.l.bf16 %v4263_v47  ;;  %v4285_v46 = vunpack.i.h.bf16 %v4283_v5  ;;  %v4284_v15 = vunpack.i.l.bf16 %v4283_v5 }
 0x536   :  { %v3618_v31 = vsel %vm3613_vm8, %v3609_v54, %v4264_v4  ;;  %v3619_v12 = vsel %vm3613_vm8, %v3610_v36, %v4265_v1  ;;  %v4204_v54 = vunpack.i.l.bf16 %v6295_v14 }
 0x537   :  { %v3627_v30 = vsel %vm3622_vm9, %v3618_v31, %v4284_v15  ;;  %v3628_v0 = vsel %vm3622_vm9, %v3619_v12, %v4285_v46  ;;  %v4219_v12 = vunpack.i.l.bf16 %v6299_v23  ;;  %v3577_v23 = vsel %vm691_vm1, %v6260_v55, %v4205_v56 }
 0x538   :  { %v3633_v60 = vpack.c.bf16 %v3628_v0, %v3627_v30  ;;  %v3576_v13 = vsel %vm691_vm1, %v6256_v33, %v4204_v54  ;;  %v3585_v53 = vsel %vm1681_vm3, %v3577_v23, %v4220_v10 }
 0x53a   :  { %3862 = vmatmul.msk.bf16.vlgmr.msrb.gmra.mxu3 %vm126_vm0, %v3633_v60  ;;  %v4240_v60 = vunpack.i.h.bf16 %v6301_v18  ;;  %v3584_v18 = vsel %vm1681_vm3, %v3576_v13, %v4219_v12 }
 0x53b   :  { %v4268_v29 = vpop.permute.xlu1 %4267  ;;  %v4288_v7 = vpop.permute.xlu2 %4287  ;;  %v3593_v25 = vsel %vm3586_vm5, %v3584_v18, %v4239_v57 }
 0x53c   :  { %v4270_v34 = vunpack.i.h.bf16 %v4268_v29  ;;  %v4269_v45 = vunpack.i.l.bf16 %v4268_v29  ;;  %v4290_v59 = vunpack.i.h.bf16 %v4288_v7  ;;  %v4289_v22 = vunpack.i.l.bf16 %v4288_v7 }
 0x53d   :  { %v3594_v16 = vsel %vm3586_vm5, %v3585_v53, %v4240_v60  ;;  %v3602_v27 = vsel %vm3595_vm6, %v3593_v25, %v4274_v63 }
 0x53e   :  { %v3598_v47 = vsel %vm3595_vm6, %v3589_v6, %v4269_v45  ;;  %v3599_v1 = vsel %vm3595_vm6, %v3590_v61, %v4270_v34  ;;  %v3603_v55 = vsel %vm3595_vm6, %v3594_v16, %v4275_v20 }
 0x53f   :  { %v3607_v46 = vsel %vm3604_vm7, %v3598_v47, %v4289_v22  ;;  %v3608_v21 = vsel %vm3604_vm7, %v3599_v1, %v4290_v59 }
 0x543   :  { %v4293_v50 = vpop.permute.xlu1 %4292  ;;  %v4308_v35 = vpop.permute.xlu2 %4307 }
 0x544   :  { %v4295_v9 = vunpack.i.h.bf16 %v4293_v50  ;;  %v4294_v43 = vunpack.i.l.bf16 %v4293_v50  ;;  %v4310_v40 = vunpack.i.h.bf16 %v4308_v35  ;;  %v4309_v39 = vunpack.i.l.bf16 %v4308_v35 }
 0x546   :  { %v3611_v33 = vsel %vm3604_vm7, %v3602_v27, %v4294_v43  ;;  %v3612_v62 = vsel %vm3604_vm7, %v3603_v55, %v4295_v9 }
 0x547   :  { %v3620_v38 = vsel %vm3613_vm8, %v3611_v33, %v4309_v39  ;;  %v3621_v2 = vsel %vm3613_vm8, %v3612_v62, %v4310_v40 }
 0x54b   :  { %v4298_v19 = vpop.permute.xlu0 %4297 }
 0x54c   :  { %v4300_v32 = vunpack.i.h.bf16 %v4298_v19  ;;  %v4299_v28 = vunpack.i.l.bf16 %v4298_v19  ;;  %v4321_v19 = vld [vmem:[%s6417_s3] ss:$0 sm:$0xff]  ;;  %s4700_s3 = smov [#allocation8]  }
 0x54d   :  { %s3724_s20 = sshll.u32 %s4700_s3, 4  ;;  %s3725_s20 = int_to_ptr.vmem [resolvable:$true] %s3724_s20 }
 0x54e   :  { %v3623_v52 = vsel %vm3622_vm9, %v3614_v58, %v4299_v28  ;;  %v3624_v44 = vsel %vm3622_vm9, %v3615_v37, %v4300_v32 }
 0x54f   :  { %v3631_v24 = vpack.c.bf16 %v3624_v44, %v3623_v52 }
 0x551   :  { %3860 = vmatmul.msk.bf16.vlgmr.msrb.gmra.mxu2 %vm126_vm0, %v3631_v24 }
 0x553   :  { %v4303_v48 = vpop.permute.xlu0 %4302 }
 0x554   :  { %v4305_v4 = vunpack.i.h.bf16 %v4303_v48  ;;  %v4304_v5 = vunpack.i.l.bf16 %v4303_v48 }
 0x556   :  { %v3616_v30 = vsel %vm3613_vm8, %v3607_v46, %v4304_v5  ;;  %v3617_v0 = vsel %vm3613_vm8, %v3608_v21, %v4305_v4 }
 0x559   :  { %v4313_v36 = vpop.permute.xlu1 %4312 }
 0x55a   :  { %v4315_v15 = vunpack.i.h.bf16 %v4313_v36  ;;  %v4314_v31 = vunpack.i.l.bf16 %v4313_v36 }
 0x55c   :  { %v3625_v14 = vsel %vm3622_vm9, %v3616_v30, %v4314_v31  ;;  %v3626_v41 = vsel %vm3622_vm9, %v3617_v0, %v4315_v15 }
 0x55d   :  { %v3632_v49 = vpack.c.bf16 %v3626_v41, %v3625_v14 }
 0x561   :  { %3861 = vmatmul.msk.bf16.gmra.mxu2 %vm126_vm0, %v3632_v49 }
 0x562   :  { %v4318_v17 = vpop.permute.xlu0 %4317 }
 0x563   :  { %v4320_v29 = vunpack.i.h.bf16 %v4318_v17  ;;  %v4319_v26 = vunpack.i.l.bf16 %v4318_v17 }
 0x565   :  { %v3629_v42 = vsel %vm3622_vm9, %v3620_v38, %v4319_v26  ;;  %v3630_v8 = vsel %vm3622_vm9, %v3621_v2, %v4320_v29 }
 0x566   :  { %v3634_v3 = vpack.c.bf16 %v3630_v8, %v3629_v42 }
 0x568   :  { %3863 = vmatmul.msk.bf16.gmra.mxu3 %vm126_vm0, %v3634_v3 }
 0x5bd   :  { %v3702_v32 = vpop.f32.mrf.mxu3 }
 0x5be   :  { %v3703_v28 = vadd.f32 %v4321_v19, %v3702_v32 }
 0x5c0   :  { %3716 = vst.msk [vmem:[#allocation8 + $0x20] sm:$0xff] %vm126_vm0, %v3703_v28 }
 0x5c5   :  { %v3704_v58 = vpop.f32.mrf.mxu3 }
 0x5c6   :  { %v3705_v37 = vadd.f32 %v4321_v19, %v3704_v58 }
 0x5c8   :  { %3717 = vst.msk [vmem:[#allocation8 + $0x28] sm:$0xff] %vm126_vm0, %v3705_v37 }
 0x5d4   :  { %v3692_v52 = vpop.f32.mrf.mxu2 }
 0x5d5   :  { %v3693_v44 = vadd.f32 %v4321_v19, %v3692_v52 }
 0x5d7   :  { %3712 = vst.msk [vmem:[#allocation8] sm:$0xff] %vm126_vm0, %v3693_v44 }
 0x5dc   :  { %v3694_v24 = vpop.f32.mrf.mxu2 }
 0x5dd   :  { %v3695_v50 = vadd.f32 %v4321_v19, %v3694_v24 }
 0x5df   :  { %3713 = vst.msk [vmem:[#allocation8 + $0x8] sm:$0xff] %vm126_vm0, %v3695_v50 }
 0x5e4   :  { %v3697_v51 = vpop.f32.mrf.mxu2 }
 0x5e5   :  { %v3698_v11 = vadd.f32 %v4321_v19, %v3697_v51 }
 0x5e7   :  { %3714 = vst.msk [vmem:[#allocation8 + $0x10] sm:$0xff] %vm126_vm0, %v3698_v11 }
 0x5eb   :  { %v3707_v7 = vpop.f32.mrf.mxu3 }
 0x5ec   :  { %v3699_v34 = vpop.f32.mrf.mxu2  ;;  %v3708_v48 = vadd.f32 %v4321_v19, %v3707_v7 }
 0x5ed   :  { %v3700_v45 = vadd.f32 %v4321_v19, %v3699_v34 }
 0x5ee   :  { %3718 = vst.msk [vmem:[#allocation8 + $0x30] sm:$0xff] %vm126_vm0, %v3708_v48 }
 0x5ef   :  { %3715 = vst.msk [vmem:[#allocation8 + $0x18] sm:$0xff] %vm126_vm0, %v3700_v45 }
 0x5f3   :  { %v3709_v61 = vpop.f32.mrf.mxu3 }
 0x5f4   :  { %v3710_v6 = vadd.f32 %v4321_v19, %v3709_v61 }
 0x5f6   :  { %3719 = vst.msk [vmem:[#allocation8 + $0x38] sm:$0xff] %vm126_vm0, %v3710_v6 }
 0x5f7   :  { %3732 = dma.vmem_to_hbm [thread:$0]  %s3725_s20, 1024, %s3727_s25, [#allocation4], %s4681_s23, %s4681_s23, %s4682_s24  }
 0x5f8   :  { %4678 = dma.done.wait [#allocation4], 1024  }
 0x5f9   :  { %4679 = vsyncadd [#allocation4], 4294966272 }
 0x5fa   :  { %3737 = vsyncpa [#allocation3], 1 }
 0x5fb   :  { %3738 = vsyncpa [#allocation6], 1 }
 0x5fc   :  { %3739 = vsyncpa [#allocation4], 1 }

</bundles_post_ra>
